<compile_context>
chip_gen: v6e
topology: v6e:2x2x1
jax: 0.10.0
libtpu: 0.0.40
codegen_flags: <defaults>
</compile_context>

<pallas_src>
import functools

import jax
import jax.numpy as jnp
from jax.experimental import pallas as pl
from jax.experimental.pallas import tpu as pltpu


# ----------------------------------------------------------------------------
# Pallas kernel: locally-connected conv for one (batch tile, output-row tile)
# ----------------------------------------------------------------------------
def _lc_conv_kernel(x_ref, w_ref, o_ref, *, kernel_size, stride, num_in_ch):
    """x_ref : (TB, C, H, W)          full-height input slab for this batch tile
       w_ref : (K*K*C, Cout, TH, OW)  weights for this row tile, lanes = OW
       o_ref : (TB, Cout, TH, OW)     NCHW output block, lanes = OW
    """
    K = kernel_size
    C = num_in_ch
    TB, Cout, TH, OW = o_ref.shape

    # First input row touched by this output-row tile (aligned to TH*stride).
    row0 = pl.multiple_of(pl.program_id(1) * (TH * stride), TH * stride)

    acc = jnp.zeros((TB, Cout, TH, OW), jnp.float32)
    # Statically unrolled over the K*K kernel taps and C input channels
    # (all small).  Each step is a full-slab VPU multiply-accumulate; the
    # shifted input windows are in-VMEM ref slices (in-kernel "im2col").
    for ki in range(K):
        for kj in range(K):
            if stride == 1:
                x_slab = x_ref[:, :, pl.ds(row0 + ki, TH), pl.ds(kj, OW)]
            else:
                # Read a contiguous window, then downsample with a static
                # strided slice on the loaded array (safer than strided ref
                # reads on sublane/lane dims).
                win_h = (TH - 1) * stride + 1
                win_w = (OW - 1) * stride + 1
                x_win = x_ref[:, :, pl.ds(row0 + ki, win_h), pl.ds(kj, win_w)]
                x_slab = x_win[:, :, ::stride, ::stride]
            x_slab = x_slab.astype(jnp.float32)                 # (TB, C, TH, OW)
            for c in range(C):
                w_d = w_ref[(ki * K + kj) * C + c].astype(jnp.float32)  # (Cout, TH, OW)
                acc = acc + x_slab[:, c][:, None, :, :] * w_d[None, :, :, :]

    o_ref[...] = acc.astype(o_ref.dtype)


# ----------------------------------------------------------------------------
# Tile selection: respect TPU block rules + a per-step VMEM budget
# ----------------------------------------------------------------------------
def _pick_tiles(B, C, H, W, OH, OW, Cout, K,
                dtype_bytes=4, per_step_budget=6 * 1024 * 1024):
    def divisors(n):
        return [d for d in range(1, n + 1) if n % d == 0]

    # Row tile must be the full OH (full-dim block) or a multiple-of-8 divisor
    # of OH (sublane rule for non-full second-to-last block dims).
    th_opts = sorted({OH} | {d for d in divisors(OH) if d % 8 == 0},
                     reverse=True)
    tb_opts = sorted(divisors(B), reverse=True)

    def step_bytes(tb, th):
        x_b = tb * C * H * W
        w_b = K * K * C * Cout * th * OW
        o_b = tb * Cout * th * OW
        return dtype_bytes * (x_b + w_b + o_b)

    for tb in tb_opts:
        for th in th_opts:
            if 2 * step_bytes(tb, th) <= per_step_budget:   # ~double-buffered
                return tb, th
    return 1, th_opts[-1]


# ----------------------------------------------------------------------------
# Wrapper: weight re-layout (once) + pallas_call
# ----------------------------------------------------------------------------
def stdp_conv_inhibit_forward(in_spikes, weights, *, out_dim, stride=1):
    """in_spikes: (B, C, H, W) NCHW; weights: (OH, OW, C, K, K, Cout)."""
    B, C, H, W = in_spikes.shape
    OH, OW, Cw, K, K2, Cout = weights.shape
    assert (OH, OW) == tuple(out_dim)
    assert K == K2 and Cw == C
    assert (OH - 1) * stride + K <= H and (OW - 1) * stride + K <= W

    # Re-layout the (parameter-sized) weights once:
    # (OH, OW, C, K, K, Cout) -> (K, K, C, Cout, OH, OW) -> (K*K*C, Cout, OH, OW)
    # so w_r[(ki*K + kj)*C + c, o, i, j] == weights[i, j, c, ki, kj, o].
    w_r = jnp.transpose(weights, (3, 4, 2, 5, 0, 1)).reshape(
        K * K * C, Cout, OH, OW)

    TB, TH = _pick_tiles(B, C, H, W, OH, OW, Cout, K)
    grid = (B // TB, OH // TH)

    step_bytes = 4 * (TB * C * H * W + K * K * C * Cout * TH * OW
                      + TB * Cout * TH * OW)
    vmem_limit = int(min(32 * 1024 * 1024,
                         max(16 * 1024 * 1024, 4 * step_bytes)))

    kernel = functools.partial(_lc_conv_kernel, kernel_size=K, stride=stride,
                               num_in_ch=C)

    cost = pl.CostEstimate(
        flops=2 * B * Cout * OH * OW * C * K * K,
        transcendentals=0,
        bytes_accessed=4 * (B * C * H * W + K * K * C * Cout * OH * OW
                            + B * Cout * OH * OW),
    )

    return pl.pallas_call(
        kernel,
        out_shape=jax.ShapeDtypeStruct((B, Cout, OH, OW), in_spikes.dtype),
        grid=grid,
        in_specs=[
            # Full-height input slab per batch tile; the block index does not
            # depend on the row-tile axis, so it stays resident across it.
            pl.BlockSpec((TB, C, H, W), lambda bt, ht: (bt, 0, 0, 0)),
            # Weights for this row tile, width on lanes.
            pl.BlockSpec((K * K * C, Cout, TH, OW),
                         lambda bt, ht: (0, 0, ht, 0)),
        ],
        out_specs=pl.BlockSpec((TB, Cout, TH, OW),
                               lambda bt, ht: (bt, 0, ht, 0)),
        compiler_params=pltpu.CompilerParams(
            dimension_semantics=("parallel", "parallel"),
            vmem_limit_bytes=vmem_limit,
        ),
        cost_estimate=cost,
    )(in_spikes, w_r)


# ----------------------------------------------------------------------------
# Pure-JAX reference (matches the PyTorch triple loop)
# ----------------------------------------------------------------------------
def reference_forward(in_spikes, weights, *, out_dim, stride=1):
    OH, OW = out_dim
    K = weights.shape[3]
    taps = []
    for ki in range(K):
        for kj in range(K):
            taps.append(in_spikes[:, :,
                                  ki:ki + (OH - 1) * stride + 1:stride,
                                  kj:kj + (OW - 1) * stride + 1:stride])
    patches = jnp.stack(taps, axis=0).reshape(K, K, *taps[0].shape)  # (K,K,B,C,OH,OW)
    return jnp.einsum("pqbcij,ijcpqo->boij", patches, weights)


if __name__ == "__main__":
    # Small shapes consistent with the module (forward applies no padding,
    # so out_dim = in_dim - K + 1 with stride 1).
    batch_size = 2
    num_channels = 4
    in_dim = (16, 16)
    kernel_size = 3
    stride = 1
    out_dim = (in_dim[0] - kernel_size + 1, in_dim[1] - kernel_size + 1)  # (14, 14)

    key = jax.random.PRNGKey(0)
    k_w, k_x = jax.random.split(key)

    # Deterministic parameter init: randn * (1 / (K*K)), matching __init__.
    weights = jax.random.normal(
        k_w,
        (out_dim[0], out_dim[1], num_channels, kernel_size, kernel_size,
         num_channels),
        dtype=jnp.float32,
    ) * (1.0 / (kernel_size * kernel_size))

    # Binary spike input.
    in_spikes = (jax.random.uniform(
        k_x, (batch_size, num_channels, in_dim[0], in_dim[1])) > 0.5
    ).astype(jnp.float32)

    fwd = functools.partial(stdp_conv_inhibit_forward, out_dim=out_dim,
                            stride=stride)
    out = jax.jit(fwd)(in_spikes, weights)
    out = jax.block_until_ready(out)

    ref = reference_forward(in_spikes, weights, out_dim=out_dim, stride=stride)
    assert out.shape == (batch_size, num_channels, out_dim[0], out_dim[1])
    assert jnp.allclose(out, ref, atol=1e-5, rtol=1e-5)

    # TODO(synk): membrane/inhibition/trace state updates are not part of this
    # module's forward() and are therefore not implemented here.
    print("KERNEL_OK")
</pallas_src>

<mosaic_0001>
module attributes {stable_mosaic.version = 11 : i64} {
  func.func @_lc_conv_kernel(%arg0: i32, %arg1: i32, %arg2: memref<2x4x16x16xf32, #tpu.memory_space<vmem>>, %arg3: memref<36x4x14x14xf32, #tpu.memory_space<vmem>>, %arg4: memref<2x4x14x14xf32, #tpu.memory_space<vmem>>) attributes {dimension_semantics = [#tpu.dimension_semantics<parallel>, #tpu.dimension_semantics<parallel>], iteration_bounds = array<i64: 1, 1>, scalar_prefetch = 0 : i64, scratch_operands = 0 : i64, tpu.core_type = #tpu.core_type<tc>, window_params = [{transform_indices = @transform_0, window_bounds = array<i64: 2, 4, 16, 16>}, {transform_indices = @transform_1, window_bounds = array<i64: 36, 4, 14, 14>}, {transform_indices = @transform_2, window_bounds = array<i64: 2, 4, 14, 14>}]} {
    %c14_i32 = arith.constant 14 : i32
    %0 = arith.muli %arg1, %c14_i32 : i32
    %1 = tpu.assume_multiple %0, 14 : i32
    %cst = arith.constant 0.000000e+00 : f32
    %2 = vector.broadcast %cst : f32 to vector<2x4x14x14xf32>
    %c0_i32 = arith.constant 0 : i32
    %3 = arith.addi %1, %c0_i32 : i32
    %c0 = arith.constant 0 : index
    %c0_0 = arith.constant 0 : index
    %4 = arith.index_cast %3 : i32 to index
    %c0_1 = arith.constant 0 : index
    %5 = vector.load %arg2[%c0, %c0_0, %4, %c0_1] : memref<2x4x16x16xf32, #tpu.memory_space<vmem>>, vector<2x4x14x14xf32>
    %c0_2 = arith.constant 0 : index
    %c0_3 = arith.constant 0 : index
    %c0_4 = arith.constant 0 : index
    %c0_5 = arith.constant 0 : index
    %6 = vector.load %arg3[%c0_2, %c0_3, %c0_4, %c0_5] : memref<36x4x14x14xf32, #tpu.memory_space<vmem>>, vector<1x4x14x14xf32>
    %7 = vector.shape_cast %6 : vector<1x4x14x14xf32> to vector<4x14x14xf32>
    %8 = vector.extract_strided_slice %5 {offsets = [0, 0, 0, 0], sizes = [2, 1, 14, 14], strides = [1, 1, 1, 1]} : vector<2x4x14x14xf32> to vector<2x1x14x14xf32>
    %9 = vector.shape_cast %8 : vector<2x1x14x14xf32> to vector<2x14x14xf32>
    %10 = vector.shape_cast %9 : vector<2x14x14xf32> to vector<2x1x14x14xf32>
    %11 = vector.shape_cast %7 : vector<4x14x14xf32> to vector<1x4x14x14xf32>
    %12 = vector.broadcast %10 : vector<2x1x14x14xf32> to vector<2x4x14x14xf32>
    %13 = vector.broadcast %11 : vector<1x4x14x14xf32> to vector<2x4x14x14xf32>
    %14 = arith.mulf %12, %13 : vector<2x4x14x14xf32>
    %15 = arith.addf %2, %14 : vector<2x4x14x14xf32>
    %c1 = arith.constant 1 : index
    %c0_6 = arith.constant 0 : index
    %c0_7 = arith.constant 0 : index
    %c0_8 = arith.constant 0 : index
    %16 = vector.load %arg3[%c1, %c0_6, %c0_7, %c0_8] : memref<36x4x14x14xf32, #tpu.memory_space<vmem>>, vector<1x4x14x14xf32>
    %17 = vector.shape_cast %16 : vector<1x4x14x14xf32> to vector<4x14x14xf32>
    %18 = vector.extract_strided_slice %5 {offsets = [0, 1, 0, 0], sizes = [2, 1, 14, 14], strides = [1, 1, 1, 1]} : vector<2x4x14x14xf32> to vector<2x1x14x14xf32>
    %19 = vector.shape_cast %18 : vector<2x1x14x14xf32> to vector<2x14x14xf32>
    %20 = vector.shape_cast %19 : vector<2x14x14xf32> to vector<2x1x14x14xf32>
    %21 = vector.shape_cast %17 : vector<4x14x14xf32> to vector<1x4x14x14xf32>
    %22 = vector.broadcast %20 : vector<2x1x14x14xf32> to vector<2x4x14x14xf32>
    %23 = vector.broadcast %21 : vector<1x4x14x14xf32> to vector<2x4x14x14xf32>
    %24 = arith.mulf %22, %23 : vector<2x4x14x14xf32>
    %25 = arith.addf %15, %24 : vector<2x4x14x14xf32>
    %c2 = arith.constant 2 : index
    %c0_9 = arith.constant 0 : index
    %c0_10 = arith.constant 0 : index
    %c0_11 = arith.constant 0 : index
    %26 = vector.load %arg3[%c2, %c0_9, %c0_10, %c0_11] : memref<36x4x14x14xf32, #tpu.memory_space<vmem>>, vector<1x4x14x14xf32>
    %27 = vector.shape_cast %26 : vector<1x4x14x14xf32> to vector<4x14x14xf32>
    %28 = vector.extract_strided_slice %5 {offsets = [0, 2, 0, 0], sizes = [2, 1, 14, 14], strides = [1, 1, 1, 1]} : vector<2x4x14x14xf32> to vector<2x1x14x14xf32>
    %29 = vector.shape_cast %28 : vector<2x1x14x14xf32> to vector<2x14x14xf32>
    %30 = vector.shape_cast %29 : vector<2x14x14xf32> to vector<2x1x14x14xf32>
    %31 = vector.shape_cast %27 : vector<4x14x14xf32> to vector<1x4x14x14xf32>
    %32 = vector.broadcast %30 : vector<2x1x14x14xf32> to vector<2x4x14x14xf32>
    %33 = vector.broadcast %31 : vector<1x4x14x14xf32> to vector<2x4x14x14xf32>
    %34 = arith.mulf %32, %33 : vector<2x4x14x14xf32>
    %35 = arith.addf %25, %34 : vector<2x4x14x14xf32>
    %c3 = arith.constant 3 : index
    %c0_12 = arith.constant 0 : index
    %c0_13 = arith.constant 0 : index
    %c0_14 = arith.constant 0 : index
    %36 = vector.load %arg3[%c3, %c0_12, %c0_13, %c0_14] : memref<36x4x14x14xf32, #tpu.memory_space<vmem>>, vector<1x4x14x14xf32>
    %37 = vector.shape_cast %36 : vector<1x4x14x14xf32> to vector<4x14x14xf32>
    %38 = vector.extract_strided_slice %5 {offsets = [0, 3, 0, 0], sizes = [2, 1, 14, 14], strides = [1, 1, 1, 1]} : vector<2x4x14x14xf32> to vector<2x1x14x14xf32>
    %39 = vector.shape_cast %38 : vector<2x1x14x14xf32> to vector<2x14x14xf32>
    %40 = vector.shape_cast %39 : vector<2x14x14xf32> to vector<2x1x14x14xf32>
    %41 = vector.shape_cast %37 : vector<4x14x14xf32> to vector<1x4x14x14xf32>
    %42 = vector.broadcast %40 : vector<2x1x14x14xf32> to vector<2x4x14x14xf32>
    %43 = vector.broadcast %41 : vector<1x4x14x14xf32> to vector<2x4x14x14xf32>
    %44 = arith.mulf %42, %43 : vector<2x4x14x14xf32>
    %45 = arith.addf %35, %44 : vector<2x4x14x14xf32>
    %c0_i32_15 = arith.constant 0 : i32
    %46 = arith.addi %1, %c0_i32_15 : i32
    %c0_16 = arith.constant 0 : index
    %c0_17 = arith.constant 0 : index
    %47 = arith.index_cast %46 : i32 to index
    %c1_18 = arith.constant 1 : index
    %48 = vector.load %arg2[%c0_16, %c0_17, %47, %c1_18] : memref<2x4x16x16xf32, #tpu.memory_space<vmem>>, vector<2x4x14x14xf32>
    %c4 = arith.constant 4 : index
    %c0_19 = arith.constant 0 : index
    %c0_20 = arith.constant 0 : index
    %c0_21 = arith.constant 0 : index
    %49 = vector.load %arg3[%c4, %c0_19, %c0_20, %c0_21] : memref<36x4x14x14xf32, #tpu.memory_space<vmem>>, vector<1x4x14x14xf32>
    %50 = vector.shape_cast %49 : vector<1x4x14x14xf32> to vector<4x14x14xf32>
    %51 = vector.extract_strided_slice %48 {offsets = [0, 0, 0, 0], sizes = [2, 1, 14, 14], strides = [1, 1, 1, 1]} : vector<2x4x14x14xf32> to vector<2x1x14x14xf32>
    %52 = vector.shape_cast %51 : vector<2x1x14x14xf32> to vector<2x14x14xf32>
    %53 = vector.shape_cast %52 : vector<2x14x14xf32> to vector<2x1x14x14xf32>
    %54 = vector.shape_cast %50 : vector<4x14x14xf32> to vector<1x4x14x14xf32>
    %55 = vector.broadcast %53 : vector<2x1x14x14xf32> to vector<2x4x14x14xf32>
    %56 = vector.broadcast %54 : vector<1x4x14x14xf32> to vector<2x4x14x14xf32>
    %57 = arith.mulf %55, %56 : vector<2x4x14x14xf32>
    %58 = arith.addf %45, %57 : vector<2x4x14x14xf32>
    %c5 = arith.constant 5 : index
    %c0_22 = arith.constant 0 : index
    %c0_23 = arith.constant 0 : index
    %c0_24 = arith.constant 0 : index
    %59 = vector.load %arg3[%c5, %c0_22, %c0_23, %c0_24] : memref<36x4x14x14xf32, #tpu.memory_space<vmem>>, vector<1x4x14x14xf32>
    %60 = vector.shape_cast %59 : vector<1x4x14x14xf32> to vector<4x14x14xf32>
    %61 = vector.extract_strided_slice %48 {offsets = [0, 1, 0, 0], sizes = [2, 1, 14, 14], strides = [1, 1, 1, 1]} : vector<2x4x14x14xf32> to vector<2x1x14x14xf32>
    %62 = vector.shape_cast %61 : vector<2x1x14x14xf32> to vector<2x14x14xf32>
    %63 = vector.shape_cast %62 : vector<2x14x14xf32> to vector<2x1x14x14xf32>
    %64 = vector.shape_cast %60 : vector<4x14x14xf32> to vector<1x4x14x14xf32>
    %65 = vector.broadcast %63 : vector<2x1x14x14xf32> to vector<2x4x14x14xf32>
    %66 = vector.broadcast %64 : vector<1x4x14x14xf32> to vector<2x4x14x14xf32>
    %67 = arith.mulf %65, %66 : vector<2x4x14x14xf32>
    %68 = arith.addf %58, %67 : vector<2x4x14x14xf32>
    %c6 = arith.constant 6 : index
    %c0_25 = arith.constant 0 : index
    %c0_26 = arith.constant 0 : index
    %c0_27 = arith.constant 0 : index
    %69 = vector.load %arg3[%c6, %c0_25, %c0_26, %c0_27] : memref<36x4x14x14xf32, #tpu.memory_space<vmem>>, vector<1x4x14x14xf32>
    %70 = vector.shape_cast %69 : vector<1x4x14x14xf32> to vector<4x14x14xf32>
    %71 = vector.extract_strided_slice %48 {offsets = [0, 2, 0, 0], sizes = [2, 1, 14, 14], strides = [1, 1, 1, 1]} : vector<2x4x14x14xf32> to vector<2x1x14x14xf32>
    %72 = vector.shape_cast %71 : vector<2x1x14x14xf32> to vector<2x14x14xf32>
    %73 = vector.shape_cast %72 : vector<2x14x14xf32> to vector<2x1x14x14xf32>
    %74 = vector.shape_cast %70 : vector<4x14x14xf32> to vector<1x4x14x14xf32>
    %75 = vector.broadcast %73 : vector<2x1x14x14xf32> to vector<2x4x14x14xf32>
    %76 = vector.broadcast %74 : vector<1x4x14x14xf32> to vector<2x4x14x14xf32>
    %77 = arith.mulf %75, %76 : vector<2x4x14x14xf32>
    %78 = arith.addf %68, %77 : vector<2x4x14x14xf32>
    %c7 = arith.constant 7 : index
    %c0_28 = arith.constant 0 : index
    %c0_29 = arith.constant 0 : index
    %c0_30 = arith.constant 0 : index
    %79 = vector.load %arg3[%c7, %c0_28, %c0_29, %c0_30] : memref<36x4x14x14xf32, #tpu.memory_space<vmem>>, vector<1x4x14x14xf32>
    %80 = vector.shape_cast %79 : vector<1x4x14x14xf32> to vector<4x14x14xf32>
    %81 = vector.extract_strided_slice %48 {offsets = [0, 3, 0, 0], sizes = [2, 1, 14, 14], strides = [1, 1, 1, 1]} : vector<2x4x14x14xf32> to vector<2x1x14x14xf32>
    %82 = vector.shape_cast %81 : vector<2x1x14x14xf32> to vector<2x14x14xf32>
    %83 = vector.shape_cast %82 : vector<2x14x14xf32> to vector<2x1x14x14xf32>
    %84 = vector.shape_cast %80 : vector<4x14x14xf32> to vector<1x4x14x14xf32>
    %85 = vector.broadcast %83 : vector<2x1x14x14xf32> to vector<2x4x14x14xf32>
    %86 = vector.broadcast %84 : vector<1x4x14x14xf32> to vector<2x4x14x14xf32>
    %87 = arith.mulf %85, %86 : vector<2x4x14x14xf32>
    %88 = arith.addf %78, %87 : vector<2x4x14x14xf32>
    %c0_i32_31 = arith.constant 0 : i32
    %89 = arith.addi %1, %c0_i32_31 : i32
    %c0_32 = arith.constant 0 : index
    %c0_33 = arith.constant 0 : index
    %90 = arith.index_cast %89 : i32 to index
    %c2_34 = arith.constant 2 : index
    %91 = vector.load %arg2[%c0_32, %c0_33, %90, %c2_34] : memref<2x4x16x16xf32, #tpu.memory_space<vmem>>, vector<2x4x14x14xf32>
    %c8 = arith.constant 8 : index
    %c0_35 = arith.constant 0 : index
    %c0_36 = arith.constant 0 : index
    %c0_37 = arith.constant 0 : index
    %92 = vector.load %arg3[%c8, %c0_35, %c0_36, %c0_37] : memref<36x4x14x14xf32, #tpu.memory_space<vmem>>, vector<1x4x14x14xf32>
    %93 = vector.shape_cast %92 : vector<1x4x14x14xf32> to vector<4x14x14xf32>
    %94 = vector.extract_strided_slice %91 {offsets = [0, 0, 0, 0], sizes = [2, 1, 14, 14], strides = [1, 1, 1, 1]} : vector<2x4x14x14xf32> to vector<2x1x14x14xf32>
    %95 = vector.shape_cast %94 : vector<2x1x14x14xf32> to vector<2x14x14xf32>
    %96 = vector.shape_cast %95 : vector<2x14x14xf32> to vector<2x1x14x14xf32>
    %97 = vector.shape_cast %93 : vector<4x14x14xf32> to vector<1x4x14x14xf32>
    %98 = vector.broadcast %96 : vector<2x1x14x14xf32> to vector<2x4x14x14xf32>
    %99 = vector.broadcast %97 : vector<1x4x14x14xf32> to vector<2x4x14x14xf32>
    %100 = arith.mulf %98, %99 : vector<2x4x14x14xf32>
    %101 = arith.addf %88, %100 : vector<2x4x14x14xf32>
    %c9 = arith.constant 9 : index
    %c0_38 = arith.constant 0 : index
    %c0_39 = arith.constant 0 : index
    %c0_40 = arith.constant 0 : index
    %102 = vector.load %arg3[%c9, %c0_38, %c0_39, %c0_40] : memref<36x4x14x14xf32, #tpu.memory_space<vmem>>, vector<1x4x14x14xf32>
    %103 = vector.shape_cast %102 : vector<1x4x14x14xf32> to vector<4x14x14xf32>
    %104 = vector.extract_strided_slice %91 {offsets = [0, 1, 0, 0], sizes = [2, 1, 14, 14], strides = [1, 1, 1, 1]} : vector<2x4x14x14xf32> to vector<2x1x14x14xf32>
    %105 = vector.shape_cast %104 : vector<2x1x14x14xf32> to vector<2x14x14xf32>
    %106 = vector.shape_cast %105 : vector<2x14x14xf32> to vector<2x1x14x14xf32>
    %107 = vector.shape_cast %103 : vector<4x14x14xf32> to vector<1x4x14x14xf32>
    %108 = vector.broadcast %106 : vector<2x1x14x14xf32> to vector<2x4x14x14xf32>
    %109 = vector.broadcast %107 : vector<1x4x14x14xf32> to vector<2x4x14x14xf32>
    %110 = arith.mulf %108, %109 : vector<2x4x14x14xf32>
    %111 = arith.addf %101, %110 : vector<2x4x14x14xf32>
    %c10 = arith.constant 10 : index
    %c0_41 = arith.constant 0 : index
    %c0_42 = arith.constant 0 : index
    %c0_43 = arith.constant 0 : index
    %112 = vector.load %arg3[%c10, %c0_41, %c0_42, %c0_43] : memref<36x4x14x14xf32, #tpu.memory_space<vmem>>, vector<1x4x14x14xf32>
    %113 = vector.shape_cast %112 : vector<1x4x14x14xf32> to vector<4x14x14xf32>
    %114 = vector.extract_strided_slice %91 {offsets = [0, 2, 0, 0], sizes = [2, 1, 14, 14], strides = [1, 1, 1, 1]} : vector<2x4x14x14xf32> to vector<2x1x14x14xf32>
    %115 = vector.shape_cast %114 : vector<2x1x14x14xf32> to vector<2x14x14xf32>
    %116 = vector.shape_cast %115 : vector<2x14x14xf32> to vector<2x1x14x14xf32>
    %117 = vector.shape_cast %113 : vector<4x14x14xf32> to vector<1x4x14x14xf32>
    %118 = vector.broadcast %116 : vector<2x1x14x14xf32> to vector<2x4x14x14xf32>
    %119 = vector.broadcast %117 : vector<1x4x14x14xf32> to vector<2x4x14x14xf32>
    %120 = arith.mulf %118, %119 : vector<2x4x14x14xf32>
    %121 = arith.addf %111, %120 : vector<2x4x14x14xf32>
    %c11 = arith.constant 11 : index
    %c0_44 = arith.constant 0 : index
    %c0_45 = arith.constant 0 : index
    %c0_46 = arith.constant 0 : index
    %122 = vector.load %arg3[%c11, %c0_44, %c0_45, %c0_46] : memref<36x4x14x14xf32, #tpu.memory_space<vmem>>, vector<1x4x14x14xf32>
    %123 = vector.shape_cast %122 : vector<1x4x14x14xf32> to vector<4x14x14xf32>
    %124 = vector.extract_strided_slice %91 {offsets = [0, 3, 0, 0], sizes = [2, 1, 14, 14], strides = [1, 1, 1, 1]} : vector<2x4x14x14xf32> to vector<2x1x14x14xf32>
    %125 = vector.shape_cast %124 : vector<2x1x14x14xf32> to vector<2x14x14xf32>
    %126 = vector.shape_cast %125 : vector<2x14x14xf32> to vector<2x1x14x14xf32>
    %127 = vector.shape_cast %123 : vector<4x14x14xf32> to vector<1x4x14x14xf32>
    %128 = vector.broadcast %126 : vector<2x1x14x14xf32> to vector<2x4x14x14xf32>
    %129 = vector.broadcast %127 : vector<1x4x14x14xf32> to vector<2x4x14x14xf32>
    %130 = arith.mulf %128, %129 : vector<2x4x14x14xf32>
    %131 = arith.addf %121, %130 : vector<2x4x14x14xf32>
    %c1_i32 = arith.constant 1 : i32
    %132 = arith.addi %1, %c1_i32 : i32
    %c0_47 = arith.constant 0 : index
    %c0_48 = arith.constant 0 : index
    %133 = arith.index_cast %132 : i32 to index
    %c0_49 = arith.constant 0 : index
    %134 = vector.load %arg2[%c0_47, %c0_48, %133, %c0_49] : memref<2x4x16x16xf32, #tpu.memory_space<vmem>>, vector<2x4x14x14xf32>
    %c12 = arith.constant 12 : index
    %c0_50 = arith.constant 0 : index
    %c0_51 = arith.constant 0 : index
    %c0_52 = arith.constant 0 : index
    %135 = vector.load %arg3[%c12, %c0_50, %c0_51, %c0_52] : memref<36x4x14x14xf32, #tpu.memory_space<vmem>>, vector<1x4x14x14xf32>
    %136 = vector.shape_cast %135 : vector<1x4x14x14xf32> to vector<4x14x14xf32>
    %137 = vector.extract_strided_slice %134 {offsets = [0, 0, 0, 0], sizes = [2, 1, 14, 14], strides = [1, 1, 1, 1]} : vector<2x4x14x14xf32> to vector<2x1x14x14xf32>
    %138 = vector.shape_cast %137 : vector<2x1x14x14xf32> to vector<2x14x14xf32>
    %139 = vector.shape_cast %138 : vector<2x14x14xf32> to vector<2x1x14x14xf32>
    %140 = vector.shape_cast %136 : vector<4x14x14xf32> to vector<1x4x14x14xf32>
    %141 = vector.broadcast %139 : vector<2x1x14x14xf32> to vector<2x4x14x14xf32>
    %142 = vector.broadcast %140 : vector<1x4x14x14xf32> to vector<2x4x14x14xf32>
    %143 = arith.mulf %141, %142 : vector<2x4x14x14xf32>
    %144 = arith.addf %131, %143 : vector<2x4x14x14xf32>
    %c13 = arith.constant 13 : index
    %c0_53 = arith.constant 0 : index
    %c0_54 = arith.constant 0 : index
    %c0_55 = arith.constant 0 : index
    %145 = vector.load %arg3[%c13, %c0_53, %c0_54, %c0_55] : memref<36x4x14x14xf32, #tpu.memory_space<vmem>>, vector<1x4x14x14xf32>
    %146 = vector.shape_cast %145 : vector<1x4x14x14xf32> to vector<4x14x14xf32>
    %147 = vector.extract_strided_slice %134 {offsets = [0, 1, 0, 0], sizes = [2, 1, 14, 14], strides = [1, 1, 1, 1]} : vector<2x4x14x14xf32> to vector<2x1x14x14xf32>
    %148 = vector.shape_cast %147 : vector<2x1x14x14xf32> to vector<2x14x14xf32>
    %149 = vector.shape_cast %148 : vector<2x14x14xf32> to vector<2x1x14x14xf32>
    %150 = vector.shape_cast %146 : vector<4x14x14xf32> to vector<1x4x14x14xf32>
    %151 = vector.broadcast %149 : vector<2x1x14x14xf32> to vector<2x4x14x14xf32>
    %152 = vector.broadcast %150 : vector<1x4x14x14xf32> to vector<2x4x14x14xf32>
    %153 = arith.mulf %151, %152 : vector<2x4x14x14xf32>
    %154 = arith.addf %144, %153 : vector<2x4x14x14xf32>
    %c14 = arith.constant 14 : index
    %c0_56 = arith.constant 0 : index
    %c0_57 = arith.constant 0 : index
    %c0_58 = arith.constant 0 : index
    %155 = vector.load %arg3[%c14, %c0_56, %c0_57, %c0_58] : memref<36x4x14x14xf32, #tpu.memory_space<vmem>>, vector<1x4x14x14xf32>
    %156 = vector.shape_cast %155 : vector<1x4x14x14xf32> to vector<4x14x14xf32>
    %157 = vector.extract_strided_slice %134 {offsets = [0, 2, 0, 0], sizes = [2, 1, 14, 14], strides = [1, 1, 1, 1]} : vector<2x4x14x14xf32> to vector<2x1x14x14xf32>
    %158 = vector.shape_cast %157 : vector<2x1x14x14xf32> to vector<2x14x14xf32>
    %159 = vector.shape_cast %158 : vector<2x14x14xf32> to vector<2x1x14x14xf32>
    %160 = vector.shape_cast %156 : vector<4x14x14xf32> to vector<1x4x14x14xf32>
    %161 = vector.broadcast %159 : vector<2x1x14x14xf32> to vector<2x4x14x14xf32>
    %162 = vector.broadcast %160 : vector<1x4x14x14xf32> to vector<2x4x14x14xf32>
    %163 = arith.mulf %161, %162 : vector<2x4x14x14xf32>
    %164 = arith.addf %154, %163 : vector<2x4x14x14xf32>
    %c15 = arith.constant 15 : index
    %c0_59 = arith.constant 0 : index
    %c0_60 = arith.constant 0 : index
    %c0_61 = arith.constant 0 : index
    %165 = vector.load %arg3[%c15, %c0_59, %c0_60, %c0_61] : memref<36x4x14x14xf32, #tpu.memory_space<vmem>>, vector<1x4x14x14xf32>
    %166 = vector.shape_cast %165 : vector<1x4x14x14xf32> to vector<4x14x14xf32>
    %167 = vector.extract_strided_slice %134 {offsets = [0, 3, 0, 0], sizes = [2, 1, 14, 14], strides = [1, 1, 1, 1]} : vector<2x4x14x14xf32> to vector<2x1x14x14xf32>
    %168 = vector.shape_cast %167 : vector<2x1x14x14xf32> to vector<2x14x14xf32>
    %169 = vector.shape_cast %168 : vector<2x14x14xf32> to vector<2x1x14x14xf32>
    %170 = vector.shape_cast %166 : vector<4x14x14xf32> to vector<1x4x14x14xf32>
    %171 = vector.broadcast %169 : vector<2x1x14x14xf32> to vector<2x4x14x14xf32>
    %172 = vector.broadcast %170 : vector<1x4x14x14xf32> to vector<2x4x14x14xf32>
    %173 = arith.mulf %171, %172 : vector<2x4x14x14xf32>
    %174 = arith.addf %164, %173 : vector<2x4x14x14xf32>
    %c1_i32_62 = arith.constant 1 : i32
    %175 = arith.addi %1, %c1_i32_62 : i32
    %c0_63 = arith.constant 0 : index
    %c0_64 = arith.constant 0 : index
    %176 = arith.index_cast %175 : i32 to index
    %c1_65 = arith.constant 1 : index
    %177 = vector.load %arg2[%c0_63, %c0_64, %176, %c1_65] : memref<2x4x16x16xf32, #tpu.memory_space<vmem>>, vector<2x4x14x14xf32>
    %c16 = arith.constant 16 : index
    %c0_66 = arith.constant 0 : index
    %c0_67 = arith.constant 0 : index
    %c0_68 = arith.constant 0 : index
    %178 = vector.load %arg3[%c16, %c0_66, %c0_67, %c0_68] : memref<36x4x14x14xf32, #tpu.memory_space<vmem>>, vector<1x4x14x14xf32>
    %179 = vector.shape_cast %178 : vector<1x4x14x14xf32> to vector<4x14x14xf32>
    %180 = vector.extract_strided_slice %177 {offsets = [0, 0, 0, 0], sizes = [2, 1, 14, 14], strides = [1, 1, 1, 1]} : vector<2x4x14x14xf32> to vector<2x1x14x14xf32>
    %181 = vector.shape_cast %180 : vector<2x1x14x14xf32> to vector<2x14x14xf32>
    %182 = vector.shape_cast %181 : vector<2x14x14xf32> to vector<2x1x14x14xf32>
    %183 = vector.shape_cast %179 : vector<4x14x14xf32> to vector<1x4x14x14xf32>
    %184 = vector.broadcast %182 : vector<2x1x14x14xf32> to vector<2x4x14x14xf32>
    %185 = vector.broadcast %183 : vector<1x4x14x14xf32> to vector<2x4x14x14xf32>
    %186 = arith.mulf %184, %185 : vector<2x4x14x14xf32>
    %187 = arith.addf %174, %186 : vector<2x4x14x14xf32>
    %c17 = arith.constant 17 : index
    %c0_69 = arith.constant 0 : index
    %c0_70 = arith.constant 0 : index
    %c0_71 = arith.constant 0 : index
    %188 = vector.load %arg3[%c17, %c0_69, %c0_70, %c0_71] : memref<36x4x14x14xf32, #tpu.memory_space<vmem>>, vector<1x4x14x14xf32>
    %189 = vector.shape_cast %188 : vector<1x4x14x14xf32> to vector<4x14x14xf32>
    %190 = vector.extract_strided_slice %177 {offsets = [0, 1, 0, 0], sizes = [2, 1, 14, 14], strides = [1, 1, 1, 1]} : vector<2x4x14x14xf32> to vector<2x1x14x14xf32>
    %191 = vector.shape_cast %190 : vector<2x1x14x14xf32> to vector<2x14x14xf32>
    %192 = vector.shape_cast %191 : vector<2x14x14xf32> to vector<2x1x14x14xf32>
    %193 = vector.shape_cast %189 : vector<4x14x14xf32> to vector<1x4x14x14xf32>
    %194 = vector.broadcast %192 : vector<2x1x14x14xf32> to vector<2x4x14x14xf32>
    %195 = vector.broadcast %193 : vector<1x4x14x14xf32> to vector<2x4x14x14xf32>
    %196 = arith.mulf %194, %195 : vector<2x4x14x14xf32>
    %197 = arith.addf %187, %196 : vector<2x4x14x14xf32>
    %c18 = arith.constant 18 : index
    %c0_72 = arith.constant 0 : index
    %c0_73 = arith.constant 0 : index
    %c0_74 = arith.constant 0 : index
    %198 = vector.load %arg3[%c18, %c0_72, %c0_73, %c0_74] : memref<36x4x14x14xf32, #tpu.memory_space<vmem>>, vector<1x4x14x14xf32>
    %199 = vector.shape_cast %198 : vector<1x4x14x14xf32> to vector<4x14x14xf32>
    %200 = vector.extract_strided_slice %177 {offsets = [0, 2, 0, 0], sizes = [2, 1, 14, 14], strides = [1, 1, 1, 1]} : vector<2x4x14x14xf32> to vector<2x1x14x14xf32>
    %201 = vector.shape_cast %200 : vector<2x1x14x14xf32> to vector<2x14x14xf32>
    %202 = vector.shape_cast %201 : vector<2x14x14xf32> to vector<2x1x14x14xf32>
    %203 = vector.shape_cast %199 : vector<4x14x14xf32> to vector<1x4x14x14xf32>
    %204 = vector.broadcast %202 : vector<2x1x14x14xf32> to vector<2x4x14x14xf32>
    %205 = vector.broadcast %203 : vector<1x4x14x14xf32> to vector<2x4x14x14xf32>
    %206 = arith.mulf %204, %205 : vector<2x4x14x14xf32>
    %207 = arith.addf %197, %206 : vector<2x4x14x14xf32>
    %c19 = arith.constant 19 : index
    %c0_75 = arith.constant 0 : index
    %c0_76 = arith.constant 0 : index
    %c0_77 = arith.constant 0 : index
    %208 = vector.load %arg3[%c19, %c0_75, %c0_76, %c0_77] : memref<36x4x14x14xf32, #tpu.memory_space<vmem>>, vector<1x4x14x14xf32>
    %209 = vector.shape_cast %208 : vector<1x4x14x14xf32> to vector<4x14x14xf32>
    %210 = vector.extract_strided_slice %177 {offsets = [0, 3, 0, 0], sizes = [2, 1, 14, 14], strides = [1, 1, 1, 1]} : vector<2x4x14x14xf32> to vector<2x1x14x14xf32>
    %211 = vector.shape_cast %210 : vector<2x1x14x14xf32> to vector<2x14x14xf32>
    %212 = vector.shape_cast %211 : vector<2x14x14xf32> to vector<2x1x14x14xf32>
    %213 = vector.shape_cast %209 : vector<4x14x14xf32> to vector<1x4x14x14xf32>
    %214 = vector.broadcast %212 : vector<2x1x14x14xf32> to vector<2x4x14x14xf32>
    %215 = vector.broadcast %213 : vector<1x4x14x14xf32> to vector<2x4x14x14xf32>
    %216 = arith.mulf %214, %215 : vector<2x4x14x14xf32>
    %217 = arith.addf %207, %216 : vector<2x4x14x14xf32>
    %c1_i32_78 = arith.constant 1 : i32
    %218 = arith.addi %1, %c1_i32_78 : i32
    %c0_79 = arith.constant 0 : index
    %c0_80 = arith.constant 0 : index
    %219 = arith.index_cast %218 : i32 to index
    %c2_81 = arith.constant 2 : index
    %220 = vector.load %arg2[%c0_79, %c0_80, %219, %c2_81] : memref<2x4x16x16xf32, #tpu.memory_space<vmem>>, vector<2x4x14x14xf32>
    %c20 = arith.constant 20 : index
    %c0_82 = arith.constant 0 : index
    %c0_83 = arith.constant 0 : index
    %c0_84 = arith.constant 0 : index
    %221 = vector.load %arg3[%c20, %c0_82, %c0_83, %c0_84] : memref<36x4x14x14xf32, #tpu.memory_space<vmem>>, vector<1x4x14x14xf32>
    %222 = vector.shape_cast %221 : vector<1x4x14x14xf32> to vector<4x14x14xf32>
    %223 = vector.extract_strided_slice %220 {offsets = [0, 0, 0, 0], sizes = [2, 1, 14, 14], strides = [1, 1, 1, 1]} : vector<2x4x14x14xf32> to vector<2x1x14x14xf32>
    %224 = vector.shape_cast %223 : vector<2x1x14x14xf32> to vector<2x14x14xf32>
    %225 = vector.shape_cast %224 : vector<2x14x14xf32> to vector<2x1x14x14xf32>
    %226 = vector.shape_cast %222 : vector<4x14x14xf32> to vector<1x4x14x14xf32>
    %227 = vector.broadcast %225 : vector<2x1x14x14xf32> to vector<2x4x14x14xf32>
    %228 = vector.broadcast %226 : vector<1x4x14x14xf32> to vector<2x4x14x14xf32>
    %229 = arith.mulf %227, %228 : vector<2x4x14x14xf32>
    %230 = arith.addf %217, %229 : vector<2x4x14x14xf32>
    %c21 = arith.constant 21 : index
    %c0_85 = arith.constant 0 : index
    %c0_86 = arith.constant 0 : index
    %c0_87 = arith.constant 0 : index
    %231 = vector.load %arg3[%c21, %c0_85, %c0_86, %c0_87] : memref<36x4x14x14xf32, #tpu.memory_space<vmem>>, vector<1x4x14x14xf32>
    %232 = vector.shape_cast %231 : vector<1x4x14x14xf32> to vector<4x14x14xf32>
    %233 = vector.extract_strided_slice %220 {offsets = [0, 1, 0, 0], sizes = [2, 1, 14, 14], strides = [1, 1, 1, 1]} : vector<2x4x14x14xf32> to vector<2x1x14x14xf32>
    %234 = vector.shape_cast %233 : vector<2x1x14x14xf32> to vector<2x14x14xf32>
    %235 = vector.shape_cast %234 : vector<2x14x14xf32> to vector<2x1x14x14xf32>
    %236 = vector.shape_cast %232 : vector<4x14x14xf32> to vector<1x4x14x14xf32>
    %237 = vector.broadcast %235 : vector<2x1x14x14xf32> to vector<2x4x14x14xf32>
    %238 = vector.broadcast %236 : vector<1x4x14x14xf32> to vector<2x4x14x14xf32>
    %239 = arith.mulf %237, %238 : vector<2x4x14x14xf32>
    %240 = arith.addf %230, %239 : vector<2x4x14x14xf32>
    %c22 = arith.constant 22 : index
    %c0_88 = arith.constant 0 : index
    %c0_89 = arith.constant 0 : index
    %c0_90 = arith.constant 0 : index
    %241 = vector.load %arg3[%c22, %c0_88, %c0_89, %c0_90] : memref<36x4x14x14xf32, #tpu.memory_space<vmem>>, vector<1x4x14x14xf32>
    %242 = vector.shape_cast %241 : vector<1x4x14x14xf32> to vector<4x14x14xf32>
    %243 = vector.extract_strided_slice %220 {offsets = [0, 2, 0, 0], sizes = [2, 1, 14, 14], strides = [1, 1, 1, 1]} : vector<2x4x14x14xf32> to vector<2x1x14x14xf32>
    %244 = vector.shape_cast %243 : vector<2x1x14x14xf32> to vector<2x14x14xf32>
    %245 = vector.shape_cast %244 : vector<2x14x14xf32> to vector<2x1x14x14xf32>
    %246 = vector.shape_cast %242 : vector<4x14x14xf32> to vector<1x4x14x14xf32>
    %247 = vector.broadcast %245 : vector<2x1x14x14xf32> to vector<2x4x14x14xf32>
    %248 = vector.broadcast %246 : vector<1x4x14x14xf32> to vector<2x4x14x14xf32>
    %249 = arith.mulf %247, %248 : vector<2x4x14x14xf32>
    %250 = arith.addf %240, %249 : vector<2x4x14x14xf32>
    %c23 = arith.constant 23 : index
    %c0_91 = arith.constant 0 : index
    %c0_92 = arith.constant 0 : index
    %c0_93 = arith.constant 0 : index
    %251 = vector.load %arg3[%c23, %c0_91, %c0_92, %c0_93] : memref<36x4x14x14xf32, #tpu.memory_space<vmem>>, vector<1x4x14x14xf32>
    %252 = vector.shape_cast %251 : vector<1x4x14x14xf32> to vector<4x14x14xf32>
    %253 = vector.extract_strided_slice %220 {offsets = [0, 3, 0, 0], sizes = [2, 1, 14, 14], strides = [1, 1, 1, 1]} : vector<2x4x14x14xf32> to vector<2x1x14x14xf32>
    %254 = vector.shape_cast %253 : vector<2x1x14x14xf32> to vector<2x14x14xf32>
    %255 = vector.shape_cast %254 : vector<2x14x14xf32> to vector<2x1x14x14xf32>
    %256 = vector.shape_cast %252 : vector<4x14x14xf32> to vector<1x4x14x14xf32>
    %257 = vector.broadcast %255 : vector<2x1x14x14xf32> to vector<2x4x14x14xf32>
    %258 = vector.broadcast %256 : vector<1x4x14x14xf32> to vector<2x4x14x14xf32>
    %259 = arith.mulf %257, %258 : vector<2x4x14x14xf32>
    %260 = arith.addf %250, %259 : vector<2x4x14x14xf32>
    %c2_i32 = arith.constant 2 : i32
    %261 = arith.addi %1, %c2_i32 : i32
    %c0_94 = arith.constant 0 : index
    %c0_95 = arith.constant 0 : index
    %262 = arith.index_cast %261 : i32 to index
    %c0_96 = arith.constant 0 : index
    %263 = vector.load %arg2[%c0_94, %c0_95, %262, %c0_96] : memref<2x4x16x16xf32, #tpu.memory_space<vmem>>, vector<2x4x14x14xf32>
    %c24 = arith.constant 24 : index
    %c0_97 = arith.constant 0 : index
    %c0_98 = arith.constant 0 : index
    %c0_99 = arith.constant 0 : index
    %264 = vector.load %arg3[%c24, %c0_97, %c0_98, %c0_99] : memref<36x4x14x14xf32, #tpu.memory_space<vmem>>, vector<1x4x14x14xf32>
    %265 = vector.shape_cast %264 : vector<1x4x14x14xf32> to vector<4x14x14xf32>
    %266 = vector.extract_strided_slice %263 {offsets = [0, 0, 0, 0], sizes = [2, 1, 14, 14], strides = [1, 1, 1, 1]} : vector<2x4x14x14xf32> to vector<2x1x14x14xf32>
    %267 = vector.shape_cast %266 : vector<2x1x14x14xf32> to vector<2x14x14xf32>
    %268 = vector.shape_cast %267 : vector<2x14x14xf32> to vector<2x1x14x14xf32>
    %269 = vector.shape_cast %265 : vector<4x14x14xf32> to vector<1x4x14x14xf32>
    %270 = vector.broadcast %268 : vector<2x1x14x14xf32> to vector<2x4x14x14xf32>
    %271 = vector.broadcast %269 : vector<1x4x14x14xf32> to vector<2x4x14x14xf32>
    %272 = arith.mulf %270, %271 : vector<2x4x14x14xf32>
    %273 = arith.addf %260, %272 : vector<2x4x14x14xf32>
    %c25 = arith.constant 25 : index
    %c0_100 = arith.constant 0 : index
    %c0_101 = arith.constant 0 : index
    %c0_102 = arith.constant 0 : index
    %274 = vector.load %arg3[%c25, %c0_100, %c0_101, %c0_102] : memref<36x4x14x14xf32, #tpu.memory_space<vmem>>, vector<1x4x14x14xf32>
    %275 = vector.shape_cast %274 : vector<1x4x14x14xf32> to vector<4x14x14xf32>
    %276 = vector.extract_strided_slice %263 {offsets = [0, 1, 0, 0], sizes = [2, 1, 14, 14], strides = [1, 1, 1, 1]} : vector<2x4x14x14xf32> to vector<2x1x14x14xf32>
    %277 = vector.shape_cast %276 : vector<2x1x14x14xf32> to vector<2x14x14xf32>
    %278 = vector.shape_cast %277 : vector<2x14x14xf32> to vector<2x1x14x14xf32>
    %279 = vector.shape_cast %275 : vector<4x14x14xf32> to vector<1x4x14x14xf32>
    %280 = vector.broadcast %278 : vector<2x1x14x14xf32> to vector<2x4x14x14xf32>
    %281 = vector.broadcast %279 : vector<1x4x14x14xf32> to vector<2x4x14x14xf32>
    %282 = arith.mulf %280, %281 : vector<2x4x14x14xf32>
    %283 = arith.addf %273, %282 : vector<2x4x14x14xf32>
    %c26 = arith.constant 26 : index
    %c0_103 = arith.constant 0 : index
    %c0_104 = arith.constant 0 : index
    %c0_105 = arith.constant 0 : index
    %284 = vector.load %arg3[%c26, %c0_103, %c0_104, %c0_105] : memref<36x4x14x14xf32, #tpu.memory_space<vmem>>, vector<1x4x14x14xf32>
    %285 = vector.shape_cast %284 : vector<1x4x14x14xf32> to vector<4x14x14xf32>
    %286 = vector.extract_strided_slice %263 {offsets = [0, 2, 0, 0], sizes = [2, 1, 14, 14], strides = [1, 1, 1, 1]} : vector<2x4x14x14xf32> to vector<2x1x14x14xf32>
    %287 = vector.shape_cast %286 : vector<2x1x14x14xf32> to vector<2x14x14xf32>
    %288 = vector.shape_cast %287 : vector<2x14x14xf32> to vector<2x1x14x14xf32>
    %289 = vector.shape_cast %285 : vector<4x14x14xf32> to vector<1x4x14x14xf32>
    %290 = vector.broadcast %288 : vector<2x1x14x14xf32> to vector<2x4x14x14xf32>
    %291 = vector.broadcast %289 : vector<1x4x14x14xf32> to vector<2x4x14x14xf32>
    %292 = arith.mulf %290, %291 : vector<2x4x14x14xf32>
    %293 = arith.addf %283, %292 : vector<2x4x14x14xf32>
    %c27 = arith.constant 27 : index
    %c0_106 = arith.constant 0 : index
    %c0_107 = arith.constant 0 : index
    %c0_108 = arith.constant 0 : index
    %294 = vector.load %arg3[%c27, %c0_106, %c0_107, %c0_108] : memref<36x4x14x14xf32, #tpu.memory_space<vmem>>, vector<1x4x14x14xf32>
    %295 = vector.shape_cast %294 : vector<1x4x14x14xf32> to vector<4x14x14xf32>
    %296 = vector.extract_strided_slice %263 {offsets = [0, 3, 0, 0], sizes = [2, 1, 14, 14], strides = [1, 1, 1, 1]} : vector<2x4x14x14xf32> to vector<2x1x14x14xf32>
    %297 = vector.shape_cast %296 : vector<2x1x14x14xf32> to vector<2x14x14xf32>
    %298 = vector.shape_cast %297 : vector<2x14x14xf32> to vector<2x1x14x14xf32>
    %299 = vector.shape_cast %295 : vector<4x14x14xf32> to vector<1x4x14x14xf32>
    %300 = vector.broadcast %298 : vector<2x1x14x14xf32> to vector<2x4x14x14xf32>
    %301 = vector.broadcast %299 : vector<1x4x14x14xf32> to vector<2x4x14x14xf32>
    %302 = arith.mulf %300, %301 : vector<2x4x14x14xf32>
    %303 = arith.addf %293, %302 : vector<2x4x14x14xf32>
    %c2_i32_109 = arith.constant 2 : i32
    %304 = arith.addi %1, %c2_i32_109 : i32
    %c0_110 = arith.constant 0 : index
    %c0_111 = arith.constant 0 : index
    %305 = arith.index_cast %304 : i32 to index
    %c1_112 = arith.constant 1 : index
    %306 = vector.load %arg2[%c0_110, %c0_111, %305, %c1_112] : memref<2x4x16x16xf32, #tpu.memory_space<vmem>>, vector<2x4x14x14xf32>
    %c28 = arith.constant 28 : index
    %c0_113 = arith.constant 0 : index
    %c0_114 = arith.constant 0 : index
    %c0_115 = arith.constant 0 : index
    %307 = vector.load %arg3[%c28, %c0_113, %c0_114, %c0_115] : memref<36x4x14x14xf32, #tpu.memory_space<vmem>>, vector<1x4x14x14xf32>
    %308 = vector.shape_cast %307 : vector<1x4x14x14xf32> to vector<4x14x14xf32>
    %309 = vector.extract_strided_slice %306 {offsets = [0, 0, 0, 0], sizes = [2, 1, 14, 14], strides = [1, 1, 1, 1]} : vector<2x4x14x14xf32> to vector<2x1x14x14xf32>
    %310 = vector.shape_cast %309 : vector<2x1x14x14xf32> to vector<2x14x14xf32>
    %311 = vector.shape_cast %310 : vector<2x14x14xf32> to vector<2x1x14x14xf32>
    %312 = vector.shape_cast %308 : vector<4x14x14xf32> to vector<1x4x14x14xf32>
    %313 = vector.broadcast %311 : vector<2x1x14x14xf32> to vector<2x4x14x14xf32>
    %314 = vector.broadcast %312 : vector<1x4x14x14xf32> to vector<2x4x14x14xf32>
    %315 = arith.mulf %313, %314 : vector<2x4x14x14xf32>
    %316 = arith.addf %303, %315 : vector<2x4x14x14xf32>
    %c29 = arith.constant 29 : index
    %c0_116 = arith.constant 0 : index
    %c0_117 = arith.constant 0 : index
    %c0_118 = arith.constant 0 : index
    %317 = vector.load %arg3[%c29, %c0_116, %c0_117, %c0_118] : memref<36x4x14x14xf32, #tpu.memory_space<vmem>>, vector<1x4x14x14xf32>
    %318 = vector.shape_cast %317 : vector<1x4x14x14xf32> to vector<4x14x14xf32>
    %319 = vector.extract_strided_slice %306 {offsets = [0, 1, 0, 0], sizes = [2, 1, 14, 14], strides = [1, 1, 1, 1]} : vector<2x4x14x14xf32> to vector<2x1x14x14xf32>
    %320 = vector.shape_cast %319 : vector<2x1x14x14xf32> to vector<2x14x14xf32>
    %321 = vector.shape_cast %320 : vector<2x14x14xf32> to vector<2x1x14x14xf32>
    %322 = vector.shape_cast %318 : vector<4x14x14xf32> to vector<1x4x14x14xf32>
    %323 = vector.broadcast %321 : vector<2x1x14x14xf32> to vector<2x4x14x14xf32>
    %324 = vector.broadcast %322 : vector<1x4x14x14xf32> to vector<2x4x14x14xf32>
    %325 = arith.mulf %323, %324 : vector<2x4x14x14xf32>
    %326 = arith.addf %316, %325 : vector<2x4x14x14xf32>
    %c30 = arith.constant 30 : index
    %c0_119 = arith.constant 0 : index
    %c0_120 = arith.constant 0 : index
    %c0_121 = arith.constant 0 : index
    %327 = vector.load %arg3[%c30, %c0_119, %c0_120, %c0_121] : memref<36x4x14x14xf32, #tpu.memory_space<vmem>>, vector<1x4x14x14xf32>
    %328 = vector.shape_cast %327 : vector<1x4x14x14xf32> to vector<4x14x14xf32>
    %329 = vector.extract_strided_slice %306 {offsets = [0, 2, 0, 0], sizes = [2, 1, 14, 14], strides = [1, 1, 1, 1]} : vector<2x4x14x14xf32> to vector<2x1x14x14xf32>
    %330 = vector.shape_cast %329 : vector<2x1x14x14xf32> to vector<2x14x14xf32>
    %331 = vector.shape_cast %330 : vector<2x14x14xf32> to vector<2x1x14x14xf32>
    %332 = vector.shape_cast %328 : vector<4x14x14xf32> to vector<1x4x14x14xf32>
    %333 = vector.broadcast %331 : vector<2x1x14x14xf32> to vector<2x4x14x14xf32>
    %334 = vector.broadcast %332 : vector<1x4x14x14xf32> to vector<2x4x14x14xf32>
    %335 = arith.mulf %333, %334 : vector<2x4x14x14xf32>
    %336 = arith.addf %326, %335 : vector<2x4x14x14xf32>
    %c31 = arith.constant 31 : index
    %c0_122 = arith.constant 0 : index
    %c0_123 = arith.constant 0 : index
    %c0_124 = arith.constant 0 : index
    %337 = vector.load %arg3[%c31, %c0_122, %c0_123, %c0_124] : memref<36x4x14x14xf32, #tpu.memory_space<vmem>>, vector<1x4x14x14xf32>
    %338 = vector.shape_cast %337 : vector<1x4x14x14xf32> to vector<4x14x14xf32>
    %339 = vector.extract_strided_slice %306 {offsets = [0, 3, 0, 0], sizes = [2, 1, 14, 14], strides = [1, 1, 1, 1]} : vector<2x4x14x14xf32> to vector<2x1x14x14xf32>
    %340 = vector.shape_cast %339 : vector<2x1x14x14xf32> to vector<2x14x14xf32>
    %341 = vector.shape_cast %340 : vector<2x14x14xf32> to vector<2x1x14x14xf32>
    %342 = vector.shape_cast %338 : vector<4x14x14xf32> to vector<1x4x14x14xf32>
    %343 = vector.broadcast %341 : vector<2x1x14x14xf32> to vector<2x4x14x14xf32>
    %344 = vector.broadcast %342 : vector<1x4x14x14xf32> to vector<2x4x14x14xf32>
    %345 = arith.mulf %343, %344 : vector<2x4x14x14xf32>
    %346 = arith.addf %336, %345 : vector<2x4x14x14xf32>
    %c2_i32_125 = arith.constant 2 : i32
    %347 = arith.addi %1, %c2_i32_125 : i32
    %c0_126 = arith.constant 0 : index
    %c0_127 = arith.constant 0 : index
    %348 = arith.index_cast %347 : i32 to index
    %c2_128 = arith.constant 2 : index
    %349 = vector.load %arg2[%c0_126, %c0_127, %348, %c2_128] : memref<2x4x16x16xf32, #tpu.memory_space<vmem>>, vector<2x4x14x14xf32>
    %c32 = arith.constant 32 : index
    %c0_129 = arith.constant 0 : index
    %c0_130 = arith.constant 0 : index
    %c0_131 = arith.constant 0 : index
    %350 = vector.load %arg3[%c32, %c0_129, %c0_130, %c0_131] : memref<36x4x14x14xf32, #tpu.memory_space<vmem>>, vector<1x4x14x14xf32>
    %351 = vector.shape_cast %350 : vector<1x4x14x14xf32> to vector<4x14x14xf32>
    %352 = vector.extract_strided_slice %349 {offsets = [0, 0, 0, 0], sizes = [2, 1, 14, 14], strides = [1, 1, 1, 1]} : vector<2x4x14x14xf32> to vector<2x1x14x14xf32>
    %353 = vector.shape_cast %352 : vector<2x1x14x14xf32> to vector<2x14x14xf32>
    %354 = vector.shape_cast %353 : vector<2x14x14xf32> to vector<2x1x14x14xf32>
    %355 = vector.shape_cast %351 : vector<4x14x14xf32> to vector<1x4x14x14xf32>
    %356 = vector.broadcast %354 : vector<2x1x14x14xf32> to vector<2x4x14x14xf32>
    %357 = vector.broadcast %355 : vector<1x4x14x14xf32> to vector<2x4x14x14xf32>
    %358 = arith.mulf %356, %357 : vector<2x4x14x14xf32>
    %359 = arith.addf %346, %358 : vector<2x4x14x14xf32>
    %c33 = arith.constant 33 : index
    %c0_132 = arith.constant 0 : index
    %c0_133 = arith.constant 0 : index
    %c0_134 = arith.constant 0 : index
    %360 = vector.load %arg3[%c33, %c0_132, %c0_133, %c0_134] : memref<36x4x14x14xf32, #tpu.memory_space<vmem>>, vector<1x4x14x14xf32>
    %361 = vector.shape_cast %360 : vector<1x4x14x14xf32> to vector<4x14x14xf32>
    %362 = vector.extract_strided_slice %349 {offsets = [0, 1, 0, 0], sizes = [2, 1, 14, 14], strides = [1, 1, 1, 1]} : vector<2x4x14x14xf32> to vector<2x1x14x14xf32>
    %363 = vector.shape_cast %362 : vector<2x1x14x14xf32> to vector<2x14x14xf32>
    %364 = vector.shape_cast %363 : vector<2x14x14xf32> to vector<2x1x14x14xf32>
    %365 = vector.shape_cast %361 : vector<4x14x14xf32> to vector<1x4x14x14xf32>
    %366 = vector.broadcast %364 : vector<2x1x14x14xf32> to vector<2x4x14x14xf32>
    %367 = vector.broadcast %365 : vector<1x4x14x14xf32> to vector<2x4x14x14xf32>
    %368 = arith.mulf %366, %367 : vector<2x4x14x14xf32>
    %369 = arith.addf %359, %368 : vector<2x4x14x14xf32>
    %c34 = arith.constant 34 : index
    %c0_135 = arith.constant 0 : index
    %c0_136 = arith.constant 0 : index
    %c0_137 = arith.constant 0 : index
    %370 = vector.load %arg3[%c34, %c0_135, %c0_136, %c0_137] : memref<36x4x14x14xf32, #tpu.memory_space<vmem>>, vector<1x4x14x14xf32>
    %371 = vector.shape_cast %370 : vector<1x4x14x14xf32> to vector<4x14x14xf32>
    %372 = vector.extract_strided_slice %349 {offsets = [0, 2, 0, 0], sizes = [2, 1, 14, 14], strides = [1, 1, 1, 1]} : vector<2x4x14x14xf32> to vector<2x1x14x14xf32>
    %373 = vector.shape_cast %372 : vector<2x1x14x14xf32> to vector<2x14x14xf32>
    %374 = vector.shape_cast %373 : vector<2x14x14xf32> to vector<2x1x14x14xf32>
    %375 = vector.shape_cast %371 : vector<4x14x14xf32> to vector<1x4x14x14xf32>
    %376 = vector.broadcast %374 : vector<2x1x14x14xf32> to vector<2x4x14x14xf32>
    %377 = vector.broadcast %375 : vector<1x4x14x14xf32> to vector<2x4x14x14xf32>
    %378 = arith.mulf %376, %377 : vector<2x4x14x14xf32>
    %379 = arith.addf %369, %378 : vector<2x4x14x14xf32>
    %c35 = arith.constant 35 : index
    %c0_138 = arith.constant 0 : index
    %c0_139 = arith.constant 0 : index
    %c0_140 = arith.constant 0 : index
    %380 = vector.load %arg3[%c35, %c0_138, %c0_139, %c0_140] : memref<36x4x14x14xf32, #tpu.memory_space<vmem>>, vector<1x4x14x14xf32>
    %381 = vector.shape_cast %380 : vector<1x4x14x14xf32> to vector<4x14x14xf32>
    %382 = vector.extract_strided_slice %349 {offsets = [0, 3, 0, 0], sizes = [2, 1, 14, 14], strides = [1, 1, 1, 1]} : vector<2x4x14x14xf32> to vector<2x1x14x14xf32>
    %383 = vector.shape_cast %382 : vector<2x1x14x14xf32> to vector<2x14x14xf32>
    %384 = vector.shape_cast %383 : vector<2x14x14xf32> to vector<2x1x14x14xf32>
    %385 = vector.shape_cast %381 : vector<4x14x14xf32> to vector<1x4x14x14xf32>
    %386 = vector.broadcast %384 : vector<2x1x14x14xf32> to vector<2x4x14x14xf32>
    %387 = vector.broadcast %385 : vector<1x4x14x14xf32> to vector<2x4x14x14xf32>
    %388 = arith.mulf %386, %387 : vector<2x4x14x14xf32>
    %389 = arith.addf %379, %388 : vector<2x4x14x14xf32>
    %c0_141 = arith.constant 0 : index
    %c0_142 = arith.constant 0 : index
    %c0_143 = arith.constant 0 : index
    %c0_144 = arith.constant 0 : index
    %390 = vector.load %arg4[%c0_141, %c0_142, %c0_143, %c0_144] : memref<2x4x14x14xf32, #tpu.memory_space<vmem>>, vector<2x4x14x14xf32>
    tpu.vector_store %arg4[%c0_141, %c0_142, %c0_143, %c0_144], %389 {strides = array<i32>} : memref<2x4x14x14xf32, #tpu.memory_space<vmem>>, vector<2x4x14x14xf32>,
    return
  }
  func.func @transform_0(%arg0: i32, %arg1: i32) -> (i32, i32, i32, i32) {
    %c0_i32 = arith.constant 0 : i32
    %c0_i32_0 = arith.constant 0 : i32
    %c0_i32_1 = arith.constant 0 : i32
    %c0_i32_2 = arith.constant 0 : i32
    return %arg0, %c0_i32, %c0_i32_0, %c0_i32_1 : i32, i32, i32, i32
  }
  func.func @transform_1(%arg0: i32, %arg1: i32) -> (i32, i32, i32, i32) {
    %c0_i32 = arith.constant 0 : i32
    %c0_i32_0 = arith.constant 0 : i32
    %c0_i32_1 = arith.constant 0 : i32
    %c0_i32_2 = arith.constant 0 : i32
    return %c0_i32, %c0_i32_0, %arg1, %c0_i32_1 : i32, i32, i32, i32
  }
  func.func @transform_2(%arg0: i32, %arg1: i32) -> (i32, i32, i32, i32) {
    %c0_i32 = arith.constant 0 : i32
    %c0_i32_0 = arith.constant 0 : i32
    %c0_i32_1 = arith.constant 0 : i32
    return %arg0, %c0_i32, %arg1, %c0_i32_0 : i32, i32, i32, i32
  }
}

</mosaic_0001>

<bundles_post_ra>
// kernel: stdp_conv_inhibit_forward.1
= control target key start
LH: loop header
LB: loop body
LE: loop exit
PB: predicated region body
PF: predicated region fallthrough
CT: control target
= control target key end

     0   :  { %s4278_s13 = smov 1   ;;  %s4279_s7 = smov 127   ;;  %vm3846_vm0 = vcmask 111616   ;;  %vm3844_vm1 = vcmask 113664   ;;  %s8463_s1 = inlined_call_operand.vmem [shape: f32[36,4,14,14], index: 1, kind: input, shape index: {}]   ;;  %s8464_s0 = inlined_call_operand.vmem [shape: f32[2,4,16,16], index: 0, kind: input, shape index: {}]   ;;  %s8465_s2 = inlined_call_operand.vmem [shape: f32[2,4,14,14], index: 2, kind: output, shape index: {}]  }
   0x1   :  { %v3892_v0 = vld [vmem:[%s8463_s1 + $0x100] sm:$0xff]  ;;  %v3894_v1 = vld [vmem:[%s8463_s1 + $0x110] sm:$0xff]  ;;  %v3893_v2 = vld [vmem:[%s8463_s1 + $0x108] sm:$0x3f]  ;;  %s4280_s29 = smov 2   ;;  %s4281_s18 = smov 126  }
   0x2   :  { %209 = vrot.lane.b32.xlu0 %v3892_v0, %s4278_s13  ;;  %213 = vrot.lane.b32.xlu1 %v3894_v1, %s4278_s13  ;;  %v3895_v3 = vld [vmem:[%s8463_s1 + $0x118] sm:$0x3f]  ;;  %v3896_v4 = vld [vmem:[%s8463_s1 + $0x120] sm:$0xff] }
   0x3   :  { %v3897_v5 = vld [vmem:[%s8463_s1 + $0x128] sm:$0x3f]  ;;  %v3898_v6 = vld [vmem:[%s8463_s1 + $0x130] sm:$0xff]  ;;  %v3899_v7 = vld [vmem:[%s8463_s1 + $0x138] sm:$0x3f] }
   0x4   :  { %v3900_v8 = vld [vmem:[%s8463_s1 + $0x140] sm:$0xff]  ;;  %v3901_v9 = vld [vmem:[%s8463_s1 + $0x148] sm:$0x3f]  ;;  %v3902_v10 = vld [vmem:[%s8463_s1 + $0x150] sm:$0xff] }
   0x5   :  { %v3903_v11 = vld [vmem:[%s8463_s1 + $0x158] sm:$0x3f]  ;;  %v3904_v12 = vld [vmem:[%s8463_s1 + $0x160] sm:$0xff]  ;;  %v3905_v13 = vld [vmem:[%s8463_s1 + $0x168] sm:$0x3f] }
   0x6   :  { %211 = vrot.lane.b32.xlu0 %v3893_v2, %s4278_s13  ;;  %215 = vrot.lane.b32.xlu1 %v3895_v3, %s4278_s13  ;;  %v3906_v14 = vld [vmem:[%s8463_s1 + $0x170] sm:$0xff]  ;;  %v3907_v15 = vld [vmem:[%s8463_s1 + $0x178] sm:$0x3f] }
   0x7   :  { %v3908_v16 = vld [vmem:[%s8463_s1 + $0x180] sm:$0xff]  ;;  %v3909_v17 = vld [vmem:[%s8463_s1 + $0x188] sm:$0x3f]  ;;  %v3910_v18 = vld [vmem:[%s8463_s1 + $0x190] sm:$0xff] }
   0x8   :  { %v3911_v19 = vld [vmem:[%s8463_s1 + $0x198] sm:$0x3f]  ;;  %v3912_v20 = vld [vmem:[%s8463_s1 + $0x1a0] sm:$0xff]  ;;  %v3913_v21 = vld [vmem:[%s8463_s1 + $0x1a8] sm:$0x3f] }
   0x9   :  { %v3914_v22 = vld [vmem:[%s8463_s1 + $0x1b0] sm:$0xff]  ;;  %v3915_v23 = vld [vmem:[%s8463_s1 + $0x1b8] sm:$0x3f]  ;;  %v4396_v24 = vld [vmem:[%s8464_s0] sm:$0xff] }
   0xa   :  { %217 = vrot.lane.b32.xlu0 %v3896_v4, %s4278_s13  ;;  %219 = vrot.lane.b32.xlu1 %v3897_v5, %s4278_s13  ;;  %v4402_v28 = vld [vmem:[%s8464_s0 + $0x8] sm:$0x3f]  ;;  %v4418_v41 = vld [vmem:[%s8464_s0 + $0x40] sm:$0xff] }
   0xb   :  { %v4427_v44 = vld [vmem:[%s8464_s0 + $0x48] sm:$0x3f]  ;;  %v4442_v51 = vld [vmem:[%s8464_s0 + $0x10] sm:$0xff]  ;;  %v4452_v56 = vld [vmem:[%s8464_s0 + $0x18] sm:$0x3f] }
   0xc   :  { %v4470_v5 = vld [vmem:[%s8464_s0 + $0x50] sm:$0xff] }
   0xe   :  { %221 = vrot.lane.b32.xlu0 %v3898_v6, %s4278_s13  ;;  %223 = vrot.lane.b32.xlu1 %v3899_v7, %s4278_s13 }
  0x12   :  { %346 = vrot.lane.b32.xlu0 %v3900_v8, %s4278_s13  ;;  %348 = vrot.lane.b32.xlu1 %v3901_v9, %s4278_s13  ;;  %v4479_v8 = vld [vmem:[%s8464_s0 + $0x58] sm:$0x3f] }
  0x16   :  { %350 = vrot.lane.b32.xlu0 %v3902_v10, %s4278_s13  ;;  %352 = vrot.lane.b32.xlu1 %v3903_v11, %s4278_s13 }
  0x1a   :  { %354 = vrot.lane.b32.xlu0 %v3904_v12, %s4278_s13  ;;  %356 = vrot.lane.b32.xlu1 %v3905_v13, %s4278_s13 }
  0x1e   :  { %358 = vrot.lane.b32.xlu0 %v3906_v14, %s4278_s13  ;;  %360 = vrot.lane.b32.xlu1 %v3907_v15, %s4278_s13  ;;  %v4494_v15 = vld [vmem:[%s8464_s0 + $0x20] sm:$0xff] }
  0x22   :  { %483 = vrot.lane.b32.xlu0 %v3908_v16, %s4278_s13  ;;  %485 = vrot.lane.b32.xlu1 %v3909_v17, %s4278_s13 }
  0x26   :  { %487 = vrot.lane.b32.xlu0 %v3910_v18, %s4278_s13  ;;  %489 = vrot.lane.b32.xlu1 %v3911_v19, %s4278_s13 }
  0x2a   :  { %491 = vrot.lane.b32.xlu0 %v3912_v20, %s4278_s13  ;;  %493 = vrot.lane.b32.xlu1 %v3913_v21, %s4278_s13  ;;  %v4504_v20 = vld [vmem:[%s8464_s0 + $0x28] sm:$0x3f] }
  0x2e   :  { %495 = vrot.lane.b32.xlu0 %v3914_v22, %s4278_s13  ;;  %497 = vrot.lane.b32.xlu1 %v3915_v23, %s4278_s13 }
  0x74   :  { %v210_v25 = vpop.permute.xlu0 %209  ;;  %v214_v26 = vpop.permute.xlu1 %213 }
  0x75   :  { %v233_v27 = vmul.f32 %v210_v25, %v4396_v24  ;;  %v235_v29 = vmul.f32 %v214_v26, %v4396_v24  ;;  %v241_v43 = vmul.f32 %v210_v25, %v4418_v41  ;;  %v243_v45 = vmul.f32 %v214_v26, %v4418_v41 }
  0x77   :  { %265 = vrot.lane.b32.xlu0 %v233_v27, %s4279_s7 }
  0x78   :  { %v212_v30 = vpop.permute.xlu0 %211  ;;  %v216_v31 = vpop.permute.xlu1 %215 }
  0x79   :  { %v234_v32 = vmul.f32 %v212_v30, %v4402_v28  ;;  %v236_v33 = vmul.f32 %v216_v31, %v4402_v28  ;;  %v242_v46 = vmul.f32 %v212_v30, %v4427_v44  ;;  %v244_v48 = vmul.f32 %v216_v31, %v4427_v44 }
  0x7b   :  { %267 = vrot.lane.b32.xlu1 %v234_v32, %s4279_s7  ;;  %269 = vrot.lane.b32.xlu0 %v235_v29, %s4279_s7 }
  0x7c   :  { %v218_v34 = vpop.permute.xlu0 %217  ;;  %v220_v35 = vpop.permute.xlu1 %219 }
  0x7d   :  { %v237_v36 = vmul.f32 %v218_v34, %v4396_v24  ;;  %v238_v37 = vmul.f32 %v220_v35, %v4402_v28  ;;  %v245_v49 = vmul.f32 %v218_v34, %v4418_v41  ;;  %v246_v53 = vmul.f32 %v220_v35, %v4427_v44  ;;  %v4522_v35 = vld [vmem:[%s8464_s0 + $0x60] sm:$0xff] }
  0x7f   :  { %271 = vrot.lane.b32.xlu1 %v236_v33, %s4279_s7  ;;  %273 = vrot.lane.b32.xlu0 %v237_v36, %s4279_s7 }
  0x80   :  { %v222_v38 = vpop.permute.xlu0 %221  ;;  %v224_v39 = vpop.permute.xlu1 %223 }
  0x81   :  { %v239_v40 = vmul.f32 %v222_v38, %v4396_v24  ;;  %v240_v42 = vmul.f32 %v224_v39, %v4402_v28  ;;  %v247_v54 = vmul.f32 %v222_v38, %v4418_v41  ;;  %v248_v58 = vmul.f32 %v224_v39, %v4427_v44  ;;  %v4531_v38 = vld [vmem:[%s8464_s0 + $0x68] sm:$0x3f] }
  0x83   :  { %275 = vrot.lane.b32.xlu1 %v238_v37, %s4279_s7  ;;  %277 = vrot.lane.b32.xlu0 %v239_v40, %s4279_s7 }
  0x84   :  { %v347_v47 = vpop.permute.xlu0 %346  ;;  %v349_v50 = vpop.permute.xlu1 %348 }
  0x85   :  { %v370_v55 = vmul.f32 %v347_v47, %v4442_v51  ;;  %v371_v60 = vmul.f32 %v349_v50, %v4452_v56  ;;  %v378_v7 = vmul.f32 %v347_v47, %v4470_v5  ;;  %v379_v9 = vmul.f32 %v349_v50, %v4479_v8  ;;  %v3916_v47 = vld [vmem:[%s8463_s1 + $0x1c0] sm:$0xff]  ;;  %v3918_v50 = vld [vmem:[%s8463_s1 + $0x1d0] sm:$0xff] }
  0x87   :  { %279 = vrot.lane.b32.xlu1 %v240_v42, %s4279_s7  ;;  %281 = vrot.lane.b32.xlu0 %v241_v43, %s4279_s7 }
  0x88   :  { %v351_v52 = vpop.permute.xlu0 %350  ;;  %v353_v57 = vpop.permute.xlu1 %352 }
  0x89   :  { %v372_v61 = vmul.f32 %v351_v52, %v4442_v51  ;;  %v373_v63 = vmul.f32 %v353_v57, %v4452_v56  ;;  %v380_v10 = vmul.f32 %v351_v52, %v4470_v5  ;;  %v381_v12 = vmul.f32 %v353_v57, %v4479_v8  ;;  %v3919_v52 = vld [vmem:[%s8463_s1 + $0x1d8] sm:$0x3f] }
  0x8a   :  { %v3923_v57 = vld [vmem:[%s8463_s1 + $0x1f8] sm:$0x3f] }
  0x8b   :  { %283 = vrot.lane.b32.xlu1 %v242_v46, %s4279_s7  ;;  %285 = vrot.lane.b32.xlu0 %v243_v45, %s4279_s7 }
  0x8c   :  { %v355_v59 = vpop.permute.xlu0 %354  ;;  %v357_v62 = vpop.permute.xlu1 %356 }
  0x8d   :  { %v374_v0 = vmul.f32 %v355_v59, %v4442_v51  ;;  %v375_v2 = vmul.f32 %v357_v62, %v4452_v56  ;;  %v382_v13 = vmul.f32 %v355_v59, %v4470_v5  ;;  %v383_v17 = vmul.f32 %v357_v62, %v4479_v8 }
  0x8f   :  { %287 = vrot.lane.b32.xlu1 %v244_v48, %s4279_s7  ;;  %289 = vrot.lane.b32.xlu0 %v245_v49, %s4279_s7  ;;  %v3917_v49 = vld [vmem:[%s8463_s1 + $0x1c8] sm:$0x3f] }
  0x90   :  { %v359_v1 = vpop.permute.xlu0 %358  ;;  %v361_v4 = vpop.permute.xlu1 %360 }
  0x91   :  { %v376_v3 = vmul.f32 %v359_v1, %v4442_v51  ;;  %v377_v6 = vmul.f32 %v361_v4, %v4452_v56  ;;  %v384_v18 = vmul.f32 %v359_v1, %v4470_v5  ;;  %v385_v22 = vmul.f32 %v361_v4, %v4479_v8 }
  0x93   :  { %291 = vrot.lane.b32.xlu1 %v246_v53, %s4279_s7  ;;  %293 = vrot.lane.b32.xlu0 %v247_v54, %s4279_s7  ;;  %v3920_v53 = vld [vmem:[%s8463_s1 + $0x1e0] sm:$0xff]  ;;  %v3921_v54 = vld [vmem:[%s8463_s1 + $0x1e8] sm:$0x3f] }
  0x94   :  { %v484_v11 = vpop.permute.xlu0 %483  ;;  %v486_v14 = vpop.permute.xlu1 %485 }
  0x95   :  { %v507_v19 = vmul.f32 %v484_v11, %v4494_v15  ;;  %v508_v25 = vmul.f32 %v486_v14, %v4504_v20  ;;  %v515_v37 = vmul.f32 %v484_v11, %v4522_v35  ;;  %v516_v39 = vmul.f32 %v486_v14, %v4531_v38 }
  0x97   :  { %295 = vrot.lane.b32.xlu1 %v248_v58, %s4279_s7  ;;  %402 = vrot.lane.b32.xlu0 %v370_v55, %s4279_s7  ;;  %v3922_v55 = vld [vmem:[%s8463_s1 + $0x1f0] sm:$0xff] }
  0x98   :  { %v488_v16 = vpop.permute.xlu0 %487  ;;  %v490_v21 = vpop.permute.xlu1 %489 }
  0x99   :  { %v509_v26 = vmul.f32 %v488_v16, %v4494_v15  ;;  %v510_v29 = vmul.f32 %v490_v21, %v4504_v20  ;;  %v517_v40 = vmul.f32 %v488_v16, %v4522_v35  ;;  %v518_v42 = vmul.f32 %v490_v21, %v4531_v38 }
  0x9b   :  { %404 = vrot.lane.b32.xlu1 %v371_v60, %s4279_s7  ;;  %406 = vrot.lane.b32.xlu0 %v372_v61, %s4279_s7 }
  0x9c   :  { %v492_v23 = vpop.permute.xlu0 %491  ;;  %v494_v27 = vpop.permute.xlu1 %493 }
  0x9d   :  { %v511_v30 = vmul.f32 %v492_v23, %v4494_v15  ;;  %v512_v32 = vmul.f32 %v494_v27, %v4504_v20  ;;  %v519_v43 = vmul.f32 %v492_v23, %v4522_v35  ;;  %v520_v45 = vmul.f32 %v494_v27, %v4531_v38 }
  0x9f   :  { %408 = vrot.lane.b32.xlu1 %v373_v63, %s4279_s7  ;;  %410 = vrot.lane.b32.xlu0 %v374_v0, %s4279_s7 }
  0xa0   :  { %v496_v31 = vpop.permute.xlu0 %495  ;;  %v498_v34 = vpop.permute.xlu1 %497 }
  0xa1   :  { %v513_v33 = vmul.f32 %v496_v31, %v4494_v15  ;;  %v514_v36 = vmul.f32 %v498_v34, %v4504_v20  ;;  %v521_v46 = vmul.f32 %v496_v31, %v4522_v35  ;;  %v522_v48 = vmul.f32 %v498_v34, %v4531_v38 }
  0xa3   :  { %412 = vrot.lane.b32.xlu1 %v375_v2, %s4279_s7  ;;  %414 = vrot.lane.b32.xlu0 %v376_v3, %s4279_s7 }
  0xa7   :  { %416 = vrot.lane.b32.xlu1 %v377_v6, %s4279_s7  ;;  %418 = vrot.lane.b32.xlu0 %v378_v7, %s4279_s7 }
  0xab   :  { %420 = vrot.lane.b32.xlu1 %v379_v9, %s4279_s7  ;;  %422 = vrot.lane.b32.xlu0 %v380_v10, %s4279_s7 }
  0xaf   :  { %424 = vrot.lane.b32.xlu1 %v381_v12, %s4279_s7  ;;  %426 = vrot.lane.b32.xlu0 %v382_v13, %s4279_s7 }
  0xb3   :  { %428 = vrot.lane.b32.xlu1 %v383_v17, %s4279_s7  ;;  %430 = vrot.lane.b32.xlu0 %v384_v18, %s4279_s7 }
  0xb7   :  { %432 = vrot.lane.b32.xlu1 %v385_v22, %s4279_s7  ;;  %539 = vrot.lane.b32.xlu0 %v507_v19, %s4279_s7 }
  0xbb   :  { %541 = vrot.lane.b32.xlu1 %v508_v25, %s4279_s7  ;;  %543 = vrot.lane.b32.xlu0 %v509_v26, %s4279_s7 }
  0xbf   :  { %545 = vrot.lane.b32.xlu1 %v510_v29, %s4279_s7  ;;  %547 = vrot.lane.b32.xlu0 %v511_v30, %s4279_s7 }
  0xc3   :  { %549 = vrot.lane.b32.xlu1 %v512_v32, %s4279_s7  ;;  %551 = vrot.lane.b32.xlu0 %v513_v33, %s4279_s7 }
  0xc7   :  { %553 = vrot.lane.b32.xlu1 %v514_v36, %s4279_s7  ;;  %555 = vrot.lane.b32.xlu0 %v515_v37, %s4279_s7 }
  0xcb   :  { %557 = vrot.lane.b32.xlu1 %v516_v39, %s4279_s7  ;;  %559 = vrot.lane.b32.xlu0 %v517_v40, %s4279_s7 }
  0xcf   :  { %561 = vrot.lane.b32.xlu1 %v518_v42, %s4279_s7  ;;  %563 = vrot.lane.b32.xlu0 %v519_v43, %s4279_s7 }
  0xd3   :  { %565 = vrot.lane.b32.xlu1 %v520_v45, %s4279_s7  ;;  %567 = vrot.lane.b32.xlu0 %v521_v46, %s4279_s7 }
  0xd7   :  { %569 = vrot.lane.b32.xlu1 %v522_v48, %s4279_s7  ;;  %620 = vrot.lane.b32.xlu0 %v3916_v47, %s4278_s13 }
  0xdb   :  { %622 = vrot.lane.b32.xlu1 %v3917_v49, %s4278_s13  ;;  %624 = vrot.lane.b32.xlu0 %v3918_v50, %s4278_s13 }
  0xdf   :  { %626 = vrot.lane.b32.xlu1 %v3919_v52, %s4278_s13  ;;  %628 = vrot.lane.b32.xlu0 %v3920_v53, %s4278_s13  ;;  %v4678_v52 = vld [vmem:[%s8464_s0 + $0x30] sm:$0xff] }
  0xe3   :  { %630 = vrot.lane.b32.xlu1 %v3921_v54, %s4278_s13  ;;  %632 = vrot.lane.b32.xlu0 %v3922_v55, %s4278_s13 }
  0xe7   :  { %634 = vrot.lane.b32.xlu1 %v3923_v57, %s4278_s13  ;;  %v4687_v57 = vld [vmem:[%s8464_s0 + $0x38] sm:$0x3f] }
  0xe9   :  { %v4581_v58 = vpop.permute.xlu0 %265 }
  0xea   :  { %8541 = vst [vmem:[#allocation2_spill] sm:$0xff] %v4581_v58 }
  0xed   :  { %v4583_v59 = vpop.permute.xlu1 %267  ;;  %v4585_v60 = vpop.permute.xlu0 %269 }
  0xee   :  { %8542 = vst [vmem:[#allocation3_spill] sm:$0xff] %v4583_v59  ;;  %8543 = vst [vmem:[#allocation4_spill] sm:$0xff] %v4585_v60 }
  0xf1   :  { %v4587_v61 = vpop.permute.xlu1 %271  ;;  %v4589_v62 = vpop.permute.xlu0 %273 }
  0xf2   :  { %8544 = vst [vmem:[#allocation5_spill] sm:$0xff] %v4587_v61  ;;  %8545 = vst [vmem:[#allocation6_spill] sm:$0xff] %v4589_v62 }
  0xf5   :  { %v4591_v63 = vpop.permute.xlu1 %275  ;;  %v4593_v0 = vpop.permute.xlu0 %277 }
  0xf6   :  { %8546 = vst [vmem:[#allocation7_spill] sm:$0xff] %v4591_v63  ;;  %8547 = vst [vmem:[#allocation8_spill] sm:$0xff] %v4593_v0 }
  0xf9   :  { %v4595_v1 = vpop.permute.xlu1 %279  ;;  %v4597_v2 = vpop.permute.xlu0 %281 }
  0xfa   :  { %8548 = vst [vmem:[#allocation9_spill] sm:$0xff] %v4595_v1  ;;  %8549 = vst [vmem:[#allocation10_spill] sm:$0xff] %v4597_v2 }
  0xfd   :  { %v4599_v3 = vpop.permute.xlu1 %283  ;;  %v4601_v4 = vpop.permute.xlu0 %285 }
  0xfe   :  { %8550 = vst [vmem:[#allocation11_spill] sm:$0xff] %v4599_v3  ;;  %8551 = vst [vmem:[#allocation12_spill] sm:$0xff] %v4601_v4 }
 0x101   :  { %v4603_v6 = vpop.permute.xlu1 %287  ;;  %v4605_v7 = vpop.permute.xlu0 %289 }
 0x102   :  { %8552 = vst [vmem:[#allocation13_spill] sm:$0xff] %v4603_v6  ;;  %8553 = vst [vmem:[#allocation14_spill] sm:$0xff] %v4605_v7 }
 0x105   :  { %v4607_v9 = vpop.permute.xlu1 %291  ;;  %v4609_v10 = vpop.permute.xlu0 %293 }
 0x106   :  { %8554 = vst [vmem:[#allocation15_spill] sm:$0xff] %v4607_v9 }
 0x109   :  { %v4611_v11 = vpop.permute.xlu1 %295  ;;  %v4613_v12 = vpop.permute.xlu0 %402 }
 0x10a   :  { %8555 = vst [vmem:[#allocation16_spill] sm:$0xff] %v4613_v12 }
 0x10d   :  { %v4615_v13 = vpop.permute.xlu1 %404  ;;  %v4617_v14 = vpop.permute.xlu0 %406 }
 0x10e   :  { %8556 = vst [vmem:[#allocation17_spill] sm:$0xff] %v4615_v13  ;;  %8557 = vst [vmem:[#allocation18_spill] sm:$0xff] %v4617_v14 }
 0x111   :  { %v4619_v16 = vpop.permute.xlu1 %408  ;;  %v4621_v17 = vpop.permute.xlu0 %410 }
 0x112   :  { %8558 = vst [vmem:[#allocation19_spill] sm:$0xff] %v4619_v16  ;;  %8559 = vst [vmem:[#allocation20_spill] sm:$0xff] %v4621_v17 }
 0x115   :  { %v4623_v18 = vpop.permute.xlu1 %412  ;;  %v4625_v19 = vpop.permute.xlu0 %414 }
 0x116   :  { %8560 = vst [vmem:[#allocation21_spill] sm:$0xff] %v4623_v18  ;;  %8561 = vst [vmem:[#allocation22_spill] sm:$0xff] %v4625_v19 }
 0x119   :  { %v4627_v21 = vpop.permute.xlu1 %416  ;;  %v4629_v22 = vpop.permute.xlu0 %418 }
 0x11a   :  { %8562 = vst [vmem:[#allocation23_spill] sm:$0xff] %v4627_v21  ;;  %8563 = vst [vmem:[#allocation24_spill] sm:$0xff] %v4629_v22 }
 0x11d   :  { %v4631_v23 = vpop.permute.xlu1 %420  ;;  %v4633_v25 = vpop.permute.xlu0 %422 }
 0x11e   :  { %8564 = vst [vmem:[#allocation25_spill] sm:$0xff] %v4631_v23  ;;  %8565 = vst [vmem:[#allocation26_spill] sm:$0xff] %v4633_v25 }
 0x121   :  { %v4635_v26 = vpop.permute.xlu1 %424  ;;  %v4637_v27 = vpop.permute.xlu0 %426 }
 0x122   :  { %8566 = vst [vmem:[#allocation27_spill] sm:$0xff] %v4635_v26  ;;  %8567 = vst [vmem:[#allocation28_spill] sm:$0xff] %v4637_v27 }
 0x125   :  { %v4639_v29 = vpop.permute.xlu1 %428  ;;  %v4641_v30 = vpop.permute.xlu0 %430 }
 0x126   :  { %8568 = vst [vmem:[#allocation29_spill] sm:$0xff] %v4639_v29 }
 0x129   :  { %v4643_v31 = vpop.permute.xlu1 %432  ;;  %v4645_v32 = vpop.permute.xlu0 %539 }
 0x12a   :  { %8569 = vst [vmem:[#allocation30_spill] sm:$0xff] %v4645_v32 }
 0x12d   :  { %v4647_v33 = vpop.permute.xlu1 %541  ;;  %v4649_v34 = vpop.permute.xlu0 %543 }
 0x12e   :  { %8570 = vst [vmem:[#allocation31_spill] sm:$0xff] %v4647_v33  ;;  %8571 = vst [vmem:[#allocation32_spill] sm:$0xff] %v4649_v34 }
 0x131   :  { %v4651_v36 = vpop.permute.xlu1 %545  ;;  %v4653_v37 = vpop.permute.xlu0 %547 }
 0x132   :  { %8572 = vst [vmem:[#allocation33_spill] sm:$0xff] %v4651_v36  ;;  %8573 = vst [vmem:[#allocation34_spill] sm:$0xff] %v4653_v37 }
 0x135   :  { %v4655_v39 = vpop.permute.xlu1 %549  ;;  %v4657_v40 = vpop.permute.xlu0 %551 }
 0x136   :  { %8574 = vst [vmem:[#allocation35_spill] sm:$0xff] %v4655_v39  ;;  %8575 = vst [vmem:[#allocation36_spill] sm:$0xff] %v4657_v40 }
 0x139   :  { %v4659_v42 = vpop.permute.xlu1 %553  ;;  %v4661_v43 = vpop.permute.xlu0 %555 }
 0x13a   :  { %8576 = vst [vmem:[#allocation37_spill] sm:$0xff] %v4659_v42  ;;  %8577 = vst [vmem:[#allocation38_spill] sm:$0xff] %v4661_v43 }
 0x13d   :  { %v4663_v45 = vpop.permute.xlu1 %557  ;;  %v4665_v46 = vpop.permute.xlu0 %559 }
 0x13e   :  { %8578 = vst [vmem:[#allocation39_spill] sm:$0xff] %v4663_v45  ;;  %8579 = vst [vmem:[#allocation40_spill] sm:$0xff] %v4665_v46 }
 0x141   :  { %v4667_v47 = vpop.permute.xlu1 %561  ;;  %v4669_v48 = vpop.permute.xlu0 %563 }
 0x142   :  { %8580 = vst [vmem:[#allocation41_spill] sm:$0xff] %v4667_v47  ;;  %8581 = vst [vmem:[#allocation42_spill] sm:$0xff] %v4669_v48 }
 0x145   :  { %v4671_v49 = vpop.permute.xlu1 %565  ;;  %v4673_v50 = vpop.permute.xlu0 %567 }
 0x146   :  { %8582 = vst [vmem:[#allocation43_spill] sm:$0xff] %v4671_v49 }
 0x149   :  { %v4680_v53 = vpop.permute.xlu1 %569  ;;  %v621_v54 = vpop.permute.xlu0 %620 }
 0x14a   :  { %v644_v55 = vmul.f32 %v621_v54, %v4678_v52 }
 0x14c   :  { %676 = vrot.lane.b32.xlu0 %v644_v55, %s4279_s7 }
 0x14d   :  { %v623_v49 = vpop.permute.xlu1 %622  ;;  %v625_v48 = vpop.permute.xlu0 %624 }
 0x14e   :  { %v645_v47 = vmul.f32 %v623_v49, %v4687_v57  ;;  %v646_v46 = vmul.f32 %v625_v48, %v4678_v52 }
 0x150   :  { %678 = vrot.lane.b32.xlu1 %v645_v47, %s4279_s7  ;;  %680 = vrot.lane.b32.xlu0 %v646_v46, %s4279_s7  ;;  %v4704_v46 = vld [vmem:[%s8464_s0 + $0x70] sm:$0xff] }
 0x151   :  { %v627_v45 = vpop.permute.xlu1 %626  ;;  %v629_v43 = vpop.permute.xlu0 %628  ;;  %v654_v29 = vmul.f32 %v625_v48, %v4704_v46  ;;  %v3929_v48 = vld [vmem:[%s8463_s1 + $0x228] sm:$0x3f] }
 0x152   :  { %v647_v42 = vmul.f32 %v627_v45, %v4687_v57  ;;  %v648_v55 = vmul.f32 %v629_v43, %v4678_v52  ;;  %v656_v27 = vmul.f32 %v629_v43, %v4704_v46  ;;  %v3928_v43 = vld [vmem:[%s8463_s1 + $0x220] sm:$0xff] }
 0x154   :  { %682 = vrot.lane.b32.xlu1 %v647_v42, %s4279_s7  ;;  %684 = vrot.lane.b32.xlu0 %v648_v55, %s4279_s7  ;;  %v652_v42 = vmul.f32 %v621_v54, %v4704_v46 }
 0x155   :  { %v631_v40 = vpop.permute.xlu1 %630  ;;  %v633_v39 = vpop.permute.xlu0 %632 }
 0x156   :  { %v649_v37 = vmul.f32 %v631_v40, %v4687_v57  ;;  %v650_v36 = vmul.f32 %v633_v39, %v4678_v52 }
 0x158   :  { %686 = vrot.lane.b32.xlu1 %v649_v37, %s4279_s7  ;;  %688 = vrot.lane.b32.xlu0 %v650_v36, %s4279_s7  ;;  %v4713_v37 = vld [vmem:[%s8464_s0 + $0x78] sm:$0x3f] }
 0x159   :  { %v635_v47 = vpop.permute.xlu1 %634  ;;  %v653_v36 = vmul.f32 %v623_v49, %v4713_v37  ;;  %v655_v54 = vmul.f32 %v627_v45, %v4713_v37  ;;  %v3930_v49 = vld [vmem:[%s8463_s1 + $0x230] sm:$0xff] }
 0x15a   :  { %v651_v55 = vmul.f32 %v635_v47, %v4687_v57  ;;  %v659_v45 = vmul.f32 %v635_v47, %v4713_v37  ;;  %v3931_v47 = vld [vmem:[%s8463_s1 + $0x238] sm:$0x3f] }
 0x15c   :  { %690 = vrot.lane.b32.xlu1 %v651_v55, %s4279_s7  ;;  %692 = vrot.lane.b32.xlu0 %v652_v42, %s4279_s7  ;;  %v657_v42 = vmul.f32 %v631_v40, %v4713_v37  ;;  %v658_v55 = vmul.f32 %v633_v39, %v4704_v46  ;;  %v3926_v39 = vld [vmem:[%s8463_s1 + $0x210] sm:$0xff]  ;;  %v3927_v40 = vld [vmem:[%s8463_s1 + $0x218] sm:$0x3f] }
 0x160   :  { %694 = vrot.lane.b32.xlu1 %v653_v36, %s4279_s7  ;;  %696 = vrot.lane.b32.xlu0 %v654_v29, %s4279_s7  ;;  %v3924_v29 = vld [vmem:[%s8463_s1 + $0x200] sm:$0xff] }
 0x164   :  { %698 = vrot.lane.b32.xlu1 %v655_v54, %s4279_s7  ;;  %700 = vrot.lane.b32.xlu0 %v656_v27, %s4279_s7  ;;  %v3925_v27 = vld [vmem:[%s8463_s1 + $0x208] sm:$0x3f] }
 0x168   :  { %702 = vrot.lane.b32.xlu1 %v657_v42, %s4279_s7  ;;  %704 = vrot.lane.b32.xlu0 %v658_v55, %s4279_s7 }
 0x16c   :  { %706 = vrot.lane.b32.xlu1 %v659_v45, %s4279_s7  ;;  %757 = vrot.lane.b32.xlu0 %v3924_v29, %s4280_s29 }
 0x170   :  { %759 = vrot.lane.b32.xlu1 %v3925_v27, %s4280_s29  ;;  %761 = vrot.lane.b32.xlu0 %v3926_v39, %s4280_s29 }
 0x174   :  { %763 = vrot.lane.b32.xlu1 %v3927_v40, %s4280_s29  ;;  %765 = vrot.lane.b32.xlu0 %v3928_v43, %s4280_s29 }
 0x178   :  { %767 = vrot.lane.b32.xlu1 %v3929_v48, %s4280_s29  ;;  %769 = vrot.lane.b32.xlu0 %v3930_v49, %s4280_s29 }
 0x17c   :  { %771 = vrot.lane.b32.xlu1 %v3931_v47, %s4280_s29 }
 0x1be   :  { %v4761_v36 = vpop.permute.xlu0 %676 }
 0x1bf   :  { %8583 = vst [vmem:[#allocation44_spill] sm:$0xff] %v4761_v36 }
 0x1c2   :  { %v4763_v54 = vpop.permute.xlu1 %678  ;;  %v4765_v42 = vpop.permute.xlu0 %680 }
 0x1c3   :  { %8584 = vst [vmem:[#allocation45_spill] sm:$0xff] %v4763_v54  ;;  %8585 = vst [vmem:[#allocation46_spill] sm:$0xff] %v4765_v42 }
 0x1c6   :  { %v4767_v55 = vpop.permute.xlu1 %682  ;;  %v4769_v29 = vpop.permute.xlu0 %684 }
 0x1c7   :  { %8586 = vst [vmem:[#allocation47_spill] sm:$0xff] %v4767_v55  ;;  %8587 = vst [vmem:[#allocation48_spill] sm:$0xff] %v4769_v29 }
 0x1ca   :  { %v4771_v45 = vpop.permute.xlu1 %686  ;;  %v4773_v27 = vpop.permute.xlu0 %688 }
 0x1cb   :  { %8588 = vst [vmem:[#allocation49_spill] sm:$0xff] %v4771_v45  ;;  %8589 = vst [vmem:[#allocation50_spill] sm:$0xff] %v4773_v27 }
 0x1ce   :  { %v4775_v39 = vpop.permute.xlu1 %690  ;;  %v4777_v40 = vpop.permute.xlu0 %692 }
 0x1cf   :  { %8590 = vst [vmem:[#allocation51_spill] sm:$0xff] %v4775_v39  ;;  %8591 = vst [vmem:[#allocation52_spill] sm:$0xff] %v4777_v40 }
 0x1d2   :  { %v4779_v43 = vpop.permute.xlu1 %694  ;;  %v4781_v48 = vpop.permute.xlu0 %696 }
 0x1d3   :  { %8592 = vst [vmem:[#allocation53_spill] sm:$0xff] %v4779_v43  ;;  %8593 = vst [vmem:[#allocation54_spill] sm:$0xff] %v4781_v48 }
 0x1d6   :  { %v4783_v49 = vpop.permute.xlu1 %698  ;;  %v4785_v47 = vpop.permute.xlu0 %700 }
 0x1d7   :  { %8594 = vst [vmem:[#allocation55_spill] sm:$0xff] %v4783_v49  ;;  %8595 = vst [vmem:[#allocation56_spill] sm:$0xff] %v4785_v47 }
 0x1da   :  { %v4787_v26 = vpop.permute.xlu1 %702  ;;  %v4789_v55 = vpop.permute.xlu0 %704 }
 0x1db   :  { %8596 = vst [vmem:[#allocation57_spill] sm:$0xff] %v4787_v26 }
 0x1de   :  { %v4791_v29 = vpop.permute.xlu1 %706  ;;  %v758_v45 = vpop.permute.xlu0 %757 }
 0x1df   :  { %v781_v27 = vmul.f32 %v758_v45, %v4396_v24 }
 0x1e1   :  { %813 = vrot.lane.b32.xlu0 %v781_v27, %s4281_s18 }
 0x1e2   :  { %v760_v40 = vpop.permute.xlu1 %759  ;;  %v762_v43 = vpop.permute.xlu0 %761 }
 0x1e3   :  { %v782_v48 = vmul.f32 %v760_v40, %v4402_v28  ;;  %v783_v49 = vmul.f32 %v762_v43, %v4396_v24 }
 0x1e5   :  { %815 = vrot.lane.b32.xlu1 %v782_v48, %s4281_s18  ;;  %817 = vrot.lane.b32.xlu0 %v783_v49, %s4281_s18  ;;  %v789_v49 = vmul.f32 %v758_v45, %v4418_v41  ;;  %v3933_v45 = vld [vmem:[%s8463_s1 + $0x248] sm:$0x3f] }
 0x1e6   :  { %v764_v26 = vpop.permute.xlu1 %763  ;;  %v766_v47 = vpop.permute.xlu0 %765 }
 0x1e7   :  { %v784_v39 = vmul.f32 %v764_v26, %v4402_v28  ;;  %v785_v25 = vmul.f32 %v766_v47, %v4396_v24 }
 0x1e9   :  { %819 = vrot.lane.b32.xlu1 %v784_v39, %s4281_s18  ;;  %821 = vrot.lane.b32.xlu0 %v785_v25, %s4281_s18  ;;  %v790_v25 = vmul.f32 %v760_v40, %v4427_v44  ;;  %v791_v39 = vmul.f32 %v762_v43, %v4418_v41  ;;  %v3937_v40 = vld [vmem:[%s8463_s1 + $0x268] sm:$0x3f]  ;;  %v3938_v43 = vld [vmem:[%s8463_s1 + $0x270] sm:$0xff] }
 0x1ea   :  { %v768_v27 = vpop.permute.xlu1 %767  ;;  %v770_v23 = vpop.permute.xlu0 %769 }
 0x1eb   :  { %v786_v22 = vmul.f32 %v768_v27, %v4402_v28  ;;  %v787_v21 = vmul.f32 %v770_v23, %v4396_v24  ;;  %v792_v24 = vmul.f32 %v764_v26, %v4427_v44 }
 0x1ed   :  { %823 = vrot.lane.b32.xlu1 %v786_v22, %s4281_s18  ;;  %825 = vrot.lane.b32.xlu0 %v787_v21, %s4281_s18  ;;  %v793_v21 = vmul.f32 %v766_v47, %v4418_v41  ;;  %v3932_v22 = vld [vmem:[%s8463_s1 + $0x240] sm:$0xff]  ;;  %v3939_v47 = vld [vmem:[%s8463_s1 + $0x278] sm:$0x3f] }
 0x1ee   :  { %v772_v48 = vpop.permute.xlu1 %771 }
 0x1ef   :  { %v788_v19 = vmul.f32 %v772_v48, %v4402_v28  ;;  %v794_v28 = vmul.f32 %v768_v27, %v4427_v44  ;;  %v796_v26 = vmul.f32 %v772_v48, %v4427_v44  ;;  %v3935_v44 = vld [vmem:[%s8463_s1 + $0x258] sm:$0x3f] }
 0x1f1   :  { %827 = vrot.lane.b32.xlu1 %v788_v19, %s4281_s18  ;;  %829 = vrot.lane.b32.xlu0 %v789_v49, %s4281_s18  ;;  %v795_v19 = vmul.f32 %v770_v23, %v4418_v41  ;;  %v3934_v41 = vld [vmem:[%s8463_s1 + $0x250] sm:$0xff]  ;;  %v3936_v23 = vld [vmem:[%s8463_s1 + $0x260] sm:$0xff] }
 0x1f5   :  { %831 = vrot.lane.b32.xlu1 %v790_v25, %s4281_s18  ;;  %833 = vrot.lane.b32.xlu0 %v791_v39, %s4281_s18 }
 0x1f9   :  { %835 = vrot.lane.b32.xlu1 %v792_v24, %s4281_s18  ;;  %837 = vrot.lane.b32.xlu0 %v793_v21, %s4281_s18 }
 0x1fd   :  { %839 = vrot.lane.b32.xlu1 %v794_v28, %s4281_s18  ;;  %841 = vrot.lane.b32.xlu0 %v795_v19, %s4281_s18 }
 0x201   :  { %843 = vrot.lane.b32.xlu1 %v796_v26, %s4281_s18  ;;  %894 = vrot.lane.b32.xlu0 %v3932_v22, %s4280_s29 }
 0x205   :  { %896 = vrot.lane.b32.xlu1 %v3933_v45, %s4280_s29  ;;  %898 = vrot.lane.b32.xlu0 %v3934_v41, %s4280_s29 }
 0x209   :  { %900 = vrot.lane.b32.xlu1 %v3935_v44, %s4280_s29  ;;  %902 = vrot.lane.b32.xlu0 %v3936_v23, %s4280_s29 }
 0x20d   :  { %904 = vrot.lane.b32.xlu1 %v3937_v40, %s4280_s29  ;;  %906 = vrot.lane.b32.xlu0 %v3938_v43, %s4280_s29 }
 0x211   :  { %908 = vrot.lane.b32.xlu1 %v3939_v47, %s4280_s29 }
 0x253   :  { %v4857_v27 = vpop.permute.xlu0 %813 }
 0x254   :  { %8597 = vst [vmem:[#allocation58_spill] sm:$0xff] %v4857_v27 }
 0x257   :  { %v4859_v48 = vpop.permute.xlu1 %815  ;;  %v4861_v49 = vpop.permute.xlu0 %817 }
 0x258   :  { %8598 = vst [vmem:[#allocation59_spill] sm:$0xff] %v4859_v48  ;;  %8599 = vst [vmem:[#allocation60_spill] sm:$0xff] %v4861_v49 }
 0x25b   :  { %v4863_v25 = vpop.permute.xlu1 %819  ;;  %v4865_v39 = vpop.permute.xlu0 %821 }
 0x25c   :  { %8600 = vst [vmem:[#allocation61_spill] sm:$0xff] %v4863_v25  ;;  %8601 = vst [vmem:[#allocation62_spill] sm:$0xff] %v4865_v39 }
 0x25f   :  { %v4867_v24 = vpop.permute.xlu1 %823  ;;  %v4869_v21 = vpop.permute.xlu0 %825 }
 0x260   :  { %8602 = vst [vmem:[#allocation63_spill] sm:$0xff] %v4867_v24  ;;  %8603 = vst [vmem:[#allocation64_spill] sm:$0xff] %v4869_v21 }
 0x263   :  { %v4871_v28 = vpop.permute.xlu1 %827  ;;  %v4873_v19 = vpop.permute.xlu0 %829 }
 0x264   :  { %8604 = vst [vmem:[#allocation65_spill] sm:$0xff] %v4871_v28  ;;  %8605 = vst [vmem:[#allocation66_spill] sm:$0xff] %v4873_v19 }
 0x267   :  { %v4875_v22 = vpop.permute.xlu1 %831  ;;  %v4877_v26 = vpop.permute.xlu0 %833 }
 0x268   :  { %8606 = vst [vmem:[#allocation67_spill] sm:$0xff] %v4875_v22  ;;  %8607 = vst [vmem:[#allocation68_spill] sm:$0xff] %v4877_v26 }
 0x26b   :  { %v4879_v45 = vpop.permute.xlu1 %835  ;;  %v4881_v41 = vpop.permute.xlu0 %837 }
 0x26c   :  { %8608 = vst [vmem:[#allocation69_spill] sm:$0xff] %v4879_v45  ;;  %8609 = vst [vmem:[#allocation70_spill] sm:$0xff] %v4881_v41 }
 0x26f   :  { %v4883_v44 = vpop.permute.xlu1 %839  ;;  %v4885_v23 = vpop.permute.xlu0 %841 }
 0x270   :  { %8610 = vst [vmem:[#allocation71_spill] sm:$0xff] %v4883_v44 }
 0x273   :  { %v4887_v40 = vpop.permute.xlu1 %843  ;;  %v895_v43 = vpop.permute.xlu0 %894 }
 0x274   :  { %v918_v47 = vmul.f32 %v895_v43, %v4442_v51 }
 0x276   :  { %950 = vrot.lane.b32.xlu0 %v918_v47, %s4281_s18 }
 0x277   :  { %v897_v19 = vpop.permute.xlu1 %896  ;;  %v899_v28 = vpop.permute.xlu0 %898 }
 0x278   :  { %v919_v22 = vmul.f32 %v897_v19, %v4452_v56  ;;  %v920_v26 = vmul.f32 %v899_v28, %v4442_v51 }
 0x27a   :  { %952 = vrot.lane.b32.xlu1 %v919_v22, %s4281_s18  ;;  %954 = vrot.lane.b32.xlu0 %v920_v26, %s4281_s18  ;;  %v926_v26 = vmul.f32 %v895_v43, %v4470_v5  ;;  %v3947_v43 = vld [vmem:[%s8463_s1 + $0x2b8] sm:$0x3f] }
 0x27b   :  { %v901_v44 = vpop.permute.xlu1 %900  ;;  %v903_v41 = vpop.permute.xlu0 %902 }
 0x27c   :  { %v921_v45 = vmul.f32 %v901_v44, %v4452_v56  ;;  %v922_v21 = vmul.f32 %v903_v41, %v4442_v51 }
 0x27e   :  { %956 = vrot.lane.b32.xlu1 %v921_v45, %s4281_s18  ;;  %958 = vrot.lane.b32.xlu0 %v922_v21, %s4281_s18  ;;  %v927_v21 = vmul.f32 %v897_v19, %v4479_v8  ;;  %v928_v45 = vmul.f32 %v899_v28, %v4470_v5  ;;  %v3941_v19 = vld [vmem:[%s8463_s1 + $0x288] sm:$0x3f] }
 0x27f   :  { %v905_v47 = vpop.permute.xlu1 %904  ;;  %v907_v24 = vpop.permute.xlu0 %906 }
 0x280   :  { %v923_v39 = vmul.f32 %v905_v47, %v4452_v56  ;;  %v924_v25 = vmul.f32 %v907_v24, %v4442_v51  ;;  %v929_v51 = vmul.f32 %v901_v44, %v4479_v8  ;;  %v3946_v44 = vld [vmem:[%s8463_s1 + $0x2b0] sm:$0xff] }
 0x282   :  { %960 = vrot.lane.b32.xlu1 %v923_v39, %s4281_s18  ;;  %962 = vrot.lane.b32.xlu0 %v924_v25, %s4281_s18  ;;  %v930_v25 = vmul.f32 %v903_v41, %v4470_v5  ;;  %v3940_v39 = vld [vmem:[%s8463_s1 + $0x280] sm:$0xff]  ;;  %v3945_v41 = vld [vmem:[%s8463_s1 + $0x2a8] sm:$0x3f] }
 0x283   :  { %v909_v22 = vpop.permute.xlu1 %908 }
 0x284   :  { %v925_v18 = vmul.f32 %v909_v22, %v4452_v56  ;;  %v931_v56 = vmul.f32 %v905_v47, %v4479_v8  ;;  %v933_v28 = vmul.f32 %v909_v22, %v4479_v8  ;;  %v3943_v8 = vld [vmem:[%s8463_s1 + $0x298] sm:$0x3f] }
 0x286   :  { %964 = vrot.lane.b32.xlu1 %v925_v18, %s4281_s18  ;;  %966 = vrot.lane.b32.xlu0 %v926_v26, %s4281_s18  ;;  %v932_v18 = vmul.f32 %v907_v24, %v4470_v5  ;;  %v3942_v5 = vld [vmem:[%s8463_s1 + $0x290] sm:$0xff]  ;;  %v3944_v24 = vld [vmem:[%s8463_s1 + $0x2a0] sm:$0xff] }
 0x28a   :  { %968 = vrot.lane.b32.xlu1 %v927_v21, %s4281_s18  ;;  %970 = vrot.lane.b32.xlu0 %v928_v45, %s4281_s18 }
 0x28e   :  { %972 = vrot.lane.b32.xlu1 %v929_v51, %s4281_s18  ;;  %974 = vrot.lane.b32.xlu0 %v930_v25, %s4281_s18 }
 0x292   :  { %976 = vrot.lane.b32.xlu1 %v931_v56, %s4281_s18  ;;  %978 = vrot.lane.b32.xlu0 %v932_v18, %s4281_s18 }
 0x296   :  { %980 = vrot.lane.b32.xlu1 %v933_v28, %s4281_s18  ;;  %1031 = vrot.lane.b32.xlu0 %v3940_v39, %s4280_s29 }
 0x29a   :  { %1033 = vrot.lane.b32.xlu1 %v3941_v19, %s4280_s29  ;;  %1035 = vrot.lane.b32.xlu0 %v3942_v5, %s4280_s29 }
 0x29e   :  { %1037 = vrot.lane.b32.xlu1 %v3943_v8, %s4280_s29  ;;  %1039 = vrot.lane.b32.xlu0 %v3944_v24, %s4280_s29 }
 0x2a2   :  { %1041 = vrot.lane.b32.xlu1 %v3945_v41, %s4280_s29  ;;  %1043 = vrot.lane.b32.xlu0 %v3946_v44, %s4280_s29 }
 0x2a6   :  { %1045 = vrot.lane.b32.xlu1 %v3947_v43, %s4280_s29 }
 0x2e8   :  { %v4953_v47 = vpop.permute.xlu0 %950 }
 0x2e9   :  { %8611 = vst [vmem:[#allocation72_spill] sm:$0xff] %v4953_v47 }
 0x2ec   :  { %v4955_v22 = vpop.permute.xlu1 %952  ;;  %v4957_v26 = vpop.permute.xlu0 %954 }
 0x2ed   :  { %8612 = vst [vmem:[#allocation73_spill] sm:$0xff] %v4955_v22  ;;  %8613 = vst [vmem:[#allocation74_spill] sm:$0xff] %v4957_v26 }
 0x2f0   :  { %v4959_v21 = vpop.permute.xlu1 %956  ;;  %v4961_v45 = vpop.permute.xlu0 %958 }
 0x2f1   :  { %8614 = vst [vmem:[#allocation75_spill] sm:$0xff] %v4959_v21  ;;  %8615 = vst [vmem:[#allocation76_spill] sm:$0xff] %v4961_v45 }
 0x2f4   :  { %v4963_v51 = vpop.permute.xlu1 %960  ;;  %v4965_v25 = vpop.permute.xlu0 %962 }
 0x2f5   :  { %8616 = vst [vmem:[#allocation77_spill] sm:$0xff] %v4963_v51  ;;  %8617 = vst [vmem:[#allocation78_spill] sm:$0xff] %v4965_v25 }
 0x2f8   :  { %v4967_v56 = vpop.permute.xlu1 %964  ;;  %v4969_v18 = vpop.permute.xlu0 %966 }
 0x2f9   :  { %8618 = vst [vmem:[#allocation79_spill] sm:$0xff] %v4967_v56  ;;  %8619 = vst [vmem:[#allocation80_spill] sm:$0xff] %v4969_v18 }
 0x2fc   :  { %v4971_v39 = vpop.permute.xlu1 %968  ;;  %v4973_v28 = vpop.permute.xlu0 %970 }
 0x2fd   :  { %8620 = vst [vmem:[#allocation81_spill] sm:$0xff] %v4971_v39  ;;  %8621 = vst [vmem:[#allocation82_spill] sm:$0xff] %v4973_v28 }
 0x300   :  { %v4975_v19 = vpop.permute.xlu1 %972  ;;  %v4977_v5 = vpop.permute.xlu0 %974 }
 0x301   :  { %8622 = vst [vmem:[#allocation83_spill] sm:$0xff] %v4975_v19  ;;  %8623 = vst [vmem:[#allocation84_spill] sm:$0xff] %v4977_v5 }
 0x304   :  { %v4979_v8 = vpop.permute.xlu1 %976  ;;  %v4981_v24 = vpop.permute.xlu0 %978 }
 0x305   :  { %8624 = vst [vmem:[#allocation85_spill] sm:$0xff] %v4979_v8 }
 0x308   :  { %v4983_v41 = vpop.permute.xlu1 %980  ;;  %v1032_v44 = vpop.permute.xlu0 %1031 }
 0x309   :  { %v1055_v43 = vmul.f32 %v1032_v44, %v4494_v15 }
 0x30b   :  { %1087 = vrot.lane.b32.xlu0 %v1055_v43, %s4281_s18 }
 0x30c   :  { %v1034_v18 = vpop.permute.xlu1 %1033  ;;  %v1036_v56 = vpop.permute.xlu0 %1035 }
 0x30d   :  { %v1056_v39 = vmul.f32 %v1034_v18, %v4504_v20  ;;  %v1057_v28 = vmul.f32 %v1036_v56, %v4494_v15 }
 0x30f   :  { %1089 = vrot.lane.b32.xlu1 %v1056_v39, %s4281_s18  ;;  %1091 = vrot.lane.b32.xlu0 %v1057_v28, %s4281_s18  ;;  %v1063_v28 = vmul.f32 %v1032_v44, %v4522_v35  ;;  %v3955_v44 = vld [vmem:[%s8463_s1 + $0x2f8] sm:$0x3f] }
 0x310   :  { %v1038_v8 = vpop.permute.xlu1 %1037  ;;  %v1040_v5 = vpop.permute.xlu0 %1039 }
 0x311   :  { %v1058_v19 = vmul.f32 %v1038_v8, %v4504_v20  ;;  %v1059_v25 = vmul.f32 %v1040_v5, %v4494_v15 }
 0x313   :  { %1093 = vrot.lane.b32.xlu1 %v1058_v19, %s4281_s18  ;;  %1095 = vrot.lane.b32.xlu0 %v1059_v25, %s4281_s18  ;;  %v1064_v25 = vmul.f32 %v1034_v18, %v4531_v38  ;;  %v1065_v19 = vmul.f32 %v1036_v56, %v4522_v35  ;;  %v3949_v18 = vld [vmem:[%s8463_s1 + $0x2c8] sm:$0x3f] }
 0x314   :  { %v1042_v43 = vpop.permute.xlu1 %1041  ;;  %v1044_v51 = vpop.permute.xlu0 %1043 }
 0x315   :  { %v1060_v45 = vmul.f32 %v1042_v43, %v4504_v20  ;;  %v1061_v21 = vmul.f32 %v1044_v51, %v4494_v15  ;;  %v1066_v15 = vmul.f32 %v1038_v8, %v4531_v38  ;;  %v3954_v8 = vld [vmem:[%s8463_s1 + $0x2f0] sm:$0xff] }
 0x317   :  { %1097 = vrot.lane.b32.xlu1 %v1060_v45, %s4281_s18  ;;  %1099 = vrot.lane.b32.xlu0 %v1061_v21, %s4281_s18  ;;  %v1067_v21 = vmul.f32 %v1040_v5, %v4522_v35  ;;  %v3948_v45 = vld [vmem:[%s8463_s1 + $0x2c0] sm:$0xff]  ;;  %v3953_v5 = vld [vmem:[%s8463_s1 + $0x2e8] sm:$0x3f] }
 0x318   :  { %v1046_v39 = vpop.permute.xlu1 %1045 }
 0x319   :  { %v1062_v17 = vmul.f32 %v1046_v39, %v4504_v20  ;;  %v1068_v20 = vmul.f32 %v1042_v43, %v4531_v38  ;;  %v1070_v56 = vmul.f32 %v1046_v39, %v4531_v38  ;;  %v3951_v38 = vld [vmem:[%s8463_s1 + $0x2d8] sm:$0x3f] }
 0x31b   :  { %1101 = vrot.lane.b32.xlu1 %v1062_v17, %s4281_s18  ;;  %1103 = vrot.lane.b32.xlu0 %v1063_v28, %s4281_s18  ;;  %v1069_v17 = vmul.f32 %v1044_v51, %v4522_v35  ;;  %v3950_v35 = vld [vmem:[%s8463_s1 + $0x2d0] sm:$0xff]  ;;  %v3952_v51 = vld [vmem:[%s8463_s1 + $0x2e0] sm:$0xff] }
 0x31f   :  { %1105 = vrot.lane.b32.xlu1 %v1064_v25, %s4281_s18  ;;  %1107 = vrot.lane.b32.xlu0 %v1065_v19, %s4281_s18 }
 0x323   :  { %1109 = vrot.lane.b32.xlu1 %v1066_v15, %s4281_s18  ;;  %1111 = vrot.lane.b32.xlu0 %v1067_v21, %s4281_s18 }
 0x327   :  { %1113 = vrot.lane.b32.xlu1 %v1068_v20, %s4281_s18  ;;  %1115 = vrot.lane.b32.xlu0 %v1069_v17, %s4281_s18 }
 0x32b   :  { %1117 = vrot.lane.b32.xlu1 %v1070_v56, %s4281_s18  ;;  %1168 = vrot.lane.b32.xlu0 %v3948_v45, %s4280_s29 }
 0x32f   :  { %1170 = vrot.lane.b32.xlu1 %v3949_v18, %s4280_s29  ;;  %1172 = vrot.lane.b32.xlu0 %v3950_v35, %s4280_s29 }
 0x333   :  { %1174 = vrot.lane.b32.xlu1 %v3951_v38, %s4280_s29  ;;  %1176 = vrot.lane.b32.xlu0 %v3952_v51, %s4280_s29 }
 0x337   :  { %1178 = vrot.lane.b32.xlu1 %v3953_v5, %s4280_s29  ;;  %1180 = vrot.lane.b32.xlu0 %v3954_v8, %s4280_s29 }
 0x33b   :  { %1182 = vrot.lane.b32.xlu1 %v3955_v44, %s4280_s29 }
 0x37d   :  { %v5049_v43 = vpop.permute.xlu0 %1087 }
 0x37e   :  { %8625 = vst [vmem:[#allocation86_spill] sm:$0xff] %v5049_v43 }
 0x381   :  { %v5051_v39 = vpop.permute.xlu1 %1089  ;;  %v5053_v28 = vpop.permute.xlu0 %1091 }
 0x382   :  { %8626 = vst [vmem:[#allocation87_spill] sm:$0xff] %v5051_v39  ;;  %8627 = vst [vmem:[#allocation88_spill] sm:$0xff] %v5053_v28 }
 0x385   :  { %v5055_v25 = vpop.permute.xlu1 %1093  ;;  %v5057_v19 = vpop.permute.xlu0 %1095 }
 0x386   :  { %8628 = vst [vmem:[#allocation89_spill] sm:$0xff] %v5055_v25  ;;  %8629 = vst [vmem:[#allocation90_spill] sm:$0xff] %v5057_v19 }
 0x389   :  { %v5059_v15 = vpop.permute.xlu1 %1097  ;;  %v5061_v21 = vpop.permute.xlu0 %1099 }
 0x38a   :  { %8630 = vst [vmem:[#allocation91_spill] sm:$0xff] %v5059_v15  ;;  %8631 = vst [vmem:[#allocation92_spill] sm:$0xff] %v5061_v21 }
 0x38d   :  { %v5063_v20 = vpop.permute.xlu1 %1101  ;;  %v5065_v17 = vpop.permute.xlu0 %1103 }
 0x38e   :  { %8632 = vst [vmem:[#allocation93_spill] sm:$0xff] %v5063_v20  ;;  %8633 = vst [vmem:[#allocation94_spill] sm:$0xff] %v5065_v17 }
 0x391   :  { %v5067_v45 = vpop.permute.xlu1 %1105  ;;  %v5069_v56 = vpop.permute.xlu0 %1107 }
 0x392   :  { %8634 = vst [vmem:[#allocation95_spill] sm:$0xff] %v5067_v45  ;;  %8635 = vst [vmem:[#allocation96_spill] sm:$0xff] %v5069_v56 }
 0x395   :  { %v5071_v18 = vpop.permute.xlu1 %1109  ;;  %v5073_v35 = vpop.permute.xlu0 %1111 }
 0x396   :  { %8636 = vst [vmem:[#allocation97_spill] sm:$0xff] %v5071_v18  ;;  %8637 = vst [vmem:[#allocation98_spill] sm:$0xff] %v5073_v35 }
 0x399   :  { %v5075_v38 = vpop.permute.xlu1 %1113  ;;  %v5077_v51 = vpop.permute.xlu0 %1115 }
 0x39a   :  { %8638 = vst [vmem:[#allocation99_spill] sm:$0xff] %v5075_v38 }
 0x39d   :  { %v5079_v5 = vpop.permute.xlu1 %1117  ;;  %v1169_v8 = vpop.permute.xlu0 %1168 }
 0x39e   :  { %v1192_v44 = vmul.f32 %v1169_v8, %v4678_v52 }
 0x3a0   :  { %1224 = vrot.lane.b32.xlu0 %v1192_v44, %s4281_s18 }
 0x3a1   :  { %v1171_v17 = vpop.permute.xlu1 %1170  ;;  %v1173_v20 = vpop.permute.xlu0 %1172 }
 0x3a2   :  { %v1193_v45 = vmul.f32 %v1171_v17, %v4687_v57  ;;  %v1194_v56 = vmul.f32 %v1173_v20, %v4678_v52 }
 0x3a4   :  { %1226 = vrot.lane.b32.xlu1 %v1193_v45, %s4281_s18  ;;  %1228 = vrot.lane.b32.xlu0 %v1194_v56, %s4281_s18  ;;  %v1200_v56 = vmul.f32 %v1169_v8, %v4704_v46  ;;  %v4011_v8 = vld [vmem:[%s8463_s1 + $0x438] sm:$0x3f] }
 0x3a5   :  { %v1175_v38 = vpop.permute.xlu1 %1174  ;;  %v1177_v35 = vpop.permute.xlu0 %1176 }
 0x3a6   :  { %v1195_v18 = vmul.f32 %v1175_v38, %v4687_v57  ;;  %v1196_v21 = vmul.f32 %v1177_v35, %v4678_v52 }
 0x3a8   :  { %1230 = vrot.lane.b32.xlu1 %v1195_v18, %s4281_s18  ;;  %1232 = vrot.lane.b32.xlu0 %v1196_v21, %s4281_s18  ;;  %v1201_v21 = vmul.f32 %v1171_v17, %v4713_v37  ;;  %v1202_v18 = vmul.f32 %v1173_v20, %v4704_v46  ;;  %v4005_v17 = vld [vmem:[%s8463_s1 + $0x408] sm:$0x3f] }
 0x3a9   :  { %v1179_v44 = vpop.permute.xlu1 %1178  ;;  %v1181_v15 = vpop.permute.xlu0 %1180 }
 0x3aa   :  { %v1197_v19 = vmul.f32 %v1179_v44, %v4687_v57  ;;  %v1198_v25 = vmul.f32 %v1181_v15, %v4678_v52  ;;  %v1203_v52 = vmul.f32 %v1175_v38, %v4713_v37  ;;  %v4010_v38 = vld [vmem:[%s8463_s1 + $0x430] sm:$0xff] }
 0x3ac   :  { %1234 = vrot.lane.b32.xlu1 %v1197_v19, %s4281_s18  ;;  %1236 = vrot.lane.b32.xlu0 %v1198_v25, %s4281_s18  ;;  %v1204_v25 = vmul.f32 %v1177_v35, %v4704_v46  ;;  %v4004_v19 = vld [vmem:[%s8463_s1 + $0x400] sm:$0xff]  ;;  %v4009_v35 = vld [vmem:[%s8463_s1 + $0x428] sm:$0x3f] }
 0x3ad   :  { %v1183_v45 = vpop.permute.xlu1 %1182 }
 0x3ae   :  { %v1199_v16 = vmul.f32 %v1183_v45, %v4687_v57  ;;  %v1206_v57 = vmul.f32 %v1181_v15, %v4704_v46  ;;  %v1207_v20 = vmul.f32 %v1183_v45, %v4713_v37  ;;  %v4006_v46 = vld [vmem:[%s8463_s1 + $0x410] sm:$0xff]  ;;  %v4008_v15 = vld [vmem:[%s8463_s1 + $0x420] sm:$0xff] }
 0x3b0   :  { %1238 = vrot.lane.b32.xlu1 %v1199_v16, %s4281_s18  ;;  %1240 = vrot.lane.b32.xlu0 %v1200_v56, %s4281_s18  ;;  %v1205_v16 = vmul.f32 %v1179_v44, %v4713_v37  ;;  %v4007_v37 = vld [vmem:[%s8463_s1 + $0x418] sm:$0x3f] }
 0x3b4   :  { %1242 = vrot.lane.b32.xlu1 %v1201_v21, %s4281_s18  ;;  %1244 = vrot.lane.b32.xlu0 %v1202_v18, %s4281_s18 }
 0x3b8   :  { %1246 = vrot.lane.b32.xlu1 %v1203_v52, %s4281_s18  ;;  %1248 = vrot.lane.b32.xlu0 %v1204_v25, %s4281_s18 }
 0x3bc   :  { %1250 = vrot.lane.b32.xlu1 %v1205_v16, %s4281_s18  ;;  %1252 = vrot.lane.b32.xlu0 %v1206_v57, %s4281_s18 }
 0x3c0   :  { %1254 = vrot.lane.b32.xlu1 %v1207_v20, %s4281_s18  ;;  %1487 = vrot.lane.b32.xlu0 %v4004_v19, %s4278_s13 }
 0x3c4   :  { %1489 = vrot.lane.b32.xlu1 %v4005_v17, %s4278_s13  ;;  %1491 = vrot.lane.b32.xlu0 %v4006_v46, %s4278_s13 }
 0x3c8   :  { %1493 = vrot.lane.b32.xlu1 %v4007_v37, %s4278_s13  ;;  %1495 = vrot.lane.b32.xlu0 %v4008_v15, %s4278_s13 }
 0x3cc   :  { %1497 = vrot.lane.b32.xlu1 %v4009_v35, %s4278_s13  ;;  %1499 = vrot.lane.b32.xlu0 %v4010_v38, %s4278_s13  ;;  %v5178_v35 = vld [vmem:[%s8464_s0 + $0x1] sm:$0xff] }
 0x3d0   :  { %1501 = vrot.lane.b32.xlu1 %v4011_v8, %s4278_s13 }
 0x412   :  { %v5145_v44 = vpop.permute.xlu0 %1224 }
 0x413   :  { %8639 = vst [vmem:[#allocation100_spill] sm:$0xff] %v5145_v44 }
 0x416   :  { %v5147_v45 = vpop.permute.xlu1 %1226  ;;  %v5149_v56 = vpop.permute.xlu0 %1228 }
 0x417   :  { %8640 = vst [vmem:[#allocation101_spill] sm:$0xff] %v5147_v45  ;;  %8641 = vst [vmem:[#allocation102_spill] sm:$0xff] %v5149_v56 }
 0x41a   :  { %v5151_v21 = vpop.permute.xlu1 %1230  ;;  %v5153_v18 = vpop.permute.xlu0 %1232 }
 0x41b   :  { %8642 = vst [vmem:[#allocation103_spill] sm:$0xff] %v5151_v21  ;;  %8643 = vst [vmem:[#allocation104_spill] sm:$0xff] %v5153_v18 }
 0x41e   :  { %v5155_v52 = vpop.permute.xlu1 %1234  ;;  %v5157_v25 = vpop.permute.xlu0 %1236 }
 0x41f   :  { %8644 = vst [vmem:[#allocation105_spill] sm:$0xff] %v5155_v52  ;;  %8645 = vst [vmem:[#allocation106_spill] sm:$0xff] %v5157_v25 }
 0x422   :  { %v5159_v16 = vpop.permute.xlu1 %1238  ;;  %v5161_v57 = vpop.permute.xlu0 %1240 }
 0x423   :  { %8646 = vst [vmem:[#allocation107_spill] sm:$0xff] %v5159_v16  ;;  %8647 = vst [vmem:[#allocation108_spill] sm:$0xff] %v5161_v57 }
 0x426   :  { %v5163_v19 = vpop.permute.xlu1 %1242  ;;  %v5165_v20 = vpop.permute.xlu0 %1244 }
 0x427   :  { %8648 = vst [vmem:[#allocation109_spill] sm:$0xff] %v5163_v19  ;;  %8649 = vst [vmem:[#allocation110_spill] sm:$0xff] %v5165_v20 }
 0x42a   :  { %v5167_v17 = vpop.permute.xlu1 %1246  ;;  %v5169_v46 = vpop.permute.xlu0 %1248 }
 0x42b   :  { %8650 = vst [vmem:[#allocation111_spill] sm:$0xff] %v5167_v17  ;;  %8651 = vst [vmem:[#allocation112_spill] sm:$0xff] %v5169_v46  ;;  %v5187_v46 = vld [vmem:[%s8464_s0 + $0x9] sm:$0x3f] }
 0x42e   :  { %v5171_v37 = vpop.permute.xlu1 %1250  ;;  %v5173_v15 = vpop.permute.xlu0 %1252 }
 0x42f   :  { %8652 = vst [vmem:[#allocation113_spill] sm:$0xff] %v5171_v37 }
 0x432   :  { %v5180_v38 = vpop.permute.xlu1 %1254  ;;  %v1488_v8 = vpop.permute.xlu0 %1487 }
 0x433   :  { %v1511_v19 = vmul.f32 %v5178_v35, %v1488_v8 }
 0x435   :  { %1543 = vrot.lane.b32.xlu0 %v1511_v19, %s4279_s7 }
 0x436   :  { %v1490_v37 = vpop.permute.xlu1 %1489  ;;  %v1492_v17 = vpop.permute.xlu0 %1491 }
 0x437   :  { %v1512_v20 = vmul.f32 %v5187_v46, %v1490_v37  ;;  %v1513_v57 = vmul.f32 %v5178_v35, %v1492_v17 }
 0x439   :  { %1545 = vrot.lane.b32.xlu1 %v1512_v20, %s4279_s7  ;;  %1547 = vrot.lane.b32.xlu0 %v1513_v57, %s4279_s7  ;;  %v5204_v57 = vld [vmem:[%s8464_s0 + $0x41] sm:$0xff] }
 0x43a   :  { %v1494_v16 = vpop.permute.xlu1 %1493  ;;  %v1496_v25 = vpop.permute.xlu0 %1495  ;;  %v1521_v6 = vmul.f32 %v5204_v57, %v1492_v17  ;;  %v4017_v17 = vld [vmem:[%s8463_s1 + $0x468] sm:$0x3f] }
 0x43b   :  { %v1514_v52 = vmul.f32 %v5187_v46, %v1494_v16  ;;  %v1515_v19 = vmul.f32 %v5178_v35, %v1496_v25  ;;  %v1523_v4 = vmul.f32 %v5204_v57, %v1496_v25  ;;  %v4016_v25 = vld [vmem:[%s8463_s1 + $0x460] sm:$0xff] }
 0x43d   :  { %1549 = vrot.lane.b32.xlu1 %v1514_v52, %s4279_s7  ;;  %1551 = vrot.lane.b32.xlu0 %v1515_v19, %s4279_s7  ;;  %v1519_v52 = vmul.f32 %v5204_v57, %v1488_v8 }
 0x43e   :  { %v1498_v18 = vpop.permute.xlu1 %1497  ;;  %v1500_v21 = vpop.permute.xlu0 %1499 }
 0x43f   :  { %v1516_v9 = vmul.f32 %v5187_v46, %v1498_v18  ;;  %v1517_v7 = vmul.f32 %v5178_v35, %v1500_v21 }
 0x441   :  { %1553 = vrot.lane.b32.xlu1 %v1516_v9, %s4279_s7  ;;  %1555 = vrot.lane.b32.xlu0 %v1517_v7, %s4279_s7  ;;  %v5213_v9 = vld [vmem:[%s8464_s0 + $0x49] sm:$0x3f] }
 0x442   :  { %v1502_v20 = vpop.permute.xlu1 %1501  ;;  %v1520_v7 = vmul.f32 %v5213_v9, %v1490_v37  ;;  %v1522_v8 = vmul.f32 %v5213_v9, %v1494_v16  ;;  %v4018_v37 = vld [vmem:[%s8463_s1 + $0x470] sm:$0xff] }
 0x443   :  { %v1518_v19 = vmul.f32 %v5187_v46, %v1502_v20  ;;  %v1526_v16 = vmul.f32 %v5213_v9, %v1502_v20  ;;  %v4019_v20 = vld [vmem:[%s8463_s1 + $0x478] sm:$0x3f] }
 0x445   :  { %1557 = vrot.lane.b32.xlu1 %v1518_v19, %s4279_s7  ;;  %1559 = vrot.lane.b32.xlu0 %v1519_v52, %s4279_s7  ;;  %v1524_v52 = vmul.f32 %v5213_v9, %v1498_v18  ;;  %v1525_v19 = vmul.f32 %v5204_v57, %v1500_v21  ;;  %v4014_v21 = vld [vmem:[%s8463_s1 + $0x450] sm:$0xff]  ;;  %v4015_v18 = vld [vmem:[%s8463_s1 + $0x458] sm:$0x3f] }
 0x449   :  { %1561 = vrot.lane.b32.xlu1 %v1520_v7, %s4279_s7  ;;  %1563 = vrot.lane.b32.xlu0 %v1521_v6, %s4279_s7  ;;  %v4012_v6 = vld [vmem:[%s8463_s1 + $0x440] sm:$0xff] }
 0x44d   :  { %1565 = vrot.lane.b32.xlu1 %v1522_v8, %s4279_s7  ;;  %1567 = vrot.lane.b32.xlu0 %v1523_v4, %s4279_s7  ;;  %v4013_v4 = vld [vmem:[%s8463_s1 + $0x448] sm:$0x3f] }
 0x451   :  { %1569 = vrot.lane.b32.xlu1 %v1524_v52, %s4279_s7  ;;  %1571 = vrot.lane.b32.xlu0 %v1525_v19, %s4279_s7 }
 0x455   :  { %1573 = vrot.lane.b32.xlu1 %v1526_v16, %s4279_s7  ;;  %1624 = vrot.lane.b32.xlu0 %v4012_v6, %s4278_s13 }
 0x459   :  { %1626 = vrot.lane.b32.xlu1 %v4013_v4, %s4278_s13  ;;  %1628 = vrot.lane.b32.xlu0 %v4014_v21, %s4278_s13 }
 0x45d   :  { %1630 = vrot.lane.b32.xlu1 %v4015_v18, %s4278_s13  ;;  %1632 = vrot.lane.b32.xlu0 %v4016_v25, %s4278_s13 }
 0x461   :  { %1634 = vrot.lane.b32.xlu1 %v4017_v17, %s4278_s13  ;;  %1636 = vrot.lane.b32.xlu0 %v4018_v37, %s4278_s13 }
 0x465   :  { %1638 = vrot.lane.b32.xlu1 %v4019_v20, %s4278_s13 }
 0x4a7   :  { %v5261_v7 = vpop.permute.xlu0 %1543 }
 0x4a8   :  { %8653 = vst [vmem:[#allocation114_spill] sm:$0xff] %v5261_v7 }
 0x4ab   :  { %v5263_v8 = vpop.permute.xlu1 %1545  ;;  %v5265_v52 = vpop.permute.xlu0 %1547 }
 0x4ac   :  { %8654 = vst [vmem:[#allocation115_spill] sm:$0xff] %v5263_v8  ;;  %8655 = vst [vmem:[#allocation116_spill] sm:$0xff] %v5265_v52 }
 0x4af   :  { %v5267_v19 = vpop.permute.xlu1 %1549  ;;  %v5269_v6 = vpop.permute.xlu0 %1551 }
 0x4b0   :  { %8656 = vst [vmem:[#allocation117_spill] sm:$0xff] %v5267_v19  ;;  %8657 = vst [vmem:[#allocation118_spill] sm:$0xff] %v5269_v6 }
 0x4b3   :  { %v5271_v16 = vpop.permute.xlu1 %1553  ;;  %v5273_v4 = vpop.permute.xlu0 %1555 }
 0x4b4   :  { %8658 = vst [vmem:[#allocation119_spill] sm:$0xff] %v5271_v16  ;;  %8659 = vst [vmem:[#allocation120_spill] sm:$0xff] %v5273_v4  ;;  %v5294_v4 = vld [vmem:[%s8464_s0 + $0x11] sm:$0xff] }
 0x4b7   :  { %v5275_v21 = vpop.permute.xlu1 %1557  ;;  %v5277_v18 = vpop.permute.xlu0 %1559 }
 0x4b8   :  { %8660 = vst [vmem:[#allocation121_spill] sm:$0xff] %v5275_v21  ;;  %8661 = vst [vmem:[#allocation122_spill] sm:$0xff] %v5277_v18 }
 0x4bb   :  { %v5279_v25 = vpop.permute.xlu1 %1561  ;;  %v5281_v17 = vpop.permute.xlu0 %1563 }
 0x4bc   :  { %8662 = vst [vmem:[#allocation123_spill] sm:$0xff] %v5279_v25  ;;  %8663 = vst [vmem:[#allocation124_spill] sm:$0xff] %v5281_v17 }
 0x4bf   :  { %v5283_v37 = vpop.permute.xlu1 %1565  ;;  %v5285_v20 = vpop.permute.xlu0 %1567 }
 0x4c0   :  { %8664 = vst [vmem:[#allocation125_spill] sm:$0xff] %v5283_v37  ;;  %8665 = vst [vmem:[#allocation126_spill] sm:$0xff] %v5285_v20  ;;  %v5303_v20 = vld [vmem:[%s8464_s0 + $0x19] sm:$0x3f] }
 0x4c3   :  { %v5287_v3 = vpop.permute.xlu1 %1569  ;;  %v5289_v19 = vpop.permute.xlu0 %1571 }
 0x4c4   :  { %8666 = vst [vmem:[#allocation127_spill] sm:$0xff] %v5287_v3 }
 0x4c7   :  { %v5296_v21 = vpop.permute.xlu1 %1573  ;;  %v1625_v18 = vpop.permute.xlu0 %1624 }
 0x4c8   :  { %v1648_v25 = vmul.f32 %v5294_v4, %v1625_v18 }
 0x4ca   :  { %1680 = vrot.lane.b32.xlu0 %v1648_v25, %s4279_s7 }
 0x4cb   :  { %v1627_v3 = vpop.permute.xlu1 %1626  ;;  %v1629_v37 = vpop.permute.xlu0 %1628 }
 0x4cc   :  { %v1649_v17 = vmul.f32 %v5303_v20, %v1627_v3  ;;  %v1650_v16 = vmul.f32 %v5294_v4, %v1629_v37 }
 0x4ce   :  { %1682 = vrot.lane.b32.xlu1 %v1649_v17, %s4279_s7  ;;  %1684 = vrot.lane.b32.xlu0 %v1650_v16, %s4279_s7  ;;  %v5320_v16 = vld [vmem:[%s8464_s0 + $0x51] sm:$0xff] }
 0x4cf   :  { %v1631_v6 = vpop.permute.xlu1 %1630  ;;  %v1633_v2 = vpop.permute.xlu0 %1632  ;;  %v1658_v52 = vmul.f32 %v5320_v16, %v1629_v37  ;;  %v4026_v37 = vld [vmem:[%s8463_s1 + $0x4b0] sm:$0xff] }
 0x4d0   :  { %v1651_v1 = vmul.f32 %v5303_v20, %v1631_v6  ;;  %v1652_v25 = vmul.f32 %v5294_v4, %v1633_v2  ;;  %v1660_v8 = vmul.f32 %v5320_v16, %v1633_v2  ;;  %v4023_v2 = vld [vmem:[%s8463_s1 + $0x498] sm:$0x3f] }
 0x4d2   :  { %1686 = vrot.lane.b32.xlu1 %v1651_v1, %s4279_s7  ;;  %1688 = vrot.lane.b32.xlu0 %v1652_v25, %s4279_s7  ;;  %v1656_v1 = vmul.f32 %v5320_v16, %v1625_v18 }
 0x4d3   :  { %v1635_v0 = vpop.permute.xlu1 %1634  ;;  %v1637_v63 = vpop.permute.xlu0 %1636 }
 0x4d4   :  { %v1653_v62 = vmul.f32 %v5303_v20, %v1635_v0  ;;  %v1654_v61 = vmul.f32 %v5294_v4, %v1637_v63 }
 0x4d6   :  { %1690 = vrot.lane.b32.xlu1 %v1653_v62, %s4279_s7  ;;  %1692 = vrot.lane.b32.xlu0 %v1654_v61, %s4279_s7  ;;  %v5329_v62 = vld [vmem:[%s8464_s0 + $0x59] sm:$0x3f] }
 0x4d7   :  { %v1639_v17 = vpop.permute.xlu1 %1638  ;;  %v1657_v61 = vmul.f32 %v5329_v62, %v1627_v3  ;;  %v1659_v18 = vmul.f32 %v5329_v62, %v1631_v6  ;;  %v4020_v3 = vld [vmem:[%s8463_s1 + $0x480] sm:$0xff]  ;;  %v4025_v6 = vld [vmem:[%s8463_s1 + $0x4a8] sm:$0x3f] }
 0x4d8   :  { %v1655_v25 = vmul.f32 %v5303_v20, %v1639_v17 }
 0x4da   :  { %1694 = vrot.lane.b32.xlu1 %v1655_v25, %s4279_s7  ;;  %1696 = vrot.lane.b32.xlu0 %v1656_v1, %s4279_s7  ;;  %v1661_v1 = vmul.f32 %v5329_v62, %v1635_v0  ;;  %v1662_v25 = vmul.f32 %v5320_v16, %v1637_v63  ;;  %v4021_v0 = vld [vmem:[%s8463_s1 + $0x488] sm:$0x3f]  ;;  %v4022_v63 = vld [vmem:[%s8463_s1 + $0x490] sm:$0xff] }
 0x4de   :  { %1698 = vrot.lane.b32.xlu1 %v1657_v61, %s4279_s7  ;;  %1700 = vrot.lane.b32.xlu0 %v1658_v52, %s4279_s7  ;;  %v1663_v52 = vmul.f32 %v5329_v62, %v1639_v17  ;;  %v4027_v17 = vld [vmem:[%s8463_s1 + $0x4b8] sm:$0x3f] }
 0x4e2   :  { %1702 = vrot.lane.b32.xlu1 %v1659_v18, %s4279_s7  ;;  %1704 = vrot.lane.b32.xlu0 %v1660_v8, %s4279_s7  ;;  %v4024_v8 = vld [vmem:[%s8463_s1 + $0x4a0] sm:$0xff] }
 0x4e6   :  { %1706 = vrot.lane.b32.xlu1 %v1661_v1, %s4279_s7  ;;  %1708 = vrot.lane.b32.xlu0 %v1662_v25, %s4279_s7 }
 0x4ea   :  { %1710 = vrot.lane.b32.xlu1 %v1663_v52, %s4279_s7  ;;  %1761 = vrot.lane.b32.xlu0 %v4020_v3, %s4278_s13 }
 0x4ee   :  { %1763 = vrot.lane.b32.xlu1 %v4021_v0, %s4278_s13  ;;  %1765 = vrot.lane.b32.xlu0 %v4022_v63, %s4278_s13 }
 0x4f2   :  { %1767 = vrot.lane.b32.xlu1 %v4023_v2, %s4278_s13  ;;  %1769 = vrot.lane.b32.xlu0 %v4024_v8, %s4278_s13 }
 0x4f6   :  { %1771 = vrot.lane.b32.xlu1 %v4025_v6, %s4278_s13  ;;  %1773 = vrot.lane.b32.xlu0 %v4026_v37, %s4278_s13 }
 0x4fa   :  { %1775 = vrot.lane.b32.xlu1 %v4027_v17, %s4278_s13 }
 0x53c   :  { %v5377_v61 = vpop.permute.xlu0 %1680 }
 0x53d   :  { %8667 = vst [vmem:[#allocation128_spill] sm:$0xff] %v5377_v61 }
 0x540   :  { %v5379_v18 = vpop.permute.xlu1 %1682  ;;  %v5381_v1 = vpop.permute.xlu0 %1684 }
 0x541   :  { %8668 = vst [vmem:[#allocation129_spill] sm:$0xff] %v5379_v18  ;;  %8669 = vst [vmem:[#allocation130_spill] sm:$0xff] %v5381_v1 }
 0x544   :  { %v5383_v25 = vpop.permute.xlu1 %1686  ;;  %v5385_v3 = vpop.permute.xlu0 %1688 }
 0x545   :  { %8670 = vst [vmem:[#allocation131_spill] sm:$0xff] %v5383_v25  ;;  %8671 = vst [vmem:[#allocation132_spill] sm:$0xff] %v5385_v3 }
 0x548   :  { %v5387_v52 = vpop.permute.xlu1 %1690  ;;  %v5389_v0 = vpop.permute.xlu0 %1692 }
 0x549   :  { %8672 = vst [vmem:[#allocation133_spill] sm:$0xff] %v5387_v52  ;;  %8673 = vst [vmem:[#allocation134_spill] sm:$0xff] %v5389_v0  ;;  %v5410_v0 = vld [vmem:[%s8464_s0 + $0x21] sm:$0xff] }
 0x54c   :  { %v5391_v63 = vpop.permute.xlu1 %1694  ;;  %v5393_v2 = vpop.permute.xlu0 %1696 }
 0x54d   :  { %8674 = vst [vmem:[#allocation135_spill] sm:$0xff] %v5391_v63  ;;  %8675 = vst [vmem:[#allocation136_spill] sm:$0xff] %v5393_v2 }
 0x550   :  { %v5395_v8 = vpop.permute.xlu1 %1698  ;;  %v5397_v6 = vpop.permute.xlu0 %1700 }
 0x551   :  { %8676 = vst [vmem:[#allocation137_spill] sm:$0xff] %v5395_v8  ;;  %8677 = vst [vmem:[#allocation138_spill] sm:$0xff] %v5397_v6 }
 0x554   :  { %v5399_v37 = vpop.permute.xlu1 %1702  ;;  %v5401_v17 = vpop.permute.xlu0 %1704 }
 0x555   :  { %8678 = vst [vmem:[#allocation139_spill] sm:$0xff] %v5399_v37  ;;  %8679 = vst [vmem:[#allocation140_spill] sm:$0xff] %v5401_v17  ;;  %v5419_v17 = vld [vmem:[%s8464_s0 + $0x29] sm:$0x3f] }
 0x558   :  { %v5403_v1 = vpop.permute.xlu1 %1706  ;;  %v5405_v25 = vpop.permute.xlu0 %1708 }
 0x559   :  { %8680 = vst [vmem:[#allocation141_spill] sm:$0xff] %v5403_v1 }
 0x55c   :  { %v5412_v63 = vpop.permute.xlu1 %1710  ;;  %v1762_v2 = vpop.permute.xlu0 %1761 }
 0x55d   :  { %v1785_v8 = vmul.f32 %v5410_v0, %v1762_v2 }
 0x55f   :  { %1817 = vrot.lane.b32.xlu0 %v1785_v8, %s4279_s7 }
 0x560   :  { %v1764_v1 = vpop.permute.xlu1 %1763  ;;  %v1766_v37 = vpop.permute.xlu0 %1765 }
 0x561   :  { %v1786_v6 = vmul.f32 %v5419_v17, %v1764_v1  ;;  %v1787_v52 = vmul.f32 %v5410_v0, %v1766_v37 }
 0x563   :  { %1819 = vrot.lane.b32.xlu1 %v1786_v6, %s4279_s7  ;;  %1821 = vrot.lane.b32.xlu0 %v1787_v52, %s4279_s7  ;;  %v5436_v52 = vld [vmem:[%s8464_s0 + $0x61] sm:$0xff] }
 0x564   :  { %v1768_v3 = vpop.permute.xlu1 %1767  ;;  %v1770_v18 = vpop.permute.xlu0 %1769  ;;  %v1795_v39 = vmul.f32 %v5436_v52, %v1766_v37  ;;  %v4034_v37 = vld [vmem:[%s8463_s1 + $0x4f0] sm:$0xff] }
 0x565   :  { %v1788_v61 = vmul.f32 %v5419_v17, %v1768_v3  ;;  %v1789_v8 = vmul.f32 %v5410_v0, %v1770_v18  ;;  %v1797_v44 = vmul.f32 %v5436_v52, %v1770_v18  ;;  %v4032_v18 = vld [vmem:[%s8463_s1 + $0x4e0] sm:$0xff] }
 0x567   :  { %1823 = vrot.lane.b32.xlu1 %v1788_v61, %s4279_s7  ;;  %1825 = vrot.lane.b32.xlu0 %v1789_v8, %s4279_s7  ;;  %v1793_v61 = vmul.f32 %v5436_v52, %v1762_v2 }
 0x568   :  { %v1772_v7 = vpop.permute.xlu1 %1771  ;;  %v1774_v56 = vpop.permute.xlu0 %1773 }
 0x569   :  { %v1790_v45 = vmul.f32 %v5419_v17, %v1772_v7  ;;  %v1791_v28 = vmul.f32 %v5410_v0, %v1774_v56 }
 0x56b   :  { %1827 = vrot.lane.b32.xlu1 %v1790_v45, %s4279_s7  ;;  %1829 = vrot.lane.b32.xlu0 %v1791_v28, %s4279_s7  ;;  %v5445_v45 = vld [vmem:[%s8464_s0 + $0x69] sm:$0x3f] }
 0x56c   :  { %v1776_v6 = vpop.permute.xlu1 %1775  ;;  %v1794_v28 = vmul.f32 %v5445_v45, %v1764_v1  ;;  %v1796_v2 = vmul.f32 %v5445_v45, %v1768_v3  ;;  %v4033_v3 = vld [vmem:[%s8463_s1 + $0x4e8] sm:$0x3f] }
 0x56d   :  { %v1792_v8 = vmul.f32 %v5419_v17, %v1776_v6  ;;  %v1800_v1 = vmul.f32 %v5445_v45, %v1776_v6  ;;  %v4035_v6 = vld [vmem:[%s8463_s1 + $0x4f8] sm:$0x3f] }
 0x56f   :  { %1831 = vrot.lane.b32.xlu1 %v1792_v8, %s4279_s7  ;;  %1833 = vrot.lane.b32.xlu0 %v1793_v61, %s4279_s7  ;;  %v1798_v61 = vmul.f32 %v5445_v45, %v1772_v7  ;;  %v1799_v8 = vmul.f32 %v5436_v52, %v1774_v56  ;;  %v4030_v56 = vld [vmem:[%s8463_s1 + $0x4d0] sm:$0xff]  ;;  %v4031_v7 = vld [vmem:[%s8463_s1 + $0x4d8] sm:$0x3f] }
 0x573   :  { %1835 = vrot.lane.b32.xlu1 %v1794_v28, %s4279_s7  ;;  %1837 = vrot.lane.b32.xlu0 %v1795_v39, %s4279_s7  ;;  %v4028_v39 = vld [vmem:[%s8463_s1 + $0x4c0] sm:$0xff] }
 0x577   :  { %1839 = vrot.lane.b32.xlu1 %v1796_v2, %s4279_s7  ;;  %1841 = vrot.lane.b32.xlu0 %v1797_v44, %s4279_s7  ;;  %v4029_v44 = vld [vmem:[%s8463_s1 + $0x4c8] sm:$0x3f] }
 0x57b   :  { %1843 = vrot.lane.b32.xlu1 %v1798_v61, %s4279_s7  ;;  %1845 = vrot.lane.b32.xlu0 %v1799_v8, %s4279_s7 }
 0x57f   :  { %1847 = vrot.lane.b32.xlu1 %v1800_v1, %s4279_s7  ;;  %1898 = vrot.lane.b32.xlu0 %v4028_v39, %s4278_s13 }
 0x583   :  { %1900 = vrot.lane.b32.xlu1 %v4029_v44, %s4278_s13  ;;  %1902 = vrot.lane.b32.xlu0 %v4030_v56, %s4278_s13 }
 0x587   :  { %1904 = vrot.lane.b32.xlu1 %v4031_v7, %s4278_s13  ;;  %1906 = vrot.lane.b32.xlu0 %v4032_v18, %s4278_s13 }
 0x58b   :  { %1908 = vrot.lane.b32.xlu1 %v4033_v3, %s4278_s13  ;;  %1910 = vrot.lane.b32.xlu0 %v4034_v37, %s4278_s13 }
 0x58f   :  { %1912 = vrot.lane.b32.xlu1 %v4035_v6, %s4278_s13 }
 0x5d1   :  { %v5493_v28 = vpop.permute.xlu0 %1817 }
 0x5d2   :  { %8681 = vst [vmem:[#allocation142_spill] sm:$0xff] %v5493_v28 }
 0x5d5   :  { %v5495_v2 = vpop.permute.xlu1 %1819  ;;  %v5497_v61 = vpop.permute.xlu0 %1821 }
 0x5d6   :  { %8682 = vst [vmem:[#allocation143_spill] sm:$0xff] %v5495_v2  ;;  %8683 = vst [vmem:[#allocation144_spill] sm:$0xff] %v5497_v61 }
 0x5d9   :  { %v5499_v8 = vpop.permute.xlu1 %1823  ;;  %v5501_v39 = vpop.permute.xlu0 %1825 }
 0x5da   :  { %8684 = vst [vmem:[#allocation145_spill] sm:$0xff] %v5499_v8  ;;  %8685 = vst [vmem:[#allocation146_spill] sm:$0xff] %v5501_v39 }
 0x5dd   :  { %v5503_v1 = vpop.permute.xlu1 %1827  ;;  %v5505_v44 = vpop.permute.xlu0 %1829 }
 0x5de   :  { %8686 = vst [vmem:[#allocation147_spill] sm:$0xff] %v5503_v1  ;;  %8687 = vst [vmem:[#allocation148_spill] sm:$0xff] %v5505_v44  ;;  %v5526_v44 = vld [vmem:[%s8464_s0 + $0x31] sm:$0xff] }
 0x5e1   :  { %v5507_v56 = vpop.permute.xlu1 %1831  ;;  %v5509_v7 = vpop.permute.xlu0 %1833 }
 0x5e2   :  { %8688 = vst [vmem:[#allocation149_spill] sm:$0xff] %v5507_v56  ;;  %8689 = vst [vmem:[#allocation150_spill] sm:$0xff] %v5509_v7 }
 0x5e5   :  { %v5511_v18 = vpop.permute.xlu1 %1835  ;;  %v5513_v3 = vpop.permute.xlu0 %1837 }
 0x5e6   :  { %8690 = vst [vmem:[#allocation151_spill] sm:$0xff] %v5511_v18  ;;  %8691 = vst [vmem:[#allocation152_spill] sm:$0xff] %v5513_v3 }
 0x5e9   :  { %v5515_v37 = vpop.permute.xlu1 %1839  ;;  %v5517_v6 = vpop.permute.xlu0 %1841 }
 0x5ea   :  { %8692 = vst [vmem:[#allocation153_spill] sm:$0xff] %v5515_v37  ;;  %8693 = vst [vmem:[#allocation154_spill] sm:$0xff] %v5517_v6  ;;  %v5535_v6 = vld [vmem:[%s8464_s0 + $0x39] sm:$0x3f] }
 0x5ed   :  { %v5519_v61 = vpop.permute.xlu1 %1843  ;;  %v5521_v8 = vpop.permute.xlu0 %1845 }
 0x5ee   :  { %8694 = vst [vmem:[#allocation155_spill] sm:$0xff] %v5519_v61 }
 0x5f1   :  { %v5528_v56 = vpop.permute.xlu1 %1847  ;;  %v1899_v7 = vpop.permute.xlu0 %1898 }
 0x5f2   :  { %v1922_v18 = vmul.f32 %v5526_v44, %v1899_v7 }
 0x5f4   :  { %1954 = vrot.lane.b32.xlu0 %v1922_v18, %s4279_s7 }
 0x5f5   :  { %v1901_v61 = vpop.permute.xlu1 %1900  ;;  %v1903_v37 = vpop.permute.xlu0 %1902 }
 0x5f6   :  { %v1923_v3 = vmul.f32 %v5535_v6, %v1901_v61  ;;  %v1924_v1 = vmul.f32 %v5526_v44, %v1903_v37 }
 0x5f8   :  { %1956 = vrot.lane.b32.xlu1 %v1923_v3, %s4279_s7  ;;  %1958 = vrot.lane.b32.xlu0 %v1924_v1, %s4279_s7  ;;  %v5552_v1 = vld [vmem:[%s8464_s0 + $0x71] sm:$0xff] }
 0x5f9   :  { %v1905_v39 = vpop.permute.xlu1 %1904  ;;  %v1907_v2 = vpop.permute.xlu0 %1906  ;;  %v1932_v48 = vmul.f32 %v5552_v1, %v1903_v37  ;;  %v4042_v37 = vld [vmem:[%s8463_s1 + $0x530] sm:$0xff] }
 0x5fa   :  { %v1925_v28 = vmul.f32 %v5535_v6, %v1905_v39  ;;  %v1926_v18 = vmul.f32 %v5526_v44, %v1907_v2  ;;  %v1934_v47 = vmul.f32 %v5552_v1, %v1907_v2  ;;  %v4040_v2 = vld [vmem:[%s8463_s1 + $0x520] sm:$0xff] }
 0x5fc   :  { %1960 = vrot.lane.b32.xlu1 %v1925_v28, %s4279_s7  ;;  %1962 = vrot.lane.b32.xlu0 %v1926_v18, %s4279_s7  ;;  %v1930_v28 = vmul.f32 %v5552_v1, %v1899_v7 }
 0x5fd   :  { %v1909_v26 = vpop.permute.xlu1 %1908  ;;  %v1911_v22 = vpop.permute.xlu0 %1910 }
 0x5fe   :  { %v1927_v43 = vmul.f32 %v5535_v6, %v1909_v26  ;;  %v1928_v49 = vmul.f32 %v5526_v44, %v1911_v22 }
 0x600   :  { %1964 = vrot.lane.b32.xlu1 %v1927_v43, %s4279_s7  ;;  %1966 = vrot.lane.b32.xlu0 %v1928_v49, %s4279_s7  ;;  %v5561_v43 = vld [vmem:[%s8464_s0 + $0x79] sm:$0x3f] }
 0x601   :  { %v1913_v3 = vpop.permute.xlu1 %1912  ;;  %v1931_v49 = vmul.f32 %v5561_v43, %v1901_v61  ;;  %v1933_v7 = vmul.f32 %v5561_v43, %v1905_v39  ;;  %v4041_v39 = vld [vmem:[%s8463_s1 + $0x528] sm:$0x3f] }
 0x602   :  { %v1929_v18 = vmul.f32 %v5535_v6, %v1913_v3  ;;  %v1937_v61 = vmul.f32 %v5561_v43, %v1913_v3  ;;  %v4043_v3 = vld [vmem:[%s8463_s1 + $0x538] sm:$0x3f] }
 0x604   :  { %1968 = vrot.lane.b32.xlu1 %v1929_v18, %s4279_s7  ;;  %1970 = vrot.lane.b32.xlu0 %v1930_v28, %s4279_s7  ;;  %v1935_v28 = vmul.f32 %v5561_v43, %v1909_v26  ;;  %v1936_v18 = vmul.f32 %v5552_v1, %v1911_v22  ;;  %v4038_v22 = vld [vmem:[%s8463_s1 + $0x510] sm:$0xff]  ;;  %v4039_v26 = vld [vmem:[%s8463_s1 + $0x518] sm:$0x3f] }
 0x608   :  { %1972 = vrot.lane.b32.xlu1 %v1931_v49, %s4279_s7  ;;  %1974 = vrot.lane.b32.xlu0 %v1932_v48, %s4279_s7  ;;  %v4036_v48 = vld [vmem:[%s8463_s1 + $0x500] sm:$0xff] }
 0x60c   :  { %1976 = vrot.lane.b32.xlu1 %v1933_v7, %s4279_s7  ;;  %1978 = vrot.lane.b32.xlu0 %v1934_v47, %s4279_s7  ;;  %v4037_v47 = vld [vmem:[%s8463_s1 + $0x508] sm:$0x3f] }
 0x610   :  { %1980 = vrot.lane.b32.xlu1 %v1935_v28, %s4279_s7  ;;  %1982 = vrot.lane.b32.xlu0 %v1936_v18, %s4279_s7 }
 0x614   :  { %1984 = vrot.lane.b32.xlu1 %v1937_v61, %s4279_s7  ;;  %2035 = vrot.lane.b32.xlu0 %v4036_v48, %s4280_s29 }
 0x618   :  { %2037 = vrot.lane.b32.xlu1 %v4037_v47, %s4280_s29  ;;  %2039 = vrot.lane.b32.xlu0 %v4038_v22, %s4280_s29 }
 0x61c   :  { %2041 = vrot.lane.b32.xlu1 %v4039_v26, %s4280_s29  ;;  %2043 = vrot.lane.b32.xlu0 %v4040_v2, %s4280_s29 }
 0x620   :  { %2045 = vrot.lane.b32.xlu1 %v4041_v39, %s4280_s29  ;;  %2047 = vrot.lane.b32.xlu0 %v4042_v37, %s4280_s29 }
 0x624   :  { %2049 = vrot.lane.b32.xlu1 %v4043_v3, %s4280_s29 }
 0x666   :  { %v5609_v49 = vpop.permute.xlu0 %1954 }
 0x667   :  { %8695 = vst [vmem:[#allocation156_spill] sm:$0xff] %v5609_v49 }
 0x66a   :  { %v5611_v7 = vpop.permute.xlu1 %1956  ;;  %v5613_v28 = vpop.permute.xlu0 %1958 }
 0x66b   :  { %8696 = vst [vmem:[#allocation157_spill] sm:$0xff] %v5611_v7  ;;  %8697 = vst [vmem:[#allocation158_spill] sm:$0xff] %v5613_v28 }
 0x66e   :  { %v5615_v18 = vpop.permute.xlu1 %1960  ;;  %v5617_v48 = vpop.permute.xlu0 %1962 }
 0x66f   :  { %8698 = vst [vmem:[#allocation159_spill] sm:$0xff] %v5615_v18  ;;  %8699 = vst [vmem:[#allocation160_spill] sm:$0xff] %v5617_v48 }
 0x672   :  { %v5619_v61 = vpop.permute.xlu1 %1964  ;;  %v5621_v47 = vpop.permute.xlu0 %1966 }
 0x673   :  { %8700 = vst [vmem:[#allocation161_spill] sm:$0xff] %v5619_v61  ;;  %8701 = vst [vmem:[#allocation162_spill] sm:$0xff] %v5621_v47 }
 0x676   :  { %v5623_v22 = vpop.permute.xlu1 %1968  ;;  %v5625_v26 = vpop.permute.xlu0 %1970 }
 0x677   :  { %8702 = vst [vmem:[#allocation163_spill] sm:$0xff] %v5623_v22  ;;  %8703 = vst [vmem:[#allocation164_spill] sm:$0xff] %v5625_v26 }
 0x67a   :  { %v5627_v2 = vpop.permute.xlu1 %1972  ;;  %v5629_v39 = vpop.permute.xlu0 %1974 }
 0x67b   :  { %8704 = vst [vmem:[#allocation165_spill] sm:$0xff] %v5627_v2  ;;  %8705 = vst [vmem:[#allocation166_spill] sm:$0xff] %v5629_v39 }
 0x67e   :  { %v5631_v37 = vpop.permute.xlu1 %1976  ;;  %v5633_v3 = vpop.permute.xlu0 %1978 }
 0x67f   :  { %8706 = vst [vmem:[#allocation167_spill] sm:$0xff] %v5631_v37  ;;  %8707 = vst [vmem:[#allocation168_spill] sm:$0xff] %v5633_v3 }
 0x682   :  { %v5635_v28 = vpop.permute.xlu1 %1980  ;;  %v5637_v18 = vpop.permute.xlu0 %1982 }
 0x683   :  { %8708 = vst [vmem:[#allocation169_spill] sm:$0xff] %v5635_v28 }
 0x686   :  { %v5639_v48 = vpop.permute.xlu1 %1984  ;;  %v2036_v61 = vpop.permute.xlu0 %2035 }
 0x687   :  { %v2059_v47 = vmul.f32 %v5178_v35, %v2036_v61 }
 0x689   :  { %2091 = vrot.lane.b32.xlu0 %v2059_v47, %s4281_s18 }
 0x68a   :  { %v2038_v26 = vpop.permute.xlu1 %2037  ;;  %v2040_v22 = vpop.permute.xlu0 %2039 }
 0x68b   :  { %v2060_v2 = vmul.f32 %v5187_v46, %v2038_v26  ;;  %v2061_v39 = vmul.f32 %v5178_v35, %v2040_v22 }
 0x68d   :  { %2093 = vrot.lane.b32.xlu1 %v2060_v2, %s4281_s18  ;;  %2095 = vrot.lane.b32.xlu0 %v2061_v39, %s4281_s18  ;;  %v2067_v39 = vmul.f32 %v5204_v57, %v2036_v61  ;;  %v4045_v61 = vld [vmem:[%s8463_s1 + $0x548] sm:$0x3f] }
 0x68e   :  { %v2042_v28 = vpop.permute.xlu1 %2041  ;;  %v2044_v3 = vpop.permute.xlu0 %2043 }
 0x68f   :  { %v2062_v37 = vmul.f32 %v5187_v46, %v2042_v28  ;;  %v2063_v7 = vmul.f32 %v5178_v35, %v2044_v3 }
 0x691   :  { %2097 = vrot.lane.b32.xlu1 %v2062_v37, %s4281_s18  ;;  %2099 = vrot.lane.b32.xlu0 %v2063_v7, %s4281_s18  ;;  %v2068_v7 = vmul.f32 %v5213_v9, %v2038_v26  ;;  %v2069_v37 = vmul.f32 %v5204_v57, %v2040_v22  ;;  %v4049_v22 = vld [vmem:[%s8463_s1 + $0x568] sm:$0x3f]  ;;  %v4050_v26 = vld [vmem:[%s8463_s1 + $0x570] sm:$0xff] }
 0x692   :  { %v2046_v47 = vpop.permute.xlu1 %2045  ;;  %v2048_v49 = vpop.permute.xlu0 %2047 }
 0x693   :  { %v2064_v42 = vmul.f32 %v5187_v46, %v2046_v47  ;;  %v2065_v54 = vmul.f32 %v5178_v35, %v2048_v49  ;;  %v4044_v35 = vld [vmem:[%s8463_s1 + $0x540] sm:$0xff] }
 0x695   :  { %2101 = vrot.lane.b32.xlu1 %v2064_v42, %s4281_s18  ;;  %2103 = vrot.lane.b32.xlu0 %v2065_v54, %s4281_s18  ;;  %v2070_v42 = vmul.f32 %v5213_v9, %v2042_v28  ;;  %v2071_v54 = vmul.f32 %v5204_v57, %v2044_v3  ;;  %v4051_v3 = vld [vmem:[%s8463_s1 + $0x578] sm:$0x3f] }
 0x696   :  { %v2050_v2 = vpop.permute.xlu1 %2049 }
 0x697   :  { %v2066_v27 = vmul.f32 %v5187_v46, %v2050_v2  ;;  %v2073_v46 = vmul.f32 %v5204_v57, %v2048_v49  ;;  %v2074_v28 = vmul.f32 %v5213_v9, %v2050_v2  ;;  %v4046_v57 = vld [vmem:[%s8463_s1 + $0x550] sm:$0xff]  ;;  %v4048_v49 = vld [vmem:[%s8463_s1 + $0x560] sm:$0xff] }
 0x699   :  { %2105 = vrot.lane.b32.xlu1 %v2066_v27, %s4281_s18  ;;  %2107 = vrot.lane.b32.xlu0 %v2067_v39, %s4281_s18  ;;  %v2072_v27 = vmul.f32 %v5213_v9, %v2046_v47  ;;  %v4047_v9 = vld [vmem:[%s8463_s1 + $0x558] sm:$0x3f] }
 0x69d   :  { %2109 = vrot.lane.b32.xlu1 %v2068_v7, %s4281_s18  ;;  %2111 = vrot.lane.b32.xlu0 %v2069_v37, %s4281_s18 }
 0x6a1   :  { %2113 = vrot.lane.b32.xlu1 %v2070_v42, %s4281_s18  ;;  %2115 = vrot.lane.b32.xlu0 %v2071_v54, %s4281_s18 }
 0x6a5   :  { %2117 = vrot.lane.b32.xlu1 %v2072_v27, %s4281_s18  ;;  %2119 = vrot.lane.b32.xlu0 %v2073_v46, %s4281_s18 }
 0x6a9   :  { %2121 = vrot.lane.b32.xlu1 %v2074_v28, %s4281_s18  ;;  %2172 = vrot.lane.b32.xlu0 %v4044_v35, %s4280_s29 }
 0x6ad   :  { %2174 = vrot.lane.b32.xlu1 %v4045_v61, %s4280_s29  ;;  %2176 = vrot.lane.b32.xlu0 %v4046_v57, %s4280_s29 }
 0x6b1   :  { %2178 = vrot.lane.b32.xlu1 %v4047_v9, %s4280_s29  ;;  %2180 = vrot.lane.b32.xlu0 %v4048_v49, %s4280_s29 }
 0x6b5   :  { %2182 = vrot.lane.b32.xlu1 %v4049_v22, %s4280_s29  ;;  %2184 = vrot.lane.b32.xlu0 %v4050_v26, %s4280_s29 }
 0x6b9   :  { %2186 = vrot.lane.b32.xlu1 %v4051_v3, %s4280_s29 }
 0x6fb   :  { %v5705_v47 = vpop.permute.xlu0 %2091 }
 0x6fc   :  { %8709 = vst [vmem:[#allocation170_spill] sm:$0xff] %v5705_v47 }
 0x6ff   :  { %v5707_v2 = vpop.permute.xlu1 %2093  ;;  %v5709_v39 = vpop.permute.xlu0 %2095 }
 0x700   :  { %8710 = vst [vmem:[#allocation171_spill] sm:$0xff] %v5707_v2  ;;  %8711 = vst [vmem:[#allocation172_spill] sm:$0xff] %v5709_v39 }
 0x703   :  { %v5711_v7 = vpop.permute.xlu1 %2097  ;;  %v5713_v37 = vpop.permute.xlu0 %2099 }
 0x704   :  { %8712 = vst [vmem:[#allocation173_spill] sm:$0xff] %v5711_v7  ;;  %8713 = vst [vmem:[#allocation174_spill] sm:$0xff] %v5713_v37 }
 0x707   :  { %v5715_v42 = vpop.permute.xlu1 %2101  ;;  %v5717_v54 = vpop.permute.xlu0 %2103 }
 0x708   :  { %8714 = vst [vmem:[#allocation175_spill] sm:$0xff] %v5715_v42  ;;  %8715 = vst [vmem:[#allocation176_spill] sm:$0xff] %v5717_v54 }
 0x70b   :  { %v5719_v27 = vpop.permute.xlu1 %2105  ;;  %v5721_v46 = vpop.permute.xlu0 %2107 }
 0x70c   :  { %8716 = vst [vmem:[#allocation177_spill] sm:$0xff] %v5719_v27  ;;  %8717 = vst [vmem:[#allocation178_spill] sm:$0xff] %v5721_v46 }
 0x70f   :  { %v5723_v35 = vpop.permute.xlu1 %2109  ;;  %v5725_v28 = vpop.permute.xlu0 %2111 }
 0x710   :  { %8718 = vst [vmem:[#allocation179_spill] sm:$0xff] %v5723_v35  ;;  %8719 = vst [vmem:[#allocation180_spill] sm:$0xff] %v5725_v28 }
 0x713   :  { %v5727_v61 = vpop.permute.xlu1 %2113  ;;  %v5729_v57 = vpop.permute.xlu0 %2115 }
 0x714   :  { %8720 = vst [vmem:[#allocation181_spill] sm:$0xff] %v5727_v61  ;;  %8721 = vst [vmem:[#allocation182_spill] sm:$0xff] %v5729_v57 }
 0x717   :  { %v5731_v9 = vpop.permute.xlu1 %2117  ;;  %v5733_v49 = vpop.permute.xlu0 %2119 }
 0x718   :  { %8722 = vst [vmem:[#allocation183_spill] sm:$0xff] %v5731_v9 }
 0x71b   :  { %v5735_v22 = vpop.permute.xlu1 %2121  ;;  %v2173_v26 = vpop.permute.xlu0 %2172 }
 0x71c   :  { %v2196_v3 = vmul.f32 %v5294_v4, %v2173_v26 }
 0x71e   :  { %2228 = vrot.lane.b32.xlu0 %v2196_v3, %s4281_s18 }
 0x71f   :  { %v2175_v46 = vpop.permute.xlu1 %2174  ;;  %v2177_v27 = vpop.permute.xlu0 %2176 }
 0x720   :  { %v2197_v35 = vmul.f32 %v5303_v20, %v2175_v46  ;;  %v2198_v28 = vmul.f32 %v5294_v4, %v2177_v27 }
 0x722   :  { %2230 = vrot.lane.b32.xlu1 %v2197_v35, %s4281_s18  ;;  %2232 = vrot.lane.b32.xlu0 %v2198_v28, %s4281_s18  ;;  %v2204_v28 = vmul.f32 %v5320_v16, %v2173_v26  ;;  %v4059_v26 = vld [vmem:[%s8463_s1 + $0x5b8] sm:$0x3f] }
 0x723   :  { %v2179_v9 = vpop.permute.xlu1 %2178  ;;  %v2181_v57 = vpop.permute.xlu0 %2180 }
 0x724   :  { %v2199_v61 = vmul.f32 %v5303_v20, %v2179_v9  ;;  %v2200_v54 = vmul.f32 %v5294_v4, %v2181_v57 }
 0x726   :  { %2234 = vrot.lane.b32.xlu1 %v2199_v61, %s4281_s18  ;;  %2236 = vrot.lane.b32.xlu0 %v2200_v54, %s4281_s18  ;;  %v2205_v54 = vmul.f32 %v5329_v62, %v2175_v46  ;;  %v2206_v61 = vmul.f32 %v5320_v16, %v2177_v27  ;;  %v4053_v46 = vld [vmem:[%s8463_s1 + $0x588] sm:$0x3f] }
 0x727   :  { %v2183_v3 = vpop.permute.xlu1 %2182  ;;  %v2185_v42 = vpop.permute.xlu0 %2184 }
 0x728   :  { %v2201_v37 = vmul.f32 %v5303_v20, %v2183_v3  ;;  %v2202_v7 = vmul.f32 %v5294_v4, %v2185_v42  ;;  %v2207_v4 = vmul.f32 %v5329_v62, %v2179_v9  ;;  %v4058_v9 = vld [vmem:[%s8463_s1 + $0x5b0] sm:$0xff] }
 0x72a   :  { %2238 = vrot.lane.b32.xlu1 %v2201_v37, %s4281_s18  ;;  %2240 = vrot.lane.b32.xlu0 %v2202_v7, %s4281_s18  ;;  %v2208_v7 = vmul.f32 %v5320_v16, %v2181_v57  ;;  %v4052_v37 = vld [vmem:[%s8463_s1 + $0x580] sm:$0xff]  ;;  %v4057_v57 = vld [vmem:[%s8463_s1 + $0x5a8] sm:$0x3f] }
 0x72b   :  { %v2187_v35 = vpop.permute.xlu1 %2186 }
 0x72c   :  { %v2203_v39 = vmul.f32 %v5303_v20, %v2187_v35  ;;  %v2209_v20 = vmul.f32 %v5329_v62, %v2183_v3  ;;  %v2211_v27 = vmul.f32 %v5329_v62, %v2187_v35  ;;  %v4055_v62 = vld [vmem:[%s8463_s1 + $0x598] sm:$0x3f] }
 0x72e   :  { %2242 = vrot.lane.b32.xlu1 %v2203_v39, %s4281_s18  ;;  %2244 = vrot.lane.b32.xlu0 %v2204_v28, %s4281_s18  ;;  %v2210_v39 = vmul.f32 %v5320_v16, %v2185_v42  ;;  %v4054_v16 = vld [vmem:[%s8463_s1 + $0x590] sm:$0xff]  ;;  %v4056_v42 = vld [vmem:[%s8463_s1 + $0x5a0] sm:$0xff] }
 0x732   :  { %2246 = vrot.lane.b32.xlu1 %v2205_v54, %s4281_s18  ;;  %2248 = vrot.lane.b32.xlu0 %v2206_v61, %s4281_s18 }
 0x736   :  { %2250 = vrot.lane.b32.xlu1 %v2207_v4, %s4281_s18  ;;  %2252 = vrot.lane.b32.xlu0 %v2208_v7, %s4281_s18 }
 0x73a   :  { %2254 = vrot.lane.b32.xlu1 %v2209_v20, %s4281_s18  ;;  %2256 = vrot.lane.b32.xlu0 %v2210_v39, %s4281_s18 }
 0x73e   :  { %2258 = vrot.lane.b32.xlu1 %v2211_v27, %s4281_s18  ;;  %2309 = vrot.lane.b32.xlu0 %v4052_v37, %s4280_s29 }
 0x742   :  { %2311 = vrot.lane.b32.xlu1 %v4053_v46, %s4280_s29  ;;  %2313 = vrot.lane.b32.xlu0 %v4054_v16, %s4280_s29 }
 0x746   :  { %2315 = vrot.lane.b32.xlu1 %v4055_v62, %s4280_s29  ;;  %2317 = vrot.lane.b32.xlu0 %v4056_v42, %s4280_s29 }
 0x74a   :  { %2319 = vrot.lane.b32.xlu1 %v4057_v57, %s4280_s29  ;;  %2321 = vrot.lane.b32.xlu0 %v4058_v9, %s4280_s29 }
 0x74e   :  { %2323 = vrot.lane.b32.xlu1 %v4059_v26, %s4280_s29 }
 0x790   :  { %v5801_v3 = vpop.permute.xlu0 %2228 }
 0x791   :  { %8723 = vst [vmem:[#allocation184_spill] sm:$0xff] %v5801_v3 }
 0x794   :  { %v5803_v35 = vpop.permute.xlu1 %2230  ;;  %v5805_v28 = vpop.permute.xlu0 %2232 }
 0x795   :  { %8724 = vst [vmem:[#allocation185_spill] sm:$0xff] %v5803_v35  ;;  %8725 = vst [vmem:[#allocation186_spill] sm:$0xff] %v5805_v28 }
 0x798   :  { %v5807_v54 = vpop.permute.xlu1 %2234  ;;  %v5809_v61 = vpop.permute.xlu0 %2236 }
 0x799   :  { %8726 = vst [vmem:[#allocation187_spill] sm:$0xff] %v5807_v54  ;;  %8727 = vst [vmem:[#allocation188_spill] sm:$0xff] %v5809_v61 }
 0x79c   :  { %v5811_v4 = vpop.permute.xlu1 %2238  ;;  %v5813_v7 = vpop.permute.xlu0 %2240 }
 0x79d   :  { %8728 = vst [vmem:[#allocation189_spill] sm:$0xff] %v5811_v4  ;;  %8729 = vst [vmem:[#allocation190_spill] sm:$0xff] %v5813_v7 }
 0x7a0   :  { %v5815_v20 = vpop.permute.xlu1 %2242  ;;  %v5817_v39 = vpop.permute.xlu0 %2244 }
 0x7a1   :  { %8730 = vst [vmem:[#allocation191_spill] sm:$0xff] %v5815_v20  ;;  %8731 = vst [vmem:[#allocation192_spill] sm:$0xff] %v5817_v39 }
 0x7a4   :  { %v5819_v37 = vpop.permute.xlu1 %2246  ;;  %v5821_v27 = vpop.permute.xlu0 %2248 }
 0x7a5   :  { %8732 = vst [vmem:[#allocation193_spill] sm:$0xff] %v5819_v37  ;;  %8733 = vst [vmem:[#allocation194_spill] sm:$0xff] %v5821_v27 }
 0x7a8   :  { %v5823_v46 = vpop.permute.xlu1 %2250  ;;  %v5825_v16 = vpop.permute.xlu0 %2252 }
 0x7a9   :  { %8734 = vst [vmem:[#allocation195_spill] sm:$0xff] %v5823_v46  ;;  %8735 = vst [vmem:[#allocation196_spill] sm:$0xff] %v5825_v16 }
 0x7ac   :  { %v5827_v62 = vpop.permute.xlu1 %2254  ;;  %v5829_v42 = vpop.permute.xlu0 %2256 }
 0x7ad   :  { %8736 = vst [vmem:[#allocation197_spill] sm:$0xff] %v5827_v62 }
 0x7b0   :  { %v5831_v57 = vpop.permute.xlu1 %2258  ;;  %v2310_v9 = vpop.permute.xlu0 %2309 }
 0x7b1   :  { %v2333_v26 = vmul.f32 %v5410_v0, %v2310_v9 }
 0x7b3   :  { %2365 = vrot.lane.b32.xlu0 %v2333_v26, %s4281_s18 }
 0x7b4   :  { %v2312_v39 = vpop.permute.xlu1 %2311  ;;  %v2314_v20 = vpop.permute.xlu0 %2313 }
 0x7b5   :  { %v2334_v37 = vmul.f32 %v5419_v17, %v2312_v39  ;;  %v2335_v27 = vmul.f32 %v5410_v0, %v2314_v20 }
 0x7b7   :  { %2367 = vrot.lane.b32.xlu1 %v2334_v37, %s4281_s18  ;;  %2369 = vrot.lane.b32.xlu0 %v2335_v27, %s4281_s18  ;;  %v2341_v27 = vmul.f32 %v5436_v52, %v2310_v9  ;;  %v4067_v9 = vld [vmem:[%s8463_s1 + $0x5f8] sm:$0x3f] }
 0x7b8   :  { %v2316_v62 = vpop.permute.xlu1 %2315  ;;  %v2318_v16 = vpop.permute.xlu0 %2317 }
 0x7b9   :  { %v2336_v46 = vmul.f32 %v5419_v17, %v2316_v62  ;;  %v2337_v7 = vmul.f32 %v5410_v0, %v2318_v16 }
 0x7bb   :  { %2371 = vrot.lane.b32.xlu1 %v2336_v46, %s4281_s18  ;;  %2373 = vrot.lane.b32.xlu0 %v2337_v7, %s4281_s18  ;;  %v2342_v7 = vmul.f32 %v5445_v45, %v2312_v39  ;;  %v2343_v46 = vmul.f32 %v5436_v52, %v2314_v20  ;;  %v4061_v39 = vld [vmem:[%s8463_s1 + $0x5c8] sm:$0x3f] }
 0x7bc   :  { %v2320_v26 = vpop.permute.xlu1 %2319  ;;  %v2322_v4 = vpop.permute.xlu0 %2321 }
 0x7bd   :  { %v2338_v61 = vmul.f32 %v5419_v17, %v2320_v26  ;;  %v2339_v54 = vmul.f32 %v5410_v0, %v2322_v4  ;;  %v2344_v0 = vmul.f32 %v5445_v45, %v2316_v62  ;;  %v4066_v62 = vld [vmem:[%s8463_s1 + $0x5f0] sm:$0xff] }
 0x7bf   :  { %2375 = vrot.lane.b32.xlu1 %v2338_v61, %s4281_s18  ;;  %2377 = vrot.lane.b32.xlu0 %v2339_v54, %s4281_s18  ;;  %v2345_v54 = vmul.f32 %v5436_v52, %v2318_v16  ;;  %v4060_v61 = vld [vmem:[%s8463_s1 + $0x5c0] sm:$0xff]  ;;  %v4065_v16 = vld [vmem:[%s8463_s1 + $0x5e8] sm:$0x3f] }
 0x7c0   :  { %v2324_v37 = vpop.permute.xlu1 %2323 }
 0x7c1   :  { %v2340_v28 = vmul.f32 %v5419_v17, %v2324_v37  ;;  %v2346_v17 = vmul.f32 %v5445_v45, %v2320_v26  ;;  %v2348_v20 = vmul.f32 %v5445_v45, %v2324_v37  ;;  %v4063_v45 = vld [vmem:[%s8463_s1 + $0x5d8] sm:$0x3f] }
 0x7c3   :  { %2379 = vrot.lane.b32.xlu1 %v2340_v28, %s4281_s18  ;;  %2381 = vrot.lane.b32.xlu0 %v2341_v27, %s4281_s18  ;;  %v2347_v28 = vmul.f32 %v5436_v52, %v2322_v4  ;;  %v4062_v52 = vld [vmem:[%s8463_s1 + $0x5d0] sm:$0xff]  ;;  %v4064_v4 = vld [vmem:[%s8463_s1 + $0x5e0] sm:$0xff] }
 0x7c7   :  { %2383 = vrot.lane.b32.xlu1 %v2342_v7, %s4281_s18  ;;  %2385 = vrot.lane.b32.xlu0 %v2343_v46, %s4281_s18 }
 0x7cb   :  { %2387 = vrot.lane.b32.xlu1 %v2344_v0, %s4281_s18  ;;  %2389 = vrot.lane.b32.xlu0 %v2345_v54, %s4281_s18 }
 0x7cf   :  { %2391 = vrot.lane.b32.xlu1 %v2346_v17, %s4281_s18  ;;  %2393 = vrot.lane.b32.xlu0 %v2347_v28, %s4281_s18 }
 0x7d3   :  { %2395 = vrot.lane.b32.xlu1 %v2348_v20, %s4281_s18  ;;  %2446 = vrot.lane.b32.xlu0 %v4060_v61, %s4280_s29 }
 0x7d7   :  { %2448 = vrot.lane.b32.xlu1 %v4061_v39, %s4280_s29  ;;  %2450 = vrot.lane.b32.xlu0 %v4062_v52, %s4280_s29 }
 0x7db   :  { %2452 = vrot.lane.b32.xlu1 %v4063_v45, %s4280_s29  ;;  %2454 = vrot.lane.b32.xlu0 %v4064_v4, %s4280_s29 }
 0x7df   :  { %2456 = vrot.lane.b32.xlu1 %v4065_v16, %s4280_s29  ;;  %2458 = vrot.lane.b32.xlu0 %v4066_v62, %s4280_s29 }
 0x7e3   :  { %2460 = vrot.lane.b32.xlu1 %v4067_v9, %s4280_s29 }
 0x825   :  { %v5897_v26 = vpop.permute.xlu0 %2365 }
 0x826   :  { %8737 = vst [vmem:[#allocation198_spill] sm:$0xff] %v5897_v26 }
 0x829   :  { %v5899_v37 = vpop.permute.xlu1 %2367  ;;  %v5901_v27 = vpop.permute.xlu0 %2369 }
 0x82a   :  { %8738 = vst [vmem:[#allocation199_spill] sm:$0xff] %v5899_v37  ;;  %8739 = vst [vmem:[#allocation200_spill] sm:$0xff] %v5901_v27 }
 0x82d   :  { %v5903_v7 = vpop.permute.xlu1 %2371  ;;  %v5905_v46 = vpop.permute.xlu0 %2373 }
 0x82e   :  { %8740 = vst [vmem:[#allocation201_spill] sm:$0xff] %v5903_v7  ;;  %8741 = vst [vmem:[#allocation202_spill] sm:$0xff] %v5905_v46 }
 0x831   :  { %v5907_v0 = vpop.permute.xlu1 %2375  ;;  %v5909_v54 = vpop.permute.xlu0 %2377 }
 0x832   :  { %8742 = vst [vmem:[#allocation203_spill] sm:$0xff] %v5907_v0  ;;  %8743 = vst [vmem:[#allocation204_spill] sm:$0xff] %v5909_v54 }
 0x835   :  { %v5911_v17 = vpop.permute.xlu1 %2379  ;;  %v5913_v28 = vpop.permute.xlu0 %2381 }
 0x836   :  { %8744 = vst [vmem:[#allocation205_spill] sm:$0xff] %v5911_v17  ;;  %8745 = vst [vmem:[#allocation206_spill] sm:$0xff] %v5913_v28 }
 0x839   :  { %v5915_v61 = vpop.permute.xlu1 %2383  ;;  %v5917_v20 = vpop.permute.xlu0 %2385 }
 0x83a   :  { %8746 = vst [vmem:[#allocation207_spill] sm:$0xff] %v5915_v61  ;;  %8747 = vst [vmem:[#allocation208_spill] sm:$0xff] %v5917_v20 }
 0x83d   :  { %v5919_v39 = vpop.permute.xlu1 %2387  ;;  %v5921_v52 = vpop.permute.xlu0 %2389 }
 0x83e   :  { %8748 = vst [vmem:[#allocation209_spill] sm:$0xff] %v5919_v39  ;;  %8749 = vst [vmem:[#allocation210_spill] sm:$0xff] %v5921_v52 }
 0x841   :  { %v5923_v45 = vpop.permute.xlu1 %2391  ;;  %v5925_v4 = vpop.permute.xlu0 %2393 }
 0x842   :  { %8750 = vst [vmem:[#allocation211_spill] sm:$0xff] %v5923_v45 }
 0x845   :  { %v5927_v16 = vpop.permute.xlu1 %2395  ;;  %v2447_v62 = vpop.permute.xlu0 %2446 }
 0x846   :  { %v2470_v9 = vmul.f32 %v5526_v44, %v2447_v62 }
 0x848   :  { %2502 = vrot.lane.b32.xlu0 %v2470_v9, %s4281_s18 }
 0x849   :  { %v2449_v28 = vpop.permute.xlu1 %2448  ;;  %v2451_v17 = vpop.permute.xlu0 %2450 }
 0x84a   :  { %v2471_v61 = vmul.f32 %v5535_v6, %v2449_v28  ;;  %v2472_v20 = vmul.f32 %v5526_v44, %v2451_v17 }
 0x84c   :  { %2504 = vrot.lane.b32.xlu1 %v2471_v61, %s4281_s18  ;;  %2506 = vrot.lane.b32.xlu0 %v2472_v20, %s4281_s18  ;;  %v2478_v20 = vmul.f32 %v5552_v1, %v2447_v62  ;;  %v4123_v62 = vld [vmem:[%s8463_s1 + $0x738] sm:$0x3f] }
 0x84d   :  { %v2453_v45 = vpop.permute.xlu1 %2452  ;;  %v2455_v52 = vpop.permute.xlu0 %2454 }
 0x84e   :  { %v2473_v39 = vmul.f32 %v5535_v6, %v2453_v45  ;;  %v2474_v54 = vmul.f32 %v5526_v44, %v2455_v52 }
 0x850   :  { %2508 = vrot.lane.b32.xlu1 %v2473_v39, %s4281_s18  ;;  %2510 = vrot.lane.b32.xlu0 %v2474_v54, %s4281_s18  ;;  %v2479_v54 = vmul.f32 %v5561_v43, %v2449_v28  ;;  %v2480_v39 = vmul.f32 %v5552_v1, %v2451_v17  ;;  %v4117_v28 = vld [vmem:[%s8463_s1 + $0x708] sm:$0x3f] }
 0x851   :  { %v2457_v9 = vpop.permute.xlu1 %2456  ;;  %v2459_v0 = vpop.permute.xlu0 %2458 }
 0x852   :  { %v2475_v46 = vmul.f32 %v5535_v6, %v2457_v9  ;;  %v2476_v7 = vmul.f32 %v5526_v44, %v2459_v0  ;;  %v2481_v44 = vmul.f32 %v5561_v43, %v2453_v45  ;;  %v4122_v45 = vld [vmem:[%s8463_s1 + $0x730] sm:$0xff] }
 0x854   :  { %2512 = vrot.lane.b32.xlu1 %v2475_v46, %s4281_s18  ;;  %2514 = vrot.lane.b32.xlu0 %v2476_v7, %s4281_s18  ;;  %v2482_v7 = vmul.f32 %v5552_v1, %v2455_v52  ;;  %v4116_v46 = vld [vmem:[%s8463_s1 + $0x700] sm:$0xff]  ;;  %v4121_v52 = vld [vmem:[%s8463_s1 + $0x728] sm:$0x3f] }
 0x855   :  { %v2461_v61 = vpop.permute.xlu1 %2460 }
 0x856   :  { %v2477_v27 = vmul.f32 %v5535_v6, %v2461_v61  ;;  %v2483_v6 = vmul.f32 %v5561_v43, %v2457_v9  ;;  %v2485_v17 = vmul.f32 %v5561_v43, %v2461_v61  ;;  %v4119_v43 = vld [vmem:[%s8463_s1 + $0x718] sm:$0x3f] }
 0x858   :  { %2516 = vrot.lane.b32.xlu1 %v2477_v27, %s4281_s18  ;;  %2518 = vrot.lane.b32.xlu0 %v2478_v20, %s4281_s18  ;;  %v2484_v27 = vmul.f32 %v5552_v1, %v2459_v0  ;;  %v4118_v1 = vld [vmem:[%s8463_s1 + $0x710] sm:$0xff]  ;;  %v4120_v0 = vld [vmem:[%s8463_s1 + $0x720] sm:$0xff] }
 0x85c   :  { %2520 = vrot.lane.b32.xlu1 %v2479_v54, %s4281_s18  ;;  %2522 = vrot.lane.b32.xlu0 %v2480_v39, %s4281_s18 }
 0x860   :  { %2524 = vrot.lane.b32.xlu1 %v2481_v44, %s4281_s18  ;;  %2526 = vrot.lane.b32.xlu0 %v2482_v7, %s4281_s18 }
 0x864   :  { %2528 = vrot.lane.b32.xlu1 %v2483_v6, %s4281_s18  ;;  %2530 = vrot.lane.b32.xlu0 %v2484_v27, %s4281_s18 }
 0x868   :  { %2532 = vrot.lane.b32.xlu1 %v2485_v17, %s4281_s18  ;;  %2765 = vrot.lane.b32.xlu0 %v4116_v46, %s4278_s13 }
 0x86c   :  { %2767 = vrot.lane.b32.xlu1 %v4117_v28, %s4278_s13  ;;  %2769 = vrot.lane.b32.xlu0 %v4118_v1, %s4278_s13 }
 0x870   :  { %2771 = vrot.lane.b32.xlu1 %v4119_v43, %s4278_s13  ;;  %2773 = vrot.lane.b32.xlu0 %v4120_v0, %s4278_s13 }
 0x874   :  { %2775 = vrot.lane.b32.xlu1 %v4121_v52, %s4278_s13  ;;  %2777 = vrot.lane.b32.xlu0 %v4122_v45, %s4278_s13  ;;  %v6026_v52 = vld [vmem:[%s8464_s0 + $0x2] sm:$0xff] }
 0x878   :  { %2779 = vrot.lane.b32.xlu1 %v4123_v62, %s4278_s13 }
 0x8ba   :  { %v5993_v9 = vpop.permute.xlu0 %2502 }
 0x8bb   :  { %8751 = vst [vmem:[#allocation212_spill] sm:$0xff] %v5993_v9 }
 0x8be   :  { %v5995_v61 = vpop.permute.xlu1 %2504  ;;  %v5997_v20 = vpop.permute.xlu0 %2506 }
 0x8bf   :  { %8752 = vst [vmem:[#allocation213_spill] sm:$0xff] %v5995_v61  ;;  %8753 = vst [vmem:[#allocation214_spill] sm:$0xff] %v5997_v20 }
 0x8c2   :  { %v5999_v54 = vpop.permute.xlu1 %2508  ;;  %v6001_v39 = vpop.permute.xlu0 %2510 }
 0x8c3   :  { %8754 = vst [vmem:[#allocation215_spill] sm:$0xff] %v5999_v54  ;;  %8755 = vst [vmem:[#allocation216_spill] sm:$0xff] %v6001_v39 }
 0x8c6   :  { %v6003_v44 = vpop.permute.xlu1 %2512  ;;  %v6005_v7 = vpop.permute.xlu0 %2514 }
 0x8c7   :  { %8756 = vst [vmem:[#allocation217_spill] sm:$0xff] %v6003_v44  ;;  %8757 = vst [vmem:[#allocation218_spill] sm:$0xff] %v6005_v7 }
 0x8ca   :  { %v6007_v6 = vpop.permute.xlu1 %2516  ;;  %v6009_v27 = vpop.permute.xlu0 %2518 }
 0x8cb   :  { %8758 = vst [vmem:[#allocation219_spill] sm:$0xff] %v6007_v6  ;;  %8759 = vst [vmem:[#allocation220_spill] sm:$0xff] %v6009_v27 }
 0x8ce   :  { %v6011_v46 = vpop.permute.xlu1 %2520  ;;  %v6013_v17 = vpop.permute.xlu0 %2522 }
 0x8cf   :  { %8760 = vst [vmem:[#allocation221_spill] sm:$0xff] %v6011_v46  ;;  %8761 = vst [vmem:[#allocation222_spill] sm:$0xff] %v6013_v17 }
 0x8d2   :  { %v6015_v28 = vpop.permute.xlu1 %2524  ;;  %v6017_v1 = vpop.permute.xlu0 %2526 }
 0x8d3   :  { %8762 = vst [vmem:[#allocation223_spill] sm:$0xff] %v6015_v28  ;;  %8763 = vst [vmem:[#allocation224_spill] sm:$0xff] %v6017_v1  ;;  %v6035_v1 = vld [vmem:[%s8464_s0 + $0xa] sm:$0x3f] }
 0x8d6   :  { %v6019_v43 = vpop.permute.xlu1 %2528  ;;  %v6021_v0 = vpop.permute.xlu0 %2530 }
 0x8d7   :  { %8764 = vst [vmem:[#allocation225_spill] sm:$0xff] %v6019_v43 }
 0x8da   :  { %v6028_v45 = vpop.permute.xlu1 %2532  ;;  %v2766_v62 = vpop.permute.xlu0 %2765 }
 0x8db   :  { %v2789_v46 = vmul.f32 %v6026_v52, %v2766_v62 }
 0x8dd   :  { %2821 = vrot.lane.b32.xlu0 %v2789_v46, %s4279_s7 }
 0x8de   :  { %v2768_v43 = vpop.permute.xlu1 %2767  ;;  %v2770_v28 = vpop.permute.xlu0 %2769 }
 0x8df   :  { %v2790_v17 = vmul.f32 %v6035_v1, %v2768_v43  ;;  %v2791_v27 = vmul.f32 %v6026_v52, %v2770_v28 }
 0x8e1   :  { %2823 = vrot.lane.b32.xlu1 %v2790_v17, %s4279_s7  ;;  %2825 = vrot.lane.b32.xlu0 %v2791_v27, %s4279_s7  ;;  %v6052_v27 = vld [vmem:[%s8464_s0 + $0x42] sm:$0xff] }
 0x8e2   :  { %v2772_v6 = vpop.permute.xlu1 %2771  ;;  %v2774_v7 = vpop.permute.xlu0 %2773  ;;  %v2799_v37 = vmul.f32 %v6052_v27, %v2770_v28  ;;  %v4129_v28 = vld [vmem:[%s8463_s1 + $0x768] sm:$0x3f] }
 0x8e3   :  { %v2792_v44 = vmul.f32 %v6035_v1, %v2772_v6  ;;  %v2793_v46 = vmul.f32 %v6026_v52, %v2774_v7  ;;  %v2801_v9 = vmul.f32 %v6052_v27, %v2774_v7  ;;  %v4128_v7 = vld [vmem:[%s8463_s1 + $0x760] sm:$0xff] }
 0x8e5   :  { %2827 = vrot.lane.b32.xlu1 %v2792_v44, %s4279_s7  ;;  %2829 = vrot.lane.b32.xlu0 %v2793_v46, %s4279_s7  ;;  %v2797_v44 = vmul.f32 %v6052_v27, %v2766_v62 }
 0x8e6   :  { %v2776_v39 = vpop.permute.xlu1 %2775  ;;  %v2778_v54 = vpop.permute.xlu0 %2777 }
 0x8e7   :  { %v2794_v20 = vmul.f32 %v6035_v1, %v2776_v39  ;;  %v2795_v61 = vmul.f32 %v6026_v52, %v2778_v54 }
 0x8e9   :  { %2831 = vrot.lane.b32.xlu1 %v2794_v20, %s4279_s7  ;;  %2833 = vrot.lane.b32.xlu0 %v2795_v61, %s4279_s7  ;;  %v6061_v20 = vld [vmem:[%s8464_s0 + $0x4a] sm:$0x3f] }
 0x8ea   :  { %v2780_v17 = vpop.permute.xlu1 %2779  ;;  %v2798_v61 = vmul.f32 %v6061_v20, %v2768_v43  ;;  %v2800_v62 = vmul.f32 %v6061_v20, %v2772_v6  ;;  %v4130_v43 = vld [vmem:[%s8463_s1 + $0x770] sm:$0xff] }
 0x8eb   :  { %v2796_v46 = vmul.f32 %v6035_v1, %v2780_v17  ;;  %v2804_v6 = vmul.f32 %v6061_v20, %v2780_v17  ;;  %v4131_v17 = vld [vmem:[%s8463_s1 + $0x778] sm:$0x3f] }
 0x8ed   :  { %2835 = vrot.lane.b32.xlu1 %v2796_v46, %s4279_s7  ;;  %2837 = vrot.lane.b32.xlu0 %v2797_v44, %s4279_s7  ;;  %v2802_v44 = vmul.f32 %v6061_v20, %v2776_v39  ;;  %v2803_v46 = vmul.f32 %v6052_v27, %v2778_v54  ;;  %v4126_v54 = vld [vmem:[%s8463_s1 + $0x750] sm:$0xff]  ;;  %v4127_v39 = vld [vmem:[%s8463_s1 + $0x758] sm:$0x3f] }
 0x8f1   :  { %2839 = vrot.lane.b32.xlu1 %v2798_v61, %s4279_s7  ;;  %2841 = vrot.lane.b32.xlu0 %v2799_v37, %s4279_s7  ;;  %v4124_v37 = vld [vmem:[%s8463_s1 + $0x740] sm:$0xff] }
 0x8f5   :  { %2843 = vrot.lane.b32.xlu1 %v2800_v62, %s4279_s7  ;;  %2845 = vrot.lane.b32.xlu0 %v2801_v9, %s4279_s7  ;;  %v4125_v9 = vld [vmem:[%s8463_s1 + $0x748] sm:$0x3f] }
 0x8f9   :  { %2847 = vrot.lane.b32.xlu1 %v2802_v44, %s4279_s7  ;;  %2849 = vrot.lane.b32.xlu0 %v2803_v46, %s4279_s7 }
 0x8fd   :  { %2851 = vrot.lane.b32.xlu1 %v2804_v6, %s4279_s7  ;;  %2902 = vrot.lane.b32.xlu0 %v4124_v37, %s4278_s13 }
 0x901   :  { %2904 = vrot.lane.b32.xlu1 %v4125_v9, %s4278_s13  ;;  %2906 = vrot.lane.b32.xlu0 %v4126_v54, %s4278_s13 }
 0x905   :  { %2908 = vrot.lane.b32.xlu1 %v4127_v39, %s4278_s13  ;;  %2910 = vrot.lane.b32.xlu0 %v4128_v7, %s4278_s13 }
 0x909   :  { %2912 = vrot.lane.b32.xlu1 %v4129_v28, %s4278_s13  ;;  %2914 = vrot.lane.b32.xlu0 %v4130_v43, %s4278_s13 }
 0x90d   :  { %2916 = vrot.lane.b32.xlu1 %v4131_v17, %s4278_s13 }
 0x94f   :  { %v6109_v61 = vpop.permute.xlu0 %2821 }
 0x950   :  { %8765 = vst [vmem:[#allocation226_spill] sm:$0xff] %v6109_v61 }
 0x953   :  { %v6111_v62 = vpop.permute.xlu1 %2823  ;;  %v6113_v44 = vpop.permute.xlu0 %2825 }
 0x954   :  { %8766 = vst [vmem:[#allocation227_spill] sm:$0xff] %v6111_v62  ;;  %8767 = vst [vmem:[#allocation228_spill] sm:$0xff] %v6113_v44 }
 0x957   :  { %v6115_v46 = vpop.permute.xlu1 %2827  ;;  %v6117_v37 = vpop.permute.xlu0 %2829 }
 0x958   :  { %8768 = vst [vmem:[#allocation229_spill] sm:$0xff] %v6115_v46  ;;  %8769 = vst [vmem:[#allocation230_spill] sm:$0xff] %v6117_v37 }
 0x95b   :  { %v6119_v6 = vpop.permute.xlu1 %2831  ;;  %v6121_v9 = vpop.permute.xlu0 %2833 }
 0x95c   :  { %8770 = vst [vmem:[#allocation231_spill] sm:$0xff] %v6119_v6  ;;  %8771 = vst [vmem:[#allocation232_spill] sm:$0xff] %v6121_v9  ;;  %v6142_v9 = vld [vmem:[%s8464_s0 + $0x12] sm:$0xff] }
 0x95d   :  { %8779 = vst [vmem:[#allocation240_spill] sm:$0xff] %v6142_v9 }
 0x95f   :  { %v6123_v54 = vpop.permute.xlu1 %2835  ;;  %v6125_v39 = vpop.permute.xlu0 %2837 }
 0x960   :  { %8772 = vst [vmem:[#allocation233_spill] sm:$0xff] %v6123_v54  ;;  %8773 = vst [vmem:[#allocation234_spill] sm:$0xff] %v6125_v39 }
 0x963   :  { %v6127_v7 = vpop.permute.xlu1 %2839  ;;  %v6129_v28 = vpop.permute.xlu0 %2841 }
 0x964   :  { %8774 = vst [vmem:[#allocation235_spill] sm:$0xff] %v6127_v7  ;;  %8775 = vst [vmem:[#allocation236_spill] sm:$0xff] %v6129_v28 }
 0x967   :  { %v6131_v43 = vpop.permute.xlu1 %2843  ;;  %v6133_v17 = vpop.permute.xlu0 %2845 }
 0x968   :  { %8776 = vst [vmem:[#allocation237_spill] sm:$0xff] %v6131_v43  ;;  %8777 = vst [vmem:[#allocation238_spill] sm:$0xff] %v6133_v17  ;;  %v6151_v17 = vld [vmem:[%s8464_s0 + $0x1a] sm:$0x3f] }
 0x969   :  { %8780 = vst [vmem:[#allocation241_spill] sm:$0xff] %v6151_v17 }
 0x96b   :  { %v6135_v44 = vpop.permute.xlu1 %2847  ;;  %v6137_v46 = vpop.permute.xlu0 %2849 }
 0x96c   :  { %8778 = vst [vmem:[#allocation239_spill] sm:$0xff] %v6135_v44 }
 0x96f   :  { %v6144_v54 = vpop.permute.xlu1 %2851  ;;  %v2903_v39 = vpop.permute.xlu0 %2902 }
 0x970   :  { %v2926_v7 = vmul.f32 %v6142_v9, %v2903_v39 }
 0x972   :  { %2958 = vrot.lane.b32.xlu0 %v2926_v7, %s4279_s7 }
 0x973   :  { %v2905_v44 = vpop.permute.xlu1 %2904  ;;  %v2907_v43 = vpop.permute.xlu0 %2906 }
 0x974   :  { %v2927_v28 = vmul.f32 %v6151_v17, %v2905_v44  ;;  %v2928_v6 = vmul.f32 %v6142_v9, %v2907_v43 }
 0x976   :  { %2960 = vrot.lane.b32.xlu1 %v2927_v28, %s4279_s7  ;;  %2962 = vrot.lane.b32.xlu0 %v2928_v6, %s4279_s7  ;;  %v6168_v6 = vld [vmem:[%s8464_s0 + $0x52] sm:$0xff] }
 0x977   :  { %v2909_v37 = vpop.permute.xlu1 %2908  ;;  %v2911_v62 = vpop.permute.xlu0 %2910  ;;  %v2936_v47 = vmul.f32 %v6168_v6, %v2907_v43  ;;  %v4138_v43 = vld [vmem:[%s8463_s1 + $0x7b0] sm:$0xff] }
 0x978   :  { %v2929_v61 = vmul.f32 %v6151_v17, %v2909_v37  ;;  %v2930_v7 = vmul.f32 %v6142_v9, %v2911_v62  ;;  %v2938_v34 = vmul.f32 %v6168_v6, %v2911_v62  ;;  %v4136_v62 = vld [vmem:[%s8463_s1 + $0x7a0] sm:$0xff] }
 0x97a   :  { %2964 = vrot.lane.b32.xlu1 %v2929_v61, %s4279_s7  ;;  %2966 = vrot.lane.b32.xlu0 %v2930_v7, %s4279_s7  ;;  %v2934_v61 = vmul.f32 %v6168_v6, %v2903_v39 }
 0x97b   :  { %v2913_v35 = vpop.permute.xlu1 %2912  ;;  %v2915_v26 = vpop.permute.xlu0 %2914 }
 0x97c   :  { %v2931_v2 = vmul.f32 %v6151_v17, %v2913_v35  ;;  %v2932_v3 = vmul.f32 %v6142_v9, %v2915_v26 }
 0x97e   :  { %2968 = vrot.lane.b32.xlu1 %v2931_v2, %s4279_s7  ;;  %2970 = vrot.lane.b32.xlu0 %v2932_v3, %s4279_s7  ;;  %v6177_v2 = vld [vmem:[%s8464_s0 + $0x5a] sm:$0x3f] }
 0x97f   :  { %v2917_v28 = vpop.permute.xlu1 %2916  ;;  %v2935_v3 = vmul.f32 %v6177_v2, %v2905_v44  ;;  %v2937_v39 = vmul.f32 %v6177_v2, %v2909_v37  ;;  %v4137_v37 = vld [vmem:[%s8463_s1 + $0x7a8] sm:$0x3f] }
 0x980   :  { %v2933_v7 = vmul.f32 %v6151_v17, %v2917_v28  ;;  %v2941_v44 = vmul.f32 %v6177_v2, %v2917_v28  ;;  %v4139_v28 = vld [vmem:[%s8463_s1 + $0x7b8] sm:$0x3f] }
 0x982   :  { %2972 = vrot.lane.b32.xlu1 %v2933_v7, %s4279_s7  ;;  %2974 = vrot.lane.b32.xlu0 %v2934_v61, %s4279_s7  ;;  %v2939_v61 = vmul.f32 %v6177_v2, %v2913_v35  ;;  %v2940_v7 = vmul.f32 %v6168_v6, %v2915_v26  ;;  %v4134_v35 = vld [vmem:[%s8463_s1 + $0x790] sm:$0xff]  ;;  %v4135_v26 = vld [vmem:[%s8463_s1 + $0x798] sm:$0x3f] }
 0x986   :  { %2976 = vrot.lane.b32.xlu1 %v2935_v3, %s4279_s7  ;;  %2978 = vrot.lane.b32.xlu0 %v2936_v47, %s4279_s7  ;;  %v4132_v47 = vld [vmem:[%s8463_s1 + $0x780] sm:$0xff] }
 0x98a   :  { %2980 = vrot.lane.b32.xlu1 %v2937_v39, %s4279_s7  ;;  %2982 = vrot.lane.b32.xlu0 %v2938_v34, %s4279_s7  ;;  %v4133_v34 = vld [vmem:[%s8463_s1 + $0x788] sm:$0x3f] }
 0x98e   :  { %2984 = vrot.lane.b32.xlu1 %v2939_v61, %s4279_s7  ;;  %2986 = vrot.lane.b32.xlu0 %v2940_v7, %s4279_s7 }
 0x992   :  { %2988 = vrot.lane.b32.xlu1 %v2941_v44, %s4279_s7  ;;  %3039 = vrot.lane.b32.xlu0 %v4132_v47, %s4278_s13 }
 0x996   :  { %3041 = vrot.lane.b32.xlu1 %v4133_v34, %s4278_s13  ;;  %3043 = vrot.lane.b32.xlu0 %v4134_v35, %s4278_s13 }
 0x99a   :  { %3045 = vrot.lane.b32.xlu1 %v4135_v26, %s4278_s13  ;;  %3047 = vrot.lane.b32.xlu0 %v4136_v62, %s4278_s13 }
 0x99e   :  { %3049 = vrot.lane.b32.xlu1 %v4137_v37, %s4278_s13  ;;  %3051 = vrot.lane.b32.xlu0 %v4138_v43, %s4278_s13 }
 0x9a2   :  { %3053 = vrot.lane.b32.xlu1 %v4139_v28, %s4278_s13 }
 0x9e4   :  { %v6225_v3 = vpop.permute.xlu0 %2958 }
 0x9e5   :  { %8781 = vst [vmem:[#allocation242_spill] sm:$0xff] %v6225_v3 }
 0x9e8   :  { %v6227_v39 = vpop.permute.xlu1 %2960  ;;  %v6229_v61 = vpop.permute.xlu0 %2962 }
 0x9e9   :  { %8782 = vst [vmem:[#allocation243_spill] sm:$0xff] %v6227_v39  ;;  %8783 = vst [vmem:[#allocation244_spill] sm:$0xff] %v6229_v61 }
 0x9ec   :  { %v6231_v7 = vpop.permute.xlu1 %2964  ;;  %v6233_v47 = vpop.permute.xlu0 %2966 }
 0x9ed   :  { %8784 = vst [vmem:[#allocation245_spill] sm:$0xff] %v6231_v7  ;;  %8785 = vst [vmem:[#allocation246_spill] sm:$0xff] %v6233_v47 }
 0x9f0   :  { %v6235_v44 = vpop.permute.xlu1 %2968  ;;  %v6237_v34 = vpop.permute.xlu0 %2970 }
 0x9f1   :  { %8786 = vst [vmem:[#allocation247_spill] sm:$0xff] %v6235_v44  ;;  %8787 = vst [vmem:[#allocation248_spill] sm:$0xff] %v6237_v34  ;;  %v4072_v34 = vld [vmem:[%s8464_s0 + $0x22] sm:$0xff] }
 0x9f4   :  { %v6239_v35 = vpop.permute.xlu1 %2972  ;;  %v6241_v26 = vpop.permute.xlu0 %2974 }
 0x9f5   :  { %8788 = vst [vmem:[#allocation249_spill] sm:$0xff] %v6239_v35  ;;  %8789 = vst [vmem:[#allocation250_spill] sm:$0xff] %v6241_v26 }
 0x9f8   :  { %v6243_v62 = vpop.permute.xlu1 %2976  ;;  %v6245_v37 = vpop.permute.xlu0 %2978 }
 0x9f9   :  { %8790 = vst [vmem:[#allocation251_spill] sm:$0xff] %v6243_v62  ;;  %8791 = vst [vmem:[#allocation252_spill] sm:$0xff] %v6245_v37 }
 0x9fc   :  { %v6247_v43 = vpop.permute.xlu1 %2980  ;;  %v6249_v28 = vpop.permute.xlu0 %2982 }
 0x9fd   :  { %8792 = vst [vmem:[#allocation253_spill] sm:$0xff] %v6247_v43  ;;  %8793 = vst [vmem:[#allocation254_spill] sm:$0xff] %v6249_v28  ;;  %v4073_v43 = vld [vmem:[%s8464_s0 + $0x2a] sm:$0x3f] }
 0xa00   :  { %v6251_v61 = vpop.permute.xlu1 %2984  ;;  %v6253_v7 = vpop.permute.xlu0 %2986 }
 0xa01   :  { %8794 = vst [vmem:[#allocation255_spill] sm:$0xff] %v6251_v61 }
 0xa04   :  { %v6258_v44 = vpop.permute.xlu1 %2988  ;;  %v3040_v35 = vpop.permute.xlu0 %3039 }
 0xa05   :  { %v3063_v26 = vmul.f32 %v4072_v34, %v3040_v35 }
 0xa07   :  { %3095 = vrot.lane.b32.xlu0 %v3063_v26, %s4279_s7 }
 0xa08   :  { %v3042_v37 = vpop.permute.xlu1 %3041  ;;  %v3044_v28 = vpop.permute.xlu0 %3043 }
 0xa09   :  { %v3064_v62 = vmul.f32 %v4073_v43, %v3042_v37  ;;  %v3065_v61 = vmul.f32 %v4072_v34, %v3044_v28 }
 0xa0b   :  { %3097 = vrot.lane.b32.xlu1 %v3064_v62, %s4279_s7  ;;  %3099 = vrot.lane.b32.xlu0 %v3065_v61, %s4279_s7  ;;  %v6273_v61 = vld [vmem:[%s8464_s0 + $0x62] sm:$0xff] }
 0xa0c   :  { %v3046_v47 = vpop.permute.xlu1 %3045  ;;  %v3048_v39 = vpop.permute.xlu0 %3047  ;;  %v3071_v32 = vmul.f32 %v6273_v61, %v3040_v35  ;;  %v4140_v35 = vld [vmem:[%s8463_s1 + $0x7c0] sm:$0xff] }
 0xa0d   :  { %v3066_v3 = vmul.f32 %v4073_v43, %v3046_v47  ;;  %v3067_v33 = vmul.f32 %v4072_v34, %v3048_v39 }
 0xa0f   :  { %3101 = vrot.lane.b32.xlu1 %v3066_v3, %s4279_s7  ;;  %3103 = vrot.lane.b32.xlu0 %v3067_v33, %s4279_s7  ;;  %v6281_v33 = vld [vmem:[%s8464_s0 + $0x6a] sm:$0x3f] }
 0xa10   :  { %v3050_v26 = vpop.permute.xlu1 %3049  ;;  %v3052_v36 = vpop.permute.xlu0 %3051  ;;  %v3074_v3 = vmul.f32 %v6281_v33, %v3046_v47 }
 0xa11   :  { %v3068_v14 = vmul.f32 %v4073_v43, %v3050_v26  ;;  %v3069_v13 = vmul.f32 %v4072_v34, %v3052_v36  ;;  %v3075_v34 = vmul.f32 %v6273_v61, %v3048_v39  ;;  %v4141_v39 = vld [vmem:[%s8463_s1 + $0x7c8] sm:$0x3f] }
 0xa13   :  { %3105 = vrot.lane.b32.xlu1 %v3068_v14, %s4279_s7  ;;  %3107 = vrot.lane.b32.xlu0 %v3069_v13, %s4279_s7  ;;  %v3072_v13 = vmul.f32 %v6281_v33, %v3042_v37  ;;  %v3073_v14 = vmul.f32 %v6273_v61, %v3044_v28  ;;  %v4143_v37 = vld [vmem:[%s8463_s1 + $0x7d8] sm:$0x3f]  ;;  %v4145_v28 = vld [vmem:[%s8463_s1 + $0x7e8] sm:$0x3f] }
 0xa14   :  { %v3054_v62 = vpop.permute.xlu1 %3053 }
 0xa15   :  { %v3070_v60 = vmul.f32 %v4073_v43, %v3054_v62  ;;  %v3078_v47 = vmul.f32 %v6281_v33, %v3054_v62  ;;  %v4144_v43 = vld [vmem:[%s8463_s1 + $0x7e0] sm:$0xff]  ;;  %v4147_v62 = vld [vmem:[%s8463_s1 + $0x7f8] sm:$0x3f] }
 0xa17   :  { %3109 = vrot.lane.b32.xlu1 %v3070_v60, %s4279_s7  ;;  %3111 = vrot.lane.b32.xlu0 %v3071_v32, %s4279_s7  ;;  %v3076_v60 = vmul.f32 %v6281_v33, %v3050_v26  ;;  %v3077_v32 = vmul.f32 %v6273_v61, %v3052_v36  ;;  %v4142_v36 = vld [vmem:[%s8463_s1 + $0x7d0] sm:$0xff] }
 0xa18   :  { %v4146_v26 = vld [vmem:[%s8463_s1 + $0x7f0] sm:$0xff] }
 0xa1b   :  { %3113 = vrot.lane.b32.xlu1 %v3072_v13, %s4279_s7  ;;  %3115 = vrot.lane.b32.xlu0 %v3073_v14, %s4279_s7 }
 0xa1f   :  { %3117 = vrot.lane.b32.xlu1 %v3074_v3, %s4279_s7  ;;  %3119 = vrot.lane.b32.xlu0 %v3075_v34, %s4279_s7 }
 0xa23   :  { %3121 = vrot.lane.b32.xlu1 %v3076_v60, %s4279_s7  ;;  %3123 = vrot.lane.b32.xlu0 %v3077_v32, %s4279_s7 }
 0xa27   :  { %3125 = vrot.lane.b32.xlu1 %v3078_v47, %s4279_s7  ;;  %3176 = vrot.lane.b32.xlu0 %v4140_v35, %s4278_s13 }
 0xa2b   :  { %3178 = vrot.lane.b32.xlu1 %v4141_v39, %s4278_s13  ;;  %3180 = vrot.lane.b32.xlu0 %v4142_v36, %s4278_s13 }
 0xa2f   :  { %3182 = vrot.lane.b32.xlu1 %v4143_v37, %s4278_s13  ;;  %3184 = vrot.lane.b32.xlu0 %v4144_v43, %s4278_s13 }
 0xa33   :  { %3186 = vrot.lane.b32.xlu1 %v4145_v28, %s4278_s13  ;;  %3188 = vrot.lane.b32.xlu0 %v4146_v26, %s4278_s13 }
 0xa37   :  { %3190 = vrot.lane.b32.xlu1 %v4147_v62, %s4278_s13 }
 0xa79   :  { %v6329_v13 = vpop.permute.xlu0 %3095 }
 0xa7a   :  { %8795 = vst [vmem:[#allocation256_spill] sm:$0xff] %v6329_v13 }
 0xa7d   :  { %v6331_v14 = vpop.permute.xlu1 %3097  ;;  %v6333_v3 = vpop.permute.xlu0 %3099 }
 0xa7e   :  { %8796 = vst [vmem:[#allocation257_spill] sm:$0xff] %v6331_v14  ;;  %8797 = vst [vmem:[#allocation258_spill] sm:$0xff] %v6333_v3 }
 0xa81   :  { %v6335_v34 = vpop.permute.xlu1 %3101  ;;  %v6337_v60 = vpop.permute.xlu0 %3103 }
 0xa82   :  { %8798 = vst [vmem:[#allocation259_spill] sm:$0xff] %v6335_v34  ;;  %8799 = vst [vmem:[#allocation260_spill] sm:$0xff] %v6337_v60 }
 0xa85   :  { %v6339_v32 = vpop.permute.xlu1 %3105  ;;  %v6341_v35 = vpop.permute.xlu0 %3107 }
 0xa86   :  { %8800 = vst [vmem:[#allocation261_spill] sm:$0xff] %v6339_v32  ;;  %8801 = vst [vmem:[#allocation262_spill] sm:$0xff] %v6341_v35  ;;  %v6362_v35 = vld [vmem:[%s8464_s0 + $0x32] sm:$0xff] }
 0xa87   :  { %8809 = vst [vmem:[#allocation270_spill] sm:$0xff] %v6362_v35 }
 0xa89   :  { %v6343_v47 = vpop.permute.xlu1 %3109  ;;  %v6345_v39 = vpop.permute.xlu0 %3111 }
 0xa8a   :  { %8802 = vst [vmem:[#allocation263_spill] sm:$0xff] %v6343_v47  ;;  %8803 = vst [vmem:[#allocation264_spill] sm:$0xff] %v6345_v39 }
 0xa8d   :  { %v6347_v36 = vpop.permute.xlu1 %3113  ;;  %v6349_v37 = vpop.permute.xlu0 %3115 }
 0xa8e   :  { %8804 = vst [vmem:[#allocation265_spill] sm:$0xff] %v6347_v36  ;;  %8805 = vst [vmem:[#allocation266_spill] sm:$0xff] %v6349_v37 }
 0xa91   :  { %v6351_v43 = vpop.permute.xlu1 %3117  ;;  %v6353_v28 = vpop.permute.xlu0 %3119 }
 0xa92   :  { %8806 = vst [vmem:[#allocation267_spill] sm:$0xff] %v6351_v43  ;;  %8807 = vst [vmem:[#allocation268_spill] sm:$0xff] %v6353_v28  ;;  %v6371_v28 = vld [vmem:[%s8464_s0 + $0x3a] sm:$0x3f] }
 0xa93   :  { %8810 = vst [vmem:[#allocation271_spill] sm:$0xff] %v6371_v28 }
 0xa95   :  { %v6355_v26 = vpop.permute.xlu1 %3121  ;;  %v6357_v62 = vpop.permute.xlu0 %3123 }
 0xa96   :  { %8808 = vst [vmem:[#allocation269_spill] sm:$0xff] %v6355_v26 }
 0xa99   :  { %v6364_v47 = vpop.permute.xlu1 %3125  ;;  %v3177_v39 = vpop.permute.xlu0 %3176 }
 0xa9a   :  { %v3200_v36 = vmul.f32 %v6362_v35, %v3177_v39 }
 0xa9c   :  { %3232 = vrot.lane.b32.xlu0 %v3200_v36, %s4279_s7 }
 0xa9d   :  { %v3179_v26 = vpop.permute.xlu1 %3178  ;;  %v3181_v43 = vpop.permute.xlu0 %3180 }
 0xa9e   :  { %v3201_v37 = vmul.f32 %v6371_v28, %v3179_v26  ;;  %v3202_v32 = vmul.f32 %v6362_v35, %v3181_v43 }
 0xaa0   :  { %3234 = vrot.lane.b32.xlu1 %v3201_v37, %s4279_s7  ;;  %3236 = vrot.lane.b32.xlu0 %v3202_v32, %s4279_s7  ;;  %v6388_v32 = vld [vmem:[%s8464_s0 + $0x72] sm:$0xff] }
 0xaa1   :  { %v3183_v60 = vpop.permute.xlu1 %3182  ;;  %v3185_v34 = vpop.permute.xlu0 %3184 }
 0xaa2   :  { %v3203_v3 = vmul.f32 %v6371_v28, %v3183_v60  ;;  %v3204_v36 = vmul.f32 %v6362_v35, %v3185_v34 }
 0xaa4   :  { %3238 = vrot.lane.b32.xlu1 %v3203_v3, %s4279_s7  ;;  %3240 = vrot.lane.b32.xlu0 %v3204_v36, %s4279_s7  ;;  %v3208_v3 = vmul.f32 %v6388_v32, %v3177_v39 }
 0xaa5   :  { %v3187_v14 = vpop.permute.xlu1 %3186  ;;  %v3189_v13 = vpop.permute.xlu0 %3188 }
 0xaa6   :  { %v3205_v59 = vmul.f32 %v6371_v28, %v3187_v14  ;;  %v3206_v12 = vmul.f32 %v6362_v35, %v3189_v13  ;;  %v3210_v35 = vmul.f32 %v6388_v32, %v3181_v43  ;;  %v4152_v43 = vld [vmem:[%s8463_s1 + $0x820] sm:$0xff] }
 0xaa8   :  { %3242 = vrot.lane.b32.xlu1 %v3205_v59, %s4279_s7  ;;  %3244 = vrot.lane.b32.xlu0 %v3206_v12, %s4279_s7  ;;  %v6397_v59 = vld [vmem:[%s8464_s0 + $0x7a] sm:$0x3f] }
 0xaa9   :  { %v3191_v37 = vpop.permute.xlu1 %3190  ;;  %v3209_v12 = vmul.f32 %v6397_v59, %v3179_v26  ;;  %v3211_v39 = vmul.f32 %v6397_v59, %v3183_v60  ;;  %v4154_v26 = vld [vmem:[%s8463_s1 + $0x830] sm:$0xff] }
 0xaaa   :  { %v3207_v36 = vmul.f32 %v6371_v28, %v3191_v37  ;;  %v3212_v28 = vmul.f32 %v6388_v32, %v3185_v34  ;;  %v3215_v60 = vmul.f32 %v6397_v59, %v3191_v37  ;;  %v4151_v34 = vld [vmem:[%s8463_s1 + $0x818] sm:$0x3f] }
 0xaab   :  { %v4155_v37 = vld [vmem:[%s8463_s1 + $0x838] sm:$0x3f] }
 0xaac   :  { %3246 = vrot.lane.b32.xlu1 %v3207_v36, %s4279_s7  ;;  %3248 = vrot.lane.b32.xlu0 %v3208_v3, %s4279_s7  ;;  %v3213_v3 = vmul.f32 %v6397_v59, %v3187_v14  ;;  %v3214_v36 = vmul.f32 %v6388_v32, %v3189_v13  ;;  %v4149_v14 = vld [vmem:[%s8463_s1 + $0x808] sm:$0x3f]  ;;  %v4150_v13 = vld [vmem:[%s8463_s1 + $0x810] sm:$0xff] }
 0xab0   :  { %3250 = vrot.lane.b32.xlu1 %v3209_v12, %s4279_s7  ;;  %3252 = vrot.lane.b32.xlu0 %v3210_v35, %s4279_s7  ;;  %v4148_v35 = vld [vmem:[%s8463_s1 + $0x800] sm:$0xff] }
 0xab4   :  { %3254 = vrot.lane.b32.xlu1 %v3211_v39, %s4279_s7  ;;  %3256 = vrot.lane.b32.xlu0 %v3212_v28, %s4279_s7  ;;  %v4153_v28 = vld [vmem:[%s8463_s1 + $0x828] sm:$0x3f] }
 0xab8   :  { %3258 = vrot.lane.b32.xlu1 %v3213_v3, %s4279_s7  ;;  %3260 = vrot.lane.b32.xlu0 %v3214_v36, %s4279_s7 }
 0xabc   :  { %3262 = vrot.lane.b32.xlu1 %v3215_v60, %s4279_s7  ;;  %3313 = vrot.lane.b32.xlu0 %v4148_v35, %s4280_s29 }
 0xac0   :  { %3315 = vrot.lane.b32.xlu1 %v4149_v14, %s4280_s29  ;;  %3317 = vrot.lane.b32.xlu0 %v4150_v13, %s4280_s29 }
 0xac4   :  { %3319 = vrot.lane.b32.xlu1 %v4151_v34, %s4280_s29  ;;  %3321 = vrot.lane.b32.xlu0 %v4152_v43, %s4280_s29 }
 0xac8   :  { %3323 = vrot.lane.b32.xlu1 %v4153_v28, %s4280_s29  ;;  %3325 = vrot.lane.b32.xlu0 %v4154_v26, %s4280_s29 }
 0xacc   :  { %3327 = vrot.lane.b32.xlu1 %v4155_v37, %s4280_s29 }
 0xb0e   :  { %v6445_v12 = vpop.permute.xlu0 %3232 }
 0xb0f   :  { %8811 = vst [vmem:[#allocation272_spill] sm:$0xff] %v6445_v12 }
 0xb12   :  { %v6447_v39 = vpop.permute.xlu1 %3234  ;;  %v6449_v3 = vpop.permute.xlu0 %3236 }
 0xb13   :  { %8812 = vst [vmem:[#allocation273_spill] sm:$0xff] %v6447_v39  ;;  %8813 = vst [vmem:[#allocation274_spill] sm:$0xff] %v6449_v3 }
 0xb16   :  { %v6451_v36 = vpop.permute.xlu1 %3238  ;;  %v6453_v35 = vpop.permute.xlu0 %3240 }
 0xb17   :  { %8814 = vst [vmem:[#allocation275_spill] sm:$0xff] %v6451_v36  ;;  %8815 = vst [vmem:[#allocation276_spill] sm:$0xff] %v6453_v35 }
 0xb1a   :  { %v6455_v60 = vpop.permute.xlu1 %3242  ;;  %v6457_v14 = vpop.permute.xlu0 %3244 }
 0xb1b   :  { %8816 = vst [vmem:[#allocation277_spill] sm:$0xff] %v6455_v60  ;;  %8817 = vst [vmem:[#allocation278_spill] sm:$0xff] %v6457_v14 }
 0xb1e   :  { %v6459_v13 = vpop.permute.xlu1 %3246  ;;  %v6461_v34 = vpop.permute.xlu0 %3248 }
 0xb1f   :  { %8818 = vst [vmem:[#allocation279_spill] sm:$0xff] %v6459_v13  ;;  %8819 = vst [vmem:[#allocation280_spill] sm:$0xff] %v6461_v34 }
 0xb22   :  { %v6463_v43 = vpop.permute.xlu1 %3250  ;;  %v6465_v28 = vpop.permute.xlu0 %3252 }
 0xb23   :  { %8820 = vst [vmem:[#allocation281_spill] sm:$0xff] %v6463_v43  ;;  %8821 = vst [vmem:[#allocation282_spill] sm:$0xff] %v6465_v28 }
 0xb26   :  { %v6467_v26 = vpop.permute.xlu1 %3254  ;;  %v6469_v37 = vpop.permute.xlu0 %3256 }
 0xb27   :  { %8822 = vst [vmem:[#allocation283_spill] sm:$0xff] %v6467_v26  ;;  %8823 = vst [vmem:[#allocation284_spill] sm:$0xff] %v6469_v37 }
 0xb2a   :  { %v6471_v3 = vpop.permute.xlu1 %3258  ;;  %v6473_v36 = vpop.permute.xlu0 %3260 }
 0xb2b   :  { %8824 = vst [vmem:[#allocation285_spill] sm:$0xff] %v6471_v3 }
 0xb2e   :  { %v6475_v35 = vpop.permute.xlu1 %3262  ;;  %v3314_v60 = vpop.permute.xlu0 %3313 }
 0xb2f   :  { %v3337_v14 = vmul.f32 %v6026_v52, %v3314_v60 }
 0xb31   :  { %3369 = vrot.lane.b32.xlu0 %v3337_v14, %s4281_s18 }
 0xb32   :  { %v3316_v34 = vpop.permute.xlu1 %3315  ;;  %v3318_v13 = vpop.permute.xlu0 %3317 }
 0xb33   :  { %v3338_v43 = vmul.f32 %v6035_v1, %v3316_v34  ;;  %v3339_v28 = vmul.f32 %v6026_v52, %v3318_v13 }
 0xb35   :  { %3371 = vrot.lane.b32.xlu1 %v3338_v43, %s4281_s18  ;;  %3373 = vrot.lane.b32.xlu0 %v3339_v28, %s4281_s18  ;;  %v3345_v28 = vmul.f32 %v6052_v27, %v3314_v60  ;;  %v4157_v60 = vld [vmem:[%s8463_s1 + $0x848] sm:$0x3f] }
 0xb36   :  { %v3320_v3 = vpop.permute.xlu1 %3319  ;;  %v3322_v37 = vpop.permute.xlu0 %3321 }
 0xb37   :  { %v3340_v26 = vmul.f32 %v6035_v1, %v3320_v3  ;;  %v3341_v39 = vmul.f32 %v6026_v52, %v3322_v37 }
 0xb39   :  { %3375 = vrot.lane.b32.xlu1 %v3340_v26, %s4281_s18  ;;  %3377 = vrot.lane.b32.xlu0 %v3341_v39, %s4281_s18  ;;  %v3346_v39 = vmul.f32 %v6061_v20, %v3316_v34  ;;  %v3347_v26 = vmul.f32 %v6052_v27, %v3318_v13  ;;  %v4159_v13 = vld [vmem:[%s8463_s1 + $0x858] sm:$0x3f]  ;;  %v4160_v34 = vld [vmem:[%s8463_s1 + $0x860] sm:$0xff] }
 0xb3a   :  { %v3324_v14 = vpop.permute.xlu1 %3323  ;;  %v3326_v12 = vpop.permute.xlu0 %3325 }
 0xb3b   :  { %v3342_v58 = vmul.f32 %v6035_v1, %v3324_v14  ;;  %v3343_v17 = vmul.f32 %v6026_v52, %v3326_v12  ;;  %v3349_v52 = vmul.f32 %v6052_v27, %v3322_v37  ;;  %v4161_v37 = vld [vmem:[%s8463_s1 + $0x868] sm:$0x3f] }
 0xb3d   :  { %3379 = vrot.lane.b32.xlu1 %v3342_v58, %s4281_s18  ;;  %3381 = vrot.lane.b32.xlu0 %v3343_v17, %s4281_s18  ;;  %v3348_v58 = vmul.f32 %v6061_v20, %v3320_v3  ;;  %v4156_v17 = vld [vmem:[%s8463_s1 + $0x840] sm:$0xff] }
 0xb3e   :  { %v3328_v43 = vpop.permute.xlu1 %3327 }
 0xb3f   :  { %v3344_v9 = vmul.f32 %v6035_v1, %v3328_v43  ;;  %v3350_v1 = vmul.f32 %v6061_v20, %v3324_v14  ;;  %v3352_v3 = vmul.f32 %v6061_v20, %v3328_v43  ;;  %v4162_v14 = vld [vmem:[%s8463_s1 + $0x870] sm:$0xff]  ;;  %v4163_v43 = vld [vmem:[%s8463_s1 + $0x878] sm:$0x3f] }
 0xb41   :  { %3383 = vrot.lane.b32.xlu1 %v3344_v9, %s4281_s18  ;;  %3385 = vrot.lane.b32.xlu0 %v3345_v28, %s4281_s18  ;;  %v3351_v9 = vmul.f32 %v6052_v27, %v3326_v12  ;;  %v4158_v12 = vld [vmem:[%s8463_s1 + $0x850] sm:$0xff] }
 0xb42   :  { %v6544_v28 = vld [vmem:[%s8463_s1 + $0x30] sm:$0xff] }
 0xb43   :  { %8825 = vst [vmem:[#allocation286_spill] sm:$0xff] %v6544_v28 }
 0xb45   :  { %3387 = vrot.lane.b32.xlu1 %v3346_v39, %s4281_s18  ;;  %3389 = vrot.lane.b32.xlu0 %v3347_v26, %s4281_s18  ;;  %v6549_v39 = vld [vmem:[%s8463_s1 + $0x70] sm:$0xff]  ;;  %v6554_v26 = vld [vmem:[%s8464_s0 + $0x40] sm:$0xff] }
 0xb46   :  { %8826 = vst [vmem:[#allocation287_spill] sm:$0xff] %v6554_v26 }
 0xb49   :  { %3391 = vrot.lane.b32.xlu1 %v3348_v58, %s4281_s18  ;;  %3393 = vrot.lane.b32.xlu0 %v3349_v52, %s4281_s18  ;;  %v51_v58 = vmul.f32 %v6554_v26, %v6544_v28  ;;  %v6561_v52 = vld [vmem:[%s8464_s0 + $0x50] sm:$0xff]  ;;  %v6621_v26 = vld [vmem:[%s8464_s0 + $0x68] sm:$0x3f] }
 0xb4a   :  { %8827 = vst [vmem:[#allocation288_spill] sm:$0xff] %v6561_v52  ;;  %8837 = vst [vmem:[#allocation298_spill] sm:$0xff] %v6621_v26 }
 0xb4d   :  { %3395 = vrot.lane.b32.xlu1 %v3350_v1, %s4281_s18  ;;  %3397 = vrot.lane.b32.xlu0 %v3351_v9, %s4281_s18  ;;  %v92_v1 = vmul.f32 %v6561_v52, %v6549_v39  ;;  %v6568_v9 = vld [vmem:[%s8463_s1 + $0xb0] sm:$0xff] }
 0xb4e   :  { %8828 = vst [vmem:[#allocation289_spill] sm:$0xff] %v6568_v9 }
 0xb51   :  { %3399 = vrot.lane.b32.xlu1 %v3352_v3, %s4281_s18  ;;  %3450 = vrot.lane.b32.xlu0 %v4156_v17, %s4280_s29  ;;  %v6573_v17 = vld [vmem:[%s8463_s1 + $0x38] sm:$0x3f] }
 0xb52   :  { %8829 = vst [vmem:[#allocation290_spill] sm:$0xff] %v6573_v17  ;;  %v6578_v3 = vld [vmem:[%s8463_s1 + $0x78] sm:$0x3f] }
 0xb53   :  { %8830 = vst [vmem:[#allocation291_spill] sm:$0xff] %v6578_v3 }
 0xb55   :  { %3452 = vrot.lane.b32.xlu1 %v4157_v60, %s4280_s29  ;;  %3454 = vrot.lane.b32.xlu0 %v4158_v12, %s4280_s29  ;;  %v108_v60 = vadd.f32 %v92_v1, %v51_v58  ;;  %v6583_v12 = vld [vmem:[%s8464_s0 + $0x60] sm:$0xff]  ;;  %v6604_v58 = vld [vmem:[%s8463_s1 + $0xf0] sm:$0xff] }
 0xb56   :  { %8831 = vst [vmem:[#allocation292_spill] sm:$0xff] %v6583_v12  ;;  %8834 = vst [vmem:[#allocation295_spill] sm:$0xff] %v6604_v58  ;;  %v6609_v1 = vld [vmem:[%s8463_s1 + $0xb8] sm:$0x3f] }
 0xb57   :  { %8835 = vst [vmem:[#allocation296_spill] sm:$0xff] %v6609_v1 }
 0xb59   :  { %3456 = vrot.lane.b32.xlu1 %v4159_v13, %s4280_s29  ;;  %3458 = vrot.lane.b32.xlu0 %v4160_v34, %s4280_s29  ;;  %v133_v13 = vmul.f32 %v6583_v12, %v6568_v9  ;;  %v6590_v34 = vld [vmem:[%s8464_s0 + $0x48] sm:$0x3f] }
 0xb5a   :  { %8832 = vst [vmem:[#allocation293_spill] sm:$0xff] %v6590_v34 }
 0xb5b   :  { %v149_v12 = vadd.f32 %v133_v13, %v108_v60  ;;  %v6628_v60 = vld [vmem:[%s8463_s1 + $0xf8] sm:$0x3f] }
 0xb5d   :  { %3460 = vrot.lane.b32.xlu1 %v4161_v37, %s4280_s29  ;;  %3462 = vrot.lane.b32.xlu0 %v4162_v14, %s4280_s29  ;;  %v52_v37 = vmul.f32 %v6590_v34, %v6573_v17  ;;  %v6597_v14 = vld [vmem:[%s8464_s0 + $0x58] sm:$0x3f]  ;;  %v6614_v34 = vld [vmem:[%s8464_s0 + $0x70] sm:$0xff]  ;;  %v134_v17 = vmul.f32 %v6621_v26, %v6609_v1 }
 0xb5e   :  { %8833 = vst [vmem:[#allocation294_spill] sm:$0xff] %v6597_v14  ;;  %8836 = vst [vmem:[#allocation297_spill] sm:$0xff] %v6614_v34  ;;  %v174_v52 = vmul.f32 %v6614_v34, %v6604_v58  ;;  %v6633_v34 = vld [vmem:[%s8464_s0 + $0x78] sm:$0x3f] }
 0xb5f   :  { %8838 = vst [vmem:[#allocation299_spill] sm:$0xff] %v6633_v34 }
 0xb60   :  { %v190_v13 = vadd.f32 %v174_v52, %v149_v12 }
 0xb61   :  { %3464 = vrot.lane.b32.xlu1 %v4163_v43, %s4280_s29  ;;  %v93_v43 = vmul.f32 %v6597_v14, %v6578_v3 }
 0xb63   :  { %v109_v14 = vadd.f32 %v93_v43, %v52_v37  ;;  %v175_v37 = vmul.f32 %v6633_v34, %v6628_v60  ;;  %v327_v43 = vadd.f32 %v4609_v10, %v190_v13  ;;  %v4196_v13 = vld [vmem:[%s8464_s0 + $0x61] sm:$0xff] }
 0xb65   :  { %v150_v3 = vadd.f32 %v134_v17, %v109_v14  ;;  %v464_v26 = vadd.f32 %v4641_v30, %v327_v43  ;;  %v3995_v43 = vld [vmem:[%s8463_s1 + $0x3b8] sm:$0x3f] }
 0xb67   :  { %v191_v58 = vadd.f32 %v175_v37, %v150_v3  ;;  %v601_v9 = vadd.f32 %v4673_v50, %v464_v26  ;;  %v4192_v50 = vld [vmem:[%s8464_s0 + $0x41] sm:$0xff]  ;;  %v3987_v26 = vld [vmem:[%s8463_s1 + $0x378] sm:$0x3f]  ;;  %v4002_v37 = vld [vmem:[%s8463_s1 + $0x3f0] sm:$0xff] }
 0xb69   :  { %v328_v1 = vadd.f32 %v4611_v11, %v191_v58  ;;  %v738_v17 = vadd.f32 %v4789_v55, %v601_v9  ;;  %v3978_v11 = vld [vmem:[%s8463_s1 + $0x330] sm:$0xff] }
 0xb6a   :  { %v3994_v9 = vld [vmem:[%s8463_s1 + $0x3b0] sm:$0xff] }
 0xb6b   :  { %v465_v52 = vadd.f32 %v4643_v31, %v328_v1  ;;  %v875_v14 = vadd.f32 %v4885_v23, %v738_v17  ;;  %v3986_v23 = vld [vmem:[%s8463_s1 + $0x370] sm:$0xff] }
 0xb6d   :  { %v602_v12 = vadd.f32 %v4680_v53, %v465_v52  ;;  %v1012_v34 = vadd.f32 %v4981_v24, %v875_v14  ;;  %v1329_v53 = vmul.f32 %v4192_v50, %v3978_v11  ;;  %v4193_v24 = vld [vmem:[%s8464_s0 + $0x51] sm:$0xff] }
 0xb6e   :  { %v4003_v11 = vld [vmem:[%s8463_s1 + $0x3f8] sm:$0x3f] }
 0xb6f   :  { %v739_v28 = vadd.f32 %v4791_v29, %v602_v12  ;;  %v1149_v30 = vadd.f32 %v5077_v51, %v1012_v34  ;;  %v4195_v34 = vld [vmem:[%s8464_s0 + $0x59] sm:$0x3f]  ;;  %v4197_v12 = vld [vmem:[%s8464_s0 + $0x71] sm:$0xff] }
 0xb70   :  { %v1371_v58 = vmul.f32 %v4195_v34, %v3987_v26  ;;  %v1452_v14 = vmul.f32 %v4197_v12, %v4002_v37 }
 0xb71   :  { %v876_v10 = vadd.f32 %v4887_v40, %v739_v28  ;;  %v1286_v55 = vadd.f32 %v5173_v15, %v1149_v30  ;;  %v3979_v40 = vld [vmem:[%s8463_s1 + $0x338] sm:$0x3f]  ;;  %v4194_v15 = vld [vmem:[%s8464_s0 + $0x49] sm:$0x3f] }
 0xb72   :  { %v1330_v28 = vmul.f32 %v4194_v15, %v3979_v40 }
 0xb73   :  { %v1013_v31 = vadd.f32 %v4983_v41, %v876_v10  ;;  %v1370_v41 = vmul.f32 %v4193_v24, %v3986_v23  ;;  %v1345_v51 = vadd.f32 %v1329_v53, %v1286_v55  ;;  %v4198_v10 = vld [vmem:[%s8464_s0 + $0x69] sm:$0x3f]  ;;  %v4199_v53 = vld [vmem:[%s8464_s0 + $0x79] sm:$0x3f] }
 0xb74   :  { %v1412_v30 = vmul.f32 %v4198_v10, %v3995_v43  ;;  %v1453_v55 = vmul.f32 %v4199_v53, %v4003_v11 }
 0xb75   :  { %v1150_v29 = vadd.f32 %v5079_v5, %v1013_v31  ;;  %v1386_v3 = vadd.f32 %v1370_v41, %v1345_v51 }
 0xb77   :  { %v1287_v5 = vadd.f32 %v5180_v38, %v1150_v29  ;;  %v1411_v38 = vmul.f32 %v4196_v13, %v3994_v9 }
 0xb79   :  { %v1346_v1 = vadd.f32 %v1330_v28, %v1287_v5  ;;  %v1427_v17 = vadd.f32 %v1411_v38, %v1386_v3 }
 0xb7b   :  { %v1387_v52 = vadd.f32 %v1371_v58, %v1346_v1  ;;  %v1468_v31 = vadd.f32 %v1452_v14, %v1427_v17  ;;  %v4106_v1 = vld [vmem:[%s8463_s1 + $0x6b0] sm:$0xff]  ;;  %v4107_v17 = vld [vmem:[%s8463_s1 + $0x6b8] sm:$0x3f] }
 0xb7d   :  { %v1428_v50 = vadd.f32 %v1412_v30, %v1387_v52  ;;  %v1605_v29 = vadd.f32 %v5289_v19, %v1468_v31  ;;  %v4114_v52 = vld [vmem:[%s8463_s1 + $0x6f0] sm:$0xff]  ;;  %v2690_v30 = vmul.f32 %v4107_v17, %v6281_v33  ;;  %v4115_v31 = vld [vmem:[%s8463_s1 + $0x6f8] sm:$0x3f] }
 0xb7e   :  { %v2730_v10 = vmul.f32 %v4114_v52, %v6388_v32  ;;  %v6867_v52 = vld [vmem:[%s8464_s0] sm:$0xff] }
 0xb7f   :  { %v1469_v23 = vadd.f32 %v1453_v55, %v1428_v50  ;;  %v1742_v40 = vadd.f32 %v5405_v25, %v1605_v29  ;;  %v2731_v55 = vmul.f32 %v4115_v31, %v6397_v59  ;;  %v6892_v31 = vld [vmem:[%s8463_s1 + $0x10] sm:$0xff] }
 0xb81   :  { %v1606_v24 = vadd.f32 %v5296_v21, %v1469_v23  ;;  %v1879_v41 = vadd.f32 %v5521_v8, %v1742_v40 }
 0xb83   :  { %v1743_v51 = vadd.f32 %v5412_v63, %v1606_v24  ;;  %v2016_v15 = vadd.f32 %v5637_v18, %v1879_v41  ;;  %v4090_v63 = vld [vmem:[%s8463_s1 + $0x630] sm:$0xff] }
 0xb85   :  { %v1880_v28 = vadd.f32 %v5528_v56, %v1743_v51  ;;  %v2153_v5 = vadd.f32 %v5733_v49, %v2016_v15  ;;  %v2607_v56 = vmul.f32 %v4090_v63, %v6052_v27 }
 0xb87   :  { %v2017_v26 = vadd.f32 %v5639_v48, %v1880_v28  ;;  %v2290_v9 = vadd.f32 %v5829_v42, %v2153_v5 }
 0xb89   :  { %v2154_v25 = vadd.f32 %v5735_v22, %v2017_v26  ;;  %v2427_v21 = vadd.f32 %v5925_v4, %v2290_v9  ;;  %v4098_v22 = vld [vmem:[%s8463_s1 + $0x670] sm:$0xff]  ;;  %v4091_v4 = vld [vmem:[%s8463_s1 + $0x638] sm:$0x3f] }
 0xb8a   :  { %v2608_v27 = vmul.f32 %v4091_v4, %v6061_v20  ;;  %v2689_v20 = vmul.f32 %v4106_v1, %v6273_v61  ;;  %v4168_v4 = vld [vmem:[%s8463_s1 + $0x8a0] sm:$0xff] }
 0xb8b   :  { %v2291_v8 = vadd.f32 %v5831_v57, %v2154_v25  ;;  %v2564_v18 = vadd.f32 %v6021_v0, %v2427_v21  ;;  %v2648_v57 = vmul.f32 %v4098_v22, %v6168_v6  ;;  %v4167_v22 = vld [vmem:[%s8463_s1 + $0x898] sm:$0x3f]  ;;  %v4172_v1 = vld [vmem:[%s8463_s1 + $0x8c0] sm:$0xff] }
 0xb8d   :  { %v2428_v42 = vadd.f32 %v5927_v16, %v2291_v8  ;;  %v2623_v3 = vadd.f32 %v2607_v56, %v2564_v18  ;;  %v4099_v16 = vld [vmem:[%s8463_s1 + $0x678] sm:$0x3f]  ;;  %v4164_v56 = vld [vmem:[%s8463_s1 + $0x880] sm:$0xff]  ;;  %v4165_v18 = vld [vmem:[%s8463_s1 + $0x888] sm:$0x3f] }
 0xb8e   :  { %v2649_v38 = vmul.f32 %v4099_v16, %v6177_v2  ;;  %v6844_v16 = vld [vmem:[%s8463_s1 + $0x40] sm:$0xff] }
 0xb8f   :  { %v2565_v0 = vadd.f32 %v6028_v45, %v2428_v42  ;;  %v2664_v13 = vadd.f32 %v2648_v57, %v2623_v3  ;;  %v4166_v42 = vld [vmem:[%s8463_s1 + $0x890] sm:$0xff]  ;;  %v4169_v57 = vld [vmem:[%s8463_s1 + $0x8a8] sm:$0x3f] }
 0xb90   :  { %v4170_v3 = vld [vmem:[%s8463_s1 + $0x8b0] sm:$0xff] }
 0xb91   :  { %v2624_v37 = vadd.f32 %v2608_v27, %v2565_v0  ;;  %v2705_v14 = vadd.f32 %v2689_v20, %v2664_v13  ;;  %v4171_v27 = vld [vmem:[%s8463_s1 + $0x8b8] sm:$0x3f]  ;;  %v6837_v0 = vld [vmem:[%s8463_s1] sm:$0xff]  ;;  %v4173_v13 = vld [vmem:[%s8463_s1 + $0x8c8] sm:$0x3f] }
 0xb92   :  { %v6862_v20 = vld [vmem:[%s8463_s1 + $0x80] sm:$0xff]  ;;  %v37_v17 = vmul.f32 %v6867_v52, %v6837_v0 }
 0xb93   :  { %v2665_v12 = vadd.f32 %v2649_v38, %v2624_v37  ;;  %v2746_v50 = vadd.f32 %v2730_v10, %v2705_v14  ;;  %v6855_v38 = vld [vmem:[%s8464_s0 + $0x10] sm:$0xff]  ;;  %v4175_v10 = vld [vmem:[%s8463_s1 + $0x8d8] sm:$0x3f] }
 0xb94   :  { %v78_v37 = vmul.f32 %v6855_v38, %v6844_v16  ;;  %v4174_v14 = vld [vmem:[%s8463_s1 + $0x8d0] sm:$0xff] }
 0xb95   :  { %v2706_v53 = vadd.f32 %v2690_v30, %v2665_v12  ;;  %v2883_v32 = vadd.f32 %v6137_v46, %v2746_v50  ;;  %v6876_v12 = vld [vmem:[%s8463_s1 + $0x8] sm:$0x3f]  ;;  %v6897_v50 = vld [vmem:[%s8463_s1 + $0x50] sm:$0xff] }
 0xb96   :  { %v6887_v30 = vld [vmem:[%s8463_s1 + $0x48] sm:$0x3f] }
 0xb97   :  { %v2747_v40 = vadd.f32 %v2731_v55, %v2706_v53  ;;  %v3020_v33 = vadd.f32 %v6253_v7, %v2883_v32  ;;  %v6902_v53 = vld [vmem:[%s8464_s0 + $0x20] sm:$0xff]  ;;  %v94_v32 = vadd.f32 %v78_v37, %v37_v17  ;;  %v6974_v37 = vld [vmem:[%s8463_s1 + $0xc8] sm:$0x3f]  ;;  %v6979_v17 = vld [vmem:[%s8463_s1 + $0xd0] sm:$0xff] }
 0xb98   :  { %v119_v55 = vmul.f32 %v6902_v53, %v6862_v20 }
 0xb99   :  { %v2884_v51 = vadd.f32 %v6144_v54, %v2747_v40  ;;  %v3157_v15 = vadd.f32 %v6357_v62, %v3020_v33  ;;  %v8852_v54 = vld [vmem:[#allocation240_spill] sm:$0xff]  ;;  %v6911_v40 = vld [vmem:[%s8463_s1 + $0xc0] sm:$0xff]  ;;  %v6916_v33 = vld [vmem:[%s8464_s0 + $0x18] sm:$0x3f] }
 0xb9b   :  { %v3021_v28 = vadd.f32 %v6258_v44, %v2884_v51  ;;  %v3294_v59 = vadd.f32 %v6473_v36, %v3157_v15  ;;  %v79_v51 = vmul.f32 %v6916_v33, %v6887_v30  ;;  %v6923_v15 = vld [vmem:[%s8464_s0 + $0x8] sm:$0x3f] }
 0xb9d   :  { %v3158_v46 = vadd.f32 %v6364_v47, %v3021_v28  ;;  %v8853_v47 = vld [vmem:[#allocation241_spill] sm:$0xff]  ;;  %v38_v28 = vmul.f32 %v6923_v15, %v6876_v12 }
 0xb9f   :  { %v3295_v7 = vadd.f32 %v6475_v35, %v3158_v46  ;;  %v4176_v46 = vld [vmem:[%s8463_s1 + $0x8e0] sm:$0xff] }
 0xba3   :  { %v6711_v19 = vpop.permute.xlu0 %3369 }
 0xba7   :  { %v6721_v49 = vpop.permute.xlu1 %3371  ;;  %v6723_v48 = vpop.permute.xlu0 %3373 }
 0xbab   :  { %v6735_v34 = vpop.permute.xlu1 %3375  ;;  %v6737_v58 = vpop.permute.xlu0 %3377 }
 0xbac   :  { %8839 = vst [vmem:[#allocation300_spill] sm:$0xff] %v6735_v34  ;;  %8840 = vst [vmem:[#allocation301_spill] sm:$0xff] %v6737_v58  ;;  %v8900_v58 = vld [vmem:[#allocation115_spill] sm:$0xff] }
 0xbaf   :  { %v6747_v43 = vpop.permute.xlu1 %3379  ;;  %v6749_v45 = vpop.permute.xlu0 %3381 }
 0xbb0   :  { %8841 = vst [vmem:[#allocation302_spill] sm:$0xff] %v6747_v43  ;;  %8842 = vst [vmem:[#allocation303_spill] sm:$0xff] %v6749_v45  ;;  %v8899_v45 = vld [vmem:[#allocation128_spill] sm:$0xff] }
 0xbb3   :  { %v6759_v11 = vpop.permute.xlu1 %3383  ;;  %v6761_v61 = vpop.permute.xlu0 %3385 }
 0xbb4   :  { %8843 = vst [vmem:[#allocation304_spill] sm:$0xff] %v6759_v11  ;;  %8844 = vst [vmem:[#allocation305_spill] sm:$0xff] %v6761_v61 }
 0xbb7   :  { %v6767_v29 = vpop.permute.xlu1 %3387  ;;  %v6769_v23 = vpop.permute.xlu0 %3389 }
 0xbb8   :  { %8845 = vst [vmem:[#allocation306_spill] sm:$0xff] %v6767_v29  ;;  %8846 = vst [vmem:[#allocation307_spill] sm:$0xff] %v6769_v23 }
 0xbbb   :  { %v6773_v24 = vpop.permute.xlu1 %3391  ;;  %v6775_v41 = vpop.permute.xlu0 %3393 }
 0xbbc   :  { %8847 = vst [vmem:[#allocation308_spill] sm:$0xff] %v6773_v24  ;;  %8848 = vst [vmem:[#allocation309_spill] sm:$0xff] %v6775_v41  ;;  %v8855_v41 = vld [vmem:[#allocation16_spill] sm:$0xff]  ;;  %v8858_v24 = vld [vmem:[#allocation30_spill] sm:$0xff] }
 0xbbf   :  { %v6781_v5 = vpop.permute.xlu1 %3395  ;;  %v3398_v26 = vpop.permute.xlu0 %3397 }
 0xbc0   :  { %8849 = vst [vmem:[#allocation310_spill] sm:$0xff] %v6781_v5  ;;  %v6784_v9 = vadd.f32 %v3398_v26, %v3294_v59  ;;  %v80_v59 = vmul.f32 %v6855_v38, %v6897_v50  ;;  %v39_v26 = vmul.f32 %v6867_v52, %v6892_v31 }
 0xbc2   :  { %8850 = vst [vmem:[#allocation311_spill] sm:$0xff] %v6784_v9 }
 0xbc3   :  { %v3400_v25 = vpop.permute.xlu1 %3399  ;;  %v6787_v21 = vpop.permute.xlu0 %3450 }
 0xbc4   :  { %v6789_v63 = vadd.f32 %v3400_v25, %v3295_v7  ;;  %v3474_v62 = vmul.f32 %v8852_v54, %v6787_v21  ;;  %v4177_v7 = vld [vmem:[%s8463_s1 + $0x8e8] sm:$0x3f] }
 0xbc6   :  { %8851 = vst [vmem:[#allocation312_spill] sm:$0xff] %v6789_v63  ;;  %3506 = vrot.lane.b32.xlu0 %v3474_v62, %s4281_s18  ;;  %v6940_v62 = vld [vmem:[%s8463_s1 + $0x88] sm:$0x3f] }
 0xbc7   :  { %v6794_v44 = vpop.permute.xlu1 %3452  ;;  %v6796_v36 = vpop.permute.xlu0 %3454 }
 0xbc8   :  { %v3475_v8 = vmul.f32 %v8853_v47, %v6794_v44  ;;  %v3476_v35 = vmul.f32 %v8852_v54, %v6796_v36 }
 0xbca   :  { %3508 = vrot.lane.b32.xlu1 %v3475_v8, %s4281_s18  ;;  %3510 = vrot.lane.b32.xlu0 %v3476_v35, %s4281_s18  ;;  %v6945_v8 = vld [vmem:[%s8463_s1 + $0x90] sm:$0xff] }
 0xbcb   :  { %v3457_v25 = vpop.permute.xlu1 %3456  ;;  %v3459_v35 = vpop.permute.xlu0 %3458 }
 0xbce   :  { %3587 = vrot.lane.b32.xlu1 %v4164_v56, %s4280_s29  ;;  %3589 = vrot.lane.b32.xlu0 %v4165_v18, %s4280_s29  ;;  %v6950_v56 = vld [vmem:[%s8464_s0 + $0x30] sm:$0xff] }
 0xbcf   :  { %v160_v18 = vmul.f32 %v6950_v56, %v6911_v40 }
 0xbd2   :  { %3591 = vrot.lane.b32.xlu1 %v4166_v42, %s4280_s29  ;;  %3593 = vrot.lane.b32.xlu0 %v4167_v22, %s4280_s29  ;;  %v135_v42 = vadd.f32 %v119_v55, %v94_v32  ;;  %v6959_v22 = vld [vmem:[%s8464_s0 + $0x28] sm:$0x3f]  ;;  %v3477_v55 = vmul.f32 %v8853_v47, %v3457_v25  ;;  %v3478_v32 = vmul.f32 %v8852_v54, %v3459_v35 }
 0xbd6   :  { %3595 = vrot.lane.b32.xlu1 %v4168_v4, %s4280_s29  ;;  %3597 = vrot.lane.b32.xlu0 %v4169_v57, %s4280_s29  ;;  %v120_v4 = vmul.f32 %v6959_v22, %v6940_v62  ;;  %v95_v57 = vadd.f32 %v79_v51, %v38_v28  ;;  %v6988_v51 = vld [vmem:[%s8464_s0 + $0x38] sm:$0x3f] }
 0xbd7   :  { %v161_v28 = vmul.f32 %v6988_v51, %v6974_v37 }
 0xbda   :  { %3599 = vrot.lane.b32.xlu1 %v4170_v3, %s4280_s29  ;;  %3601 = vrot.lane.b32.xlu0 %v4171_v27, %s4280_s29  ;;  %v121_v3 = vmul.f32 %v6902_v53, %v6945_v8  ;;  %v96_v27 = vadd.f32 %v80_v59, %v39_v26  ;;  %v136_v59 = vadd.f32 %v120_v4, %v95_v57 }
 0xbdb   :  { %v162_v26 = vmul.f32 %v6950_v56, %v6979_v17 }
 0xbdc   :  { %v177_v63 = vadd.f32 %v161_v28, %v136_v59  ;;  %v8860_v59 = vld [vmem:[#allocation18_spill] sm:$0xff] }
 0xbde   :  { %3724 = vrot.lane.b32.xlu1 %v4172_v1, %s4280_s29  ;;  %3726 = vrot.lane.b32.xlu0 %v4173_v13, %s4280_s29  ;;  %v4178_v1 = vld [vmem:[%s8463_s1 + $0x8f0] sm:$0xff]  ;;  %v4179_v13 = vld [vmem:[%s8463_s1 + $0x8f8] sm:$0x3f] }
 0xbe2   :  { %3728 = vrot.lane.b32.xlu1 %v4174_v14, %s4280_s29  ;;  %3730 = vrot.lane.b32.xlu0 %v4175_v10, %s4280_s29  ;;  %v3461_v14 = vpop.permute.xlu1 %3460  ;;  %v176_v10 = vadd.f32 %v160_v18, %v135_v42 }
 0xbe3   :  { %v3479_v18 = vmul.f32 %v8853_v47, %v3461_v14 }
 0xbe6   :  { %3732 = vrot.lane.b32.xlu1 %v4176_v46, %s4280_s29  ;;  %3734 = vrot.lane.b32.xlu0 %v4177_v7, %s4280_s29  ;;  %v137_v46 = vadd.f32 %v121_v3, %v96_v27  ;;  %v3463_v7 = vpop.permute.xlu0 %3462  ;;  %v3465_v5 = vpop.permute.xlu1 %3464  ;;  %v8856_v3 = vld [vmem:[#allocation3_spill] sm:$0xff] }
 0xbe7   :  { %v3480_v42 = vmul.f32 %v8852_v54, %v3463_v7  ;;  %v3481_v57 = vmul.f32 %v8853_v47, %v3465_v5  ;;  %v314_v27 = vadd.f32 %v8856_v3, %v177_v63  ;;  %v3482_v54 = vmul.f32 %v6168_v6, %v6787_v21  ;;  %v8862_v47 = vld [vmem:[#allocation31_spill] sm:$0xff]  ;;  %v8863_v63 = vld [vmem:[#allocation32_spill] sm:$0xff]  ;;  %v8866_v3 = vld [vmem:[#allocation46_spill] sm:$0xff] }
 0xbe8   :  { %v178_v9 = vadd.f32 %v162_v26, %v137_v46  ;;  %v3484_v21 = vmul.f32 %v6168_v6, %v6796_v36 }
 0xbea   :  { %3736 = vrot.lane.b32.xlu1 %v4178_v1, %s4280_s29  ;;  %3738 = vrot.lane.b32.xlu0 %v4179_v13, %s4280_s29  ;;  %v8854_v1 = vld [vmem:[#allocation2_spill] sm:$0xff] }
 0xbeb   :  { %v313_v13 = vadd.f32 %v8854_v1, %v176_v10  ;;  %v8859_v10 = vld [vmem:[#allocation17_spill] sm:$0xff] }
 0xbec   :  { %v451_v28 = vadd.f32 %v8859_v10, %v314_v27  ;;  %v8867_v27 = vld [vmem:[#allocation72_spill] sm:$0xff] }
 0xbed   :  { %v450_v4 = vadd.f32 %v8855_v41, %v313_v13  ;;  %v8861_v41 = vld [vmem:[#allocation44_spill] sm:$0xff]  ;;  %v8865_v13 = vld [vmem:[#allocation45_spill] sm:$0xff] }
 0xbee   :  { %3512 = vrot.lane.b32.xlu1 %v3477_v55, %s4281_s18  ;;  %3514 = vrot.lane.b32.xlu0 %v3478_v32, %s4281_s18  ;;  %v8857_v55 = vld [vmem:[#allocation4_spill] sm:$0xff] }
 0xbef   :  { %v315_v32 = vadd.f32 %v8857_v55, %v178_v9  ;;  %v587_v23 = vadd.f32 %v8858_v24, %v450_v4  ;;  %v8864_v9 = vld [vmem:[#allocation58_spill] sm:$0xff]  ;;  %v3483_v24 = vmul.f32 %v6177_v2, %v6794_v44  ;;  %v8869_v44 = vld [vmem:[#allocation59_spill] sm:$0xff]  ;;  %v8870_v10 = vld [vmem:[#allocation60_spill] sm:$0xff] }
 0xbf0   :  { %v7026_v55 = vld [vmem:[%s8463_s1 + $0x300] sm:$0xff] }
 0xbf1   :  { %v452_v26 = vadd.f32 %v8860_v59, %v315_v32  ;;  %v724_v46 = vadd.f32 %v8861_v41, %v587_v23  ;;  %8868 = vst [vmem:[#allocation240_spill] sm:$0xff] %v7026_v55  ;;  %v3485_v32 = vmul.f32 %v6177_v2, %v3457_v25  ;;  %v8871_v59 = vld [vmem:[#allocation86_spill] sm:$0xff]  ;;  %v8872_v41 = vld [vmem:[#allocation73_spill] sm:$0xff] }
 0xbf2   :  { %3516 = vrot.lane.b32.xlu1 %v3479_v18, %s4281_s18  ;;  %3518 = vrot.lane.b32.xlu0 %v3480_v42, %s4281_s18  ;;  %v588_v18 = vadd.f32 %v8862_v47, %v451_v28  ;;  %v8873_v47 = vld [vmem:[#allocation74_spill] sm:$0xff] }
 0xbf3   :  { %v589_v42 = vadd.f32 %v8863_v63, %v452_v26  ;;  %v861_v1 = vadd.f32 %v8864_v9, %v724_v46  ;;  %v7040_v25 = vld [vmem:[%s8464_s0 + $0x1] sm:$0xff]  ;;  %v8876_v63 = vld [vmem:[#allocation100_spill] sm:$0xff] }
 0xbf4   :  { %v725_v4 = vadd.f32 %v8865_v13, %v588_v18  ;;  %8874 = vst [vmem:[#allocation241_spill] sm:$0xff] %v7040_v25  ;;  %v7053_v9 = vld [vmem:[%s8463_s1 + $0x308] sm:$0x3f] }
 0xbf5   :  { %v726_v23 = vadd.f32 %v8866_v3, %v589_v42  ;;  %8877 = vst [vmem:[#allocation16_spill] sm:$0xff] %v7053_v9 }
 0xbf6   :  { %3520 = vrot.lane.b32.xlu1 %v3481_v57, %s4281_s18  ;;  %3522 = vrot.lane.b32.xlu0 %v3482_v54, %s4281_s18  ;;  %v998_v57 = vadd.f32 %v8867_v27, %v861_v1  ;;  %v3486_v54 = vmul.f32 %v6168_v6, %v3459_v35  ;;  %v862_v36 = vadd.f32 %v8869_v44, %v725_v4  ;;  %v7047_v35 = vld [vmem:[%s8463_s1 + $0x340] sm:$0xff]  ;;  %v7058_v1 = vld [vmem:[%s8463_s1 + $0x310] sm:$0xff]  ;;  %v8879_v4 = vld [vmem:[#allocation87_spill] sm:$0xff] }
 0xbf7   :  { %v863_v28 = vadd.f32 %v8870_v10, %v726_v23  ;;  %v1315_v6 = vmul.f32 %v7040_v25, %v7026_v55  ;;  %8875 = vst [vmem:[#allocation2_spill] sm:$0xff] %v7047_v35  ;;  %8878 = vst [vmem:[#allocation3_spill] sm:$0xff] %v7058_v1  ;;  %v8880_v23 = vld [vmem:[#allocation88_spill] sm:$0xff]  ;;  %v8884_v44 = vld [vmem:[#allocation101_spill] sm:$0xff]  ;;  %v1317_v10 = vmul.f32 %v7040_v25, %v7058_v1 }
 0xbf8   :  { %v1135_v26 = vadd.f32 %v8871_v59, %v998_v57  ;;  %v999_v46 = vadd.f32 %v8872_v41, %v862_v36  ;;  %v7071_v57 = vld [vmem:[%s8464_s0 + $0x11] sm:$0xff]  ;;  %v8886_v59 = vld [vmem:[#allocation102_spill] sm:$0xff] }
 0xbf9   :  { %v1000_v18 = vadd.f32 %v8873_v47, %v863_v28  ;;  %8881 = vst [vmem:[#allocation4_spill] sm:$0xff] %v7071_v57  ;;  %v7093_v28 = vld [vmem:[%s8463_s1 + $0x350] sm:$0xff]  ;;  %v7099_v41 = vld [vmem:[%s8463_s1 + $0x380] sm:$0xff] }
 0xbfa   :  { %3524 = vrot.lane.b32.xlu1 %v3483_v24, %s4281_s18  ;;  %3526 = vrot.lane.b32.xlu0 %v3484_v21, %s4281_s18  ;;  %v1272_v42 = vadd.f32 %v8876_v63, %v1135_v26  ;;  %v3487_v24 = vmul.f32 %v6177_v2, %v3461_v14  ;;  %v4209_v21 = vld [vmem:[%s8464_s0 + $0x52] sm:$0xff]  ;;  %v1136_v3 = vadd.f32 %v8879_v4, %v999_v46  ;;  %v7078_v14 = vld [vmem:[%s8464_s0 + $0x9] sm:$0x3f] }
 0xbfb   :  { %v3488_v13 = vmul.f32 %v4209_v21, %v3463_v7  ;;  %v1137_v27 = vadd.f32 %v8880_v23, %v1000_v18  ;;  %v1356_v2 = vmul.f32 %v7071_v57, %v7047_v35  ;;  %8882 = vst [vmem:[#allocation30_spill] sm:$0xff] %v7078_v14  ;;  %v1316_v7 = vmul.f32 %v7078_v14, %v7053_v9  ;;  %v4212_v46 = vld [vmem:[%s8464_s0 + $0x5a] sm:$0x3f]  ;;  %v7135_v23 = vld [vmem:[%s8463_s1 + $0x390] sm:$0xff]  ;;  %v8932_v35 = vld [vmem:[#allocation243_spill] sm:$0xff] }
 0xbfc   :  { %v1273_v36 = vadd.f32 %v8884_v44, %v1136_v3  ;;  %8885 = vst [vmem:[#allocation18_spill] sm:$0xff] %v7093_v28  ;;  %8887 = vst [vmem:[#allocation44_spill] sm:$0xff] %v7099_v41  ;;  %v3489_v47 = vmul.f32 %v4212_v46, %v3465_v5  ;;  %v7109_v18 = vld [vmem:[%s8464_s0 + $0x19] sm:$0x3f]  ;;  %v1358_v63 = vmul.f32 %v7071_v57, %v7093_v28  ;;  %v7118_v5 = vld [vmem:[%s8464_s0 + $0x21] sm:$0xff] }
 0xbfd   :  { %v1274_v26 = vadd.f32 %v8886_v59, %v1137_v27  ;;  %8888 = vst [vmem:[#allocation31_spill] sm:$0xff] %v7109_v18  ;;  %8889 = vst [vmem:[#allocation32_spill] sm:$0xff] %v7118_v5  ;;  %v7130_v3 = vld [vmem:[%s8463_s1 + $0x388] sm:$0x3f]  ;;  %v7141_v27 = vld [vmem:[%s8464_s0 + $0x31] sm:$0xff] }
 0xbfe   :  { %3528 = vrot.lane.b32.xlu1 %v3485_v32, %s4281_s18  ;;  %3530 = vrot.lane.b32.xlu0 %v3486_v54, %s4281_s18  ;;  %v1331_v32 = vadd.f32 %v1315_v6, %v1272_v42  ;;  %v7085_v54 = vld [vmem:[%s8463_s1 + $0x348] sm:$0x3f]  ;;  %v1332_v21 = vadd.f32 %v1316_v7, %v1273_v36  ;;  %8891 = vst [vmem:[#allocation45_spill] sm:$0xff] %v7130_v3  ;;  %8892 = vst [vmem:[#allocation46_spill] sm:$0xff] %v7135_v23  ;;  %v7162_v46 = vld [vmem:[%s8463_s1 + $0x3d0] sm:$0xff] }
 0xbff   :  { %8883 = vst [vmem:[#allocation17_spill] sm:$0xff] %v7085_v54  ;;  %v1357_v6 = vmul.f32 %v7109_v18, %v7085_v54  ;;  %v1333_v4 = vadd.f32 %v1317_v10, %v1274_v26  ;;  %8893 = vst [vmem:[#allocation72_spill] sm:$0xff] %v7141_v27  ;;  %v7148_v7 = vld [vmem:[%s8464_s0 + $0x29] sm:$0x3f]  ;;  %v1399_v26 = vmul.f32 %v7118_v5, %v7135_v23  ;;  %v8901_v23 = vld [vmem:[#allocation116_spill] sm:$0xff] }
 0xc00   :  { %v1372_v42 = vadd.f32 %v1356_v2, %v1331_v32  ;;  %8894 = vst [vmem:[#allocation59_spill] sm:$0xff] %v7148_v7  ;;  %v1398_v32 = vmul.f32 %v7148_v7, %v7130_v3  ;;  %v7155_v59 = vld [vmem:[%s8463_s1 + $0x3c8] sm:$0x3f]  ;;  %8896 = vst [vmem:[#allocation86_spill] sm:$0xff] %v7162_v46  ;;  %v8903_v28 = vld [vmem:[#allocation129_spill] sm:$0xff] }
 0xc01   :  { %v1373_v44 = vadd.f32 %v1357_v6, %v1332_v21  ;;  %v1374_v36 = vadd.f32 %v1358_v63, %v1333_v4  ;;  %8895 = vst [vmem:[#allocation60_spill] sm:$0xff] %v7155_v59  ;;  %v1440_v21 = vmul.f32 %v7141_v27, %v7162_v46  ;;  %v8906_v46 = vld [vmem:[#allocation143_spill] sm:$0xff]  ;;  %v8931_v1 = vld [vmem:[#allocation256_spill] sm:$0xff] }
 0xc02   :  { %3532 = vrot.lane.b32.xlu1 %v3487_v24, %s4281_s18  ;;  %3534 = vrot.lane.b32.xlu0 %v3488_v13, %s4281_s18  ;;  %v1397_v24 = vmul.f32 %v7118_v5, %v7099_v41  ;;  %v7125_v13 = vld [vmem:[%s8463_s1 + $0x3c0] sm:$0xff]  ;;  %v8956_v57 = vld [vmem:[#allocation292_spill] sm:$0xff] }
 0xc03   :  { %8890 = vst [vmem:[#allocation58_spill] sm:$0xff] %v7125_v13  ;;  %v1438_v2 = vmul.f32 %v7141_v27, %v7125_v13  ;;  %v1415_v4 = vadd.f32 %v1399_v26, %v1374_v36  ;;  %v8902_v13 = vld [vmem:[#allocation142_spill] sm:$0xff]  ;;  %v8907_v26 = vld [vmem:[#allocation144_spill] sm:$0xff]  ;;  %v127_v25 = vmul.f32 %v8956_v57, %v6862_v20 }
 0xc04   :  { %v1413_v10 = vadd.f32 %v1397_v24, %v1372_v42  ;;  %v1414_v42 = vadd.f32 %v1398_v32, %v1373_v44  ;;  %v8898_v24 = vld [vmem:[#allocation114_spill] sm:$0xff]  ;;  %v8905_v44 = vld [vmem:[#allocation156_spill] sm:$0xff] }
 0xc05   :  { %v1456_v11 = vadd.f32 %v1440_v21, %v1415_v4  ;;  %v8909_v21 = vld [vmem:[#allocation157_spill] sm:$0xff]  ;;  %v8916_v4 = vld [vmem:[#allocation186_spill] sm:$0xff] }
 0xc06   :  { %3536 = vrot.lane.b32.xlu1 %v3489_v47, %s4281_s18  ;;  %v7167_v47 = vld [vmem:[%s8464_s0 + $0x39] sm:$0x3f]  ;;  %v1454_v63 = vadd.f32 %v1438_v2, %v1413_v10  ;;  %v8904_v2 = vld [vmem:[#allocation130_spill] sm:$0xff] }
 0xc07   :  { %8897 = vst [vmem:[#allocation73_spill] sm:$0xff] %v7167_v47  ;;  %v1439_v6 = vmul.f32 %v7167_v47, %v7155_v59  ;;  %v1593_v3 = vadd.f32 %v8901_v23, %v1456_v11 }
 0xc08   :  { %v1591_v29 = vadd.f32 %v8898_v24, %v1454_v63 }
 0xc09   :  { %v1455_v61 = vadd.f32 %v1439_v6, %v1414_v42  ;;  %v1730_v32 = vadd.f32 %v8904_v2, %v1593_v3  ;;  %v8908_v6 = vld [vmem:[#allocation170_spill] sm:$0xff] }
 0xc0a   :  { %v1728_v43 = vadd.f32 %v8899_v45, %v1591_v29  ;;  %v8910_v29 = vld [vmem:[#allocation158_spill] sm:$0xff] }
 0xc0b   :  { %v1592_v34 = vadd.f32 %v8900_v58, %v1455_v61  ;;  %v1867_v63 = vadd.f32 %v8907_v26, %v1730_v32  ;;  %v8911_v61 = vld [vmem:[#allocation184_spill] sm:$0xff]  ;;  %v8914_v3 = vld [vmem:[#allocation198_spill] sm:$0xff]  ;;  %v4085_v26 = vld [vmem:[%s8463_s1 + $0x608] sm:$0x3f] }
 0xc0c   :  { %v1865_v41 = vadd.f32 %v8902_v13, %v1728_v43  ;;  %v8912_v43 = vld [vmem:[#allocation171_spill] sm:$0xff]  ;;  %v8913_v13 = vld [vmem:[#allocation172_spill] sm:$0xff] }
 0xc0d   :  { %v1729_v59 = vadd.f32 %v8903_v28, %v1592_v34  ;;  %v2004_v58 = vadd.f32 %v8910_v29, %v1867_v63  ;;  %v4084_v34 = vld [vmem:[%s8463_s1 + $0x600] sm:$0xff]  ;;  %v4086_v63 = vld [vmem:[%s8463_s1 + $0x610] sm:$0xff] }
 0xc0e   :  { %v2002_v10 = vadd.f32 %v8905_v44, %v1865_v41  ;;  %v4218_v2 = vld [vmem:[%s8464_s0 + $0x2] sm:$0xff]  ;;  %v4219_v29 = vld [vmem:[%s8464_s0 + $0x12] sm:$0xff] }
 0xc0f   :  { %v1866_v36 = vadd.f32 %v8906_v46, %v1729_v59  ;;  %v2141_v41 = vadd.f32 %v8913_v13, %v2004_v58  ;;  %v8915_v59 = vld [vmem:[#allocation185_spill] sm:$0xff]  ;;  %v2593_v32 = vmul.f32 %v4218_v2, %v4084_v34  ;;  %v4092_v44 = vld [vmem:[%s8463_s1 + $0x640] sm:$0xff] }
 0xc10   :  { %v2139_v42 = vadd.f32 %v8908_v6, %v2002_v10  ;;  %v8917_v10 = vld [vmem:[#allocation212_spill] sm:$0xff]  ;;  %v8918_v6 = vld [vmem:[#allocation199_spill] sm:$0xff]  ;;  %v2634_v58 = vmul.f32 %v4219_v29, %v4092_v44 }
 0xc11   :  { %v2003_v45 = vadd.f32 %v8909_v21, %v1866_v36  ;;  %v2278_v24 = vadd.f32 %v8916_v4, %v2141_v41  ;;  %v8919_v21 = vld [vmem:[#allocation200_spill] sm:$0xff]  ;;  %v2595_v41 = vmul.f32 %v4218_v2, %v4086_v63  ;;  %v7233_v4 = vld [vmem:[%s8464_s0 + $0x1a] sm:$0x3f]  ;;  %v4108_v63 = vld [vmem:[%s8463_s1 + $0x6c0] sm:$0xff] }
 0xc12   :  { %v2276_v11 = vadd.f32 %v8911_v61, %v2139_v42  ;;  %v7216_v61 = vld [vmem:[%s8464_s0 + $0xa] sm:$0x3f]  ;;  %8923 = vst [vmem:[#allocation100_spill] sm:$0xff] %v7233_v4 }
 0xc13   :  { %v2140_v28 = vadd.f32 %v8912_v43, %v2003_v45  ;;  %v2415_v45 = vadd.f32 %v8919_v21, %v2278_v24  ;;  %8920 = vst [vmem:[#allocation74_spill] sm:$0xff] %v7216_v61  ;;  %v4093_v43 = vld [vmem:[%s8463_s1 + $0x648] sm:$0x3f]  ;;  %v8924_v21 = vld [vmem:[#allocation270_spill] sm:$0xff] }
 0xc14   :  { %v2413_v23 = vadd.f32 %v8914_v3, %v2276_v11  ;;  %v2594_v11 = vmul.f32 %v7216_v61, %v4085_v26  ;;  %v4094_v3 = vld [vmem:[%s8463_s1 + $0x650] sm:$0xff]  ;;  %v2635_v24 = vmul.f32 %v7233_v4, %v4093_v43 }
 0xc15   :  { %v2277_v46 = vadd.f32 %v8915_v59, %v2140_v28  ;;  %v8921_v28 = vld [vmem:[#allocation213_spill] sm:$0xff] }
 0xc16   :  { %v2550_v36 = vadd.f32 %v8917_v10, %v2413_v23  ;;  %v8922_v23 = vld [vmem:[#allocation214_spill] sm:$0xff] }
 0xc17   :  { %v2414_v42 = vadd.f32 %v8918_v6, %v2277_v46  ;;  %v2552_v59 = vadd.f32 %v8922_v23, %v2415_v45  ;;  %v4100_v46 = vld [vmem:[%s8463_s1 + $0x680] sm:$0xff]  ;;  %v4101_v6 = vld [vmem:[%s8463_s1 + $0x688] sm:$0x3f]  ;;  %v2716_v45 = vmul.f32 %v4108_v63, %v8924_v21 }
 0xc18   :  { %v2609_v34 = vadd.f32 %v2593_v32, %v2550_v36  ;;  %v2636_v32 = vmul.f32 %v4219_v29, %v4094_v3  ;;  %v4222_v36 = vld [vmem:[%s8464_s0 + $0x22] sm:$0xff]  ;;  %v7252_v29 = vld [vmem:[%s8464_s0 + $0x2a] sm:$0x3f] }
 0xc19   :  { %v2551_v13 = vadd.f32 %v8921_v28, %v2414_v42  ;;  %v2611_v10 = vadd.f32 %v2595_v41, %v2552_v59  ;;  %v2675_v26 = vmul.f32 %v4222_v36, %v4100_v46  ;;  %v4102_v42 = vld [vmem:[%s8463_s1 + $0x690] sm:$0xff]  ;;  %8925 = vst [vmem:[#allocation87_spill] sm:$0xff] %v7252_v29  ;;  %v4109_v28 = vld [vmem:[%s8463_s1 + $0x6c8] sm:$0x3f] }
 0xc1a   :  { %v2650_v44 = vadd.f32 %v2634_v58, %v2609_v34  ;;  %v2676_v58 = vmul.f32 %v7252_v29, %v4101_v6  ;;  %v4110_v41 = vld [vmem:[%s8463_s1 + $0x6d0] sm:$0xff]  ;;  %v8926_v3 = vld [vmem:[#allocation271_spill] sm:$0xff]  ;;  %v8927_v6 = vld [vmem:[#allocation226_spill] sm:$0xff] }
 0xc1b   :  { %v2610_v2 = vadd.f32 %v2594_v11, %v2551_v13  ;;  %v2652_v34 = vadd.f32 %v2636_v32, %v2611_v10  ;;  %v2677_v13 = vmul.f32 %v4222_v36, %v4102_v42  ;;  %v2717_v23 = vmul.f32 %v4109_v28, %v8926_v3  ;;  %v8930_v42 = vld [vmem:[#allocation228_spill] sm:$0xff]  ;;  %v8937_v3 = vld [vmem:[#allocation273_spill] sm:$0xff] }
 0xc1c   :  { %v2691_v43 = vadd.f32 %v2675_v26, %v2650_v44  ;;  %v2718_v63 = vmul.f32 %v4110_v41, %v8924_v21  ;;  %v8929_v26 = vld [vmem:[#allocation227_spill] sm:$0xff]  ;;  %v8933_v28 = vld [vmem:[#allocation244_spill] sm:$0xff]  ;;  %v8935_v21 = vld [vmem:[#allocation257_spill] sm:$0xff] }
 0xc1d   :  { %v2651_v11 = vadd.f32 %v2635_v24, %v2610_v2  ;;  %v2693_v4 = vadd.f32 %v2677_v13, %v2652_v34  ;;  %v8928_v2 = vld [vmem:[#allocation242_spill] sm:$0xff] }
 0xc1e   :  { %v2732_v59 = vadd.f32 %v2716_v45, %v2691_v43  ;;  %v8936_v43 = vld [vmem:[#allocation258_spill] sm:$0xff] }
 0xc1f   :  { %v2692_v46 = vadd.f32 %v2676_v58, %v2651_v11  ;;  %v2734_v44 = vadd.f32 %v2718_v63, %v2693_v4  ;;  %v8934_v58 = vld [vmem:[#allocation272_spill] sm:$0xff] }
 0xc20   :  { %v2869_v24 = vadd.f32 %v8927_v6, %v2732_v59  ;;  %v8938_v59 = vld [vmem:[#allocation274_spill] sm:$0xff] }
 0xc21   :  { %v2733_v32 = vadd.f32 %v2717_v23, %v2692_v46  ;;  %v2871_v54 = vadd.f32 %v8930_v42, %v2734_v44 }
 0xc22   :  { %v3006_v10 = vadd.f32 %v8928_v2, %v2869_v24 }
 0xc23   :  { %v2870_v61 = vadd.f32 %v8929_v26, %v2733_v32  ;;  %v3008_v45 = vadd.f32 %v8933_v28, %v2871_v54 }
 0xc24   :  { %v3143_v9 = vadd.f32 %v8931_v1, %v3006_v10 }
 0xc25   :  { %v3007_v27 = vadd.f32 %v8932_v35, %v2870_v61  ;;  %v3145_v13 = vadd.f32 %v8936_v43, %v3008_v45 }
 0xc26   :  { %v3280_v11 = vadd.f32 %v8934_v58, %v3143_v9 }
 0xc27   :  { %v3144_v34 = vadd.f32 %v8935_v21, %v3007_v27  ;;  %v3282_v46 = vadd.f32 %v8938_v59, %v3145_v13  ;;  %v7305_v13 = vld [vmem:[%s8464_s0 + $0x6a] sm:$0x3f]  ;;  %v7325_v59 = vld [vmem:[%s8463_s1 + $0x20] sm:$0xff] }
 0xc28   :  { %v3417_v4 = vadd.f32 %v6711_v19, %v3280_v11  ;;  %8943 = vst [vmem:[#allocation128_spill] sm:$0xff] %v7305_v13 }
 0xc29   :  { %v3281_v23 = vadd.f32 %v8937_v3, %v3144_v34  ;;  %v3419_v35 = vadd.f32 %v6723_v48, %v3282_v46  ;;  %v7299_v34 = vld [vmem:[%s8464_s0 + $0x62] sm:$0xff]  ;;  %v7315_v3 = vld [vmem:[%s8463_s1 + $0x18] sm:$0x3f] }
 0xc2a   :  { %8942 = vst [vmem:[#allocation114_spill] sm:$0xff] %v7299_v34  ;;  %v7330_v46 = vld [vmem:[%s8463_s1 + $0x60] sm:$0xff] }
 0xc2b   :  { %v3418_v1 = vadd.f32 %v6721_v49, %v3281_v23  ;;  %v7320_v23 = vld [vmem:[%s8463_s1 + $0x58] sm:$0x3f] }
 0xc38   :  { %v3507_v41 = vpop.permute.xlu0 %3506 }
 0xc39   :  { %v7276_v63 = vadd.f32 %v3507_v41, %v3417_v4 }
 0xc3b   :  { %8939 = vst [vmem:[#allocation88_spill] sm:$0xff] %v7276_v63 }
 0xc3c   :  { %v3509_v54 = vpop.permute.xlu1 %3508  ;;  %v3511_v61 = vpop.permute.xlu0 %3510 }
 0xc3d   :  { %v7280_v9 = vadd.f32 %v3509_v54, %v3418_v1  ;;  %v7282_v27 = vadd.f32 %v3511_v61, %v3419_v35  ;;  %v7341_v54 = vld [vmem:[%s8463_s1 + $0x28] sm:$0x3f] }
 0xc3e   :  { %v7346_v61 = vld [vmem:[%s8463_s1 + $0x68] sm:$0x3f] }
 0xc3f   :  { %8940 = vst [vmem:[#allocation101_spill] sm:$0xff] %v7280_v9  ;;  %8941 = vst [vmem:[#allocation102_spill] sm:$0xff] %v7282_v27  ;;  %v8944_v27 = vld [vmem:[#allocation286_spill] sm:$0xff] }
 0xc40   :  { %v3588_v6 = vpop.permute.xlu1 %3587  ;;  %v3590_v24 = vpop.permute.xlu0 %3589 }
 0xc41   :  { %v3611_v19 = vmul.f32 %v4222_v36, %v3588_v6  ;;  %v3612_v32 = vmul.f32 %v7252_v29, %v3590_v24  ;;  %v3619_v43 = vmul.f32 %v7299_v34, %v3588_v6 }
 0xc43   :  { %3643 = vrot.lane.b32.xlu0 %v3611_v19, %s4281_s18  ;;  %3645 = vrot.lane.b32.xlu1 %v3612_v32, %s4281_s18  ;;  %v81_v19 = vmul.f32 %v6916_v33, %v7320_v23  ;;  %v7355_v32 = vld [vmem:[%s8463_s1 + $0x98] sm:$0x3f] }
 0xc44   :  { %v3592_v44 = vpop.permute.xlu1 %3591  ;;  %v3594_v2 = vpop.permute.xlu0 %3593 }
 0xc45   :  { %v3613_v49 = vmul.f32 %v4222_v36, %v3592_v44  ;;  %v3614_v48 = vmul.f32 %v7252_v29, %v3594_v2  ;;  %v3621_v4 = vmul.f32 %v7299_v34, %v3592_v44  ;;  %v3622_v41 = vmul.f32 %v7305_v13, %v3594_v2 }
 0xc46   :  { %v40_v44 = vmul.f32 %v6923_v15, %v7315_v3  ;;  %v82_v2 = vmul.f32 %v6855_v38, %v7330_v46 }
 0xc47   :  { %3647 = vrot.lane.b32.xlu0 %v3613_v49, %s4281_s18  ;;  %3649 = vrot.lane.b32.xlu1 %v3614_v48, %s4281_s18  ;;  %v7364_v49 = vld [vmem:[%s8463_s1 + $0xa0] sm:$0xff]  ;;  %v41_v48 = vmul.f32 %v6867_v52, %v7325_v59 }
 0xc48   :  { %v3596_v10 = vpop.permute.xlu1 %3595  ;;  %v3598_v26 = vpop.permute.xlu0 %3597 }
 0xc49   :  { %v3615_v42 = vmul.f32 %v4222_v36, %v3596_v10  ;;  %v3616_v28 = vmul.f32 %v7252_v29, %v3598_v26  ;;  %v3623_v6 = vmul.f32 %v7299_v34, %v3596_v10  ;;  %v83_v10 = vmul.f32 %v6916_v33, %v7346_v61 }
 0xc4b   :  { %3651 = vrot.lane.b32.xlu0 %v3615_v42, %s4281_s18  ;;  %3653 = vrot.lane.b32.xlu1 %v3616_v28, %s4281_s18  ;;  %v122_v42 = vmul.f32 %v6959_v22, %v7355_v32  ;;  %v123_v28 = vmul.f32 %v6902_v53, %v7364_v49 }
 0xc4c   :  { %v3600_v45 = vpop.permute.xlu1 %3599  ;;  %v3602_v58 = vpop.permute.xlu0 %3601 }
 0xc4d   :  { %v3617_v11 = vmul.f32 %v4222_v36, %v3600_v45  ;;  %v3618_v21 = vmul.f32 %v7252_v29, %v3602_v58  ;;  %v3620_v36 = vmul.f32 %v7305_v13, %v3590_v24  ;;  %v3624_v24 = vmul.f32 %v7305_v13, %v3598_v26 }
 0xc4e   :  { %v42_v26 = vmul.f32 %v6923_v15, %v7341_v54 }
 0xc4f   :  { %3655 = vrot.lane.b32.xlu0 %v3617_v11, %s4281_s18  ;;  %3657 = vrot.lane.b32.xlu1 %v3618_v21, %s4281_s18  ;;  %v7381_v11 = vld [vmem:[%s8463_s1 + $0xa8] sm:$0x3f]  ;;  %v3625_v21 = vmul.f32 %v7299_v34, %v3600_v45  ;;  %v43_v45 = vmul.f32 %v6867_v52, %v8944_v27 }
 0xc50   :  { %v7334_v1 = vpop.permute.xlu1 %3724  ;;  %v7336_v35 = vpop.permute.xlu0 %3726  ;;  %v7424_v52 = vld [vmem:[%s8463_s1 + $0xe8] sm:$0x3f]  ;;  %v99_v27 = vadd.f32 %v83_v10, %v42_v26 }
 0xc51   :  { %v7442_v47 = vmul.f32 %v6988_v51, %v7424_v52 }
 0xc53   :  { %3659 = vrot.lane.b32.xlu0 %v3619_v43, %s4281_s18  ;;  %3661 = vrot.lane.b32.xlu1 %v3620_v36, %s4281_s18  ;;  %v3626_v43 = vmul.f32 %v7305_v13, %v3602_v58  ;;  %v7388_v36 = vld [vmem:[%s8463_s1 + $0xd8] sm:$0x3f] }
 0xc54   :  { %v7399_v63 = vpop.permute.xlu1 %3728  ;;  %v7401_v58 = vpop.permute.xlu0 %3730  ;;  %v8947_v13 = vld [vmem:[#allocation289_spill] sm:$0xff] }
 0xc55   :  { %v125_v34 = vmul.f32 %v6902_v53, %v8947_v13  ;;  %v8949_v13 = vld [vmem:[#allocation291_spill] sm:$0xff] }
 0xc57   :  { %3663 = vrot.lane.b32.xlu0 %v3621_v4, %s4281_s18  ;;  %3665 = vrot.lane.b32.xlu1 %v3622_v41, %s4281_s18  ;;  %v97_v4 = vadd.f32 %v81_v19, %v40_v44  ;;  %v7393_v41 = vld [vmem:[%s8463_s1 + $0xe0] sm:$0xff]  ;;  %v7406_v19 = vld [vmem:[%s8464_s0 + $0x32] sm:$0xff] }
 0xc58   :  { %8945 = vst [vmem:[#allocation115_spill] sm:$0xff] %v7406_v19  ;;  %v3748_v44 = vmul.f32 %v7406_v19, %v7334_v1  ;;  %v7432_v9 = vmul.f32 %v6950_v56, %v7393_v41  ;;  %v3750_v10 = vmul.f32 %v7406_v19, %v7399_v63  ;;  %v7462_v5 = vpop.permute.xlu0 %3734 }
 0xc5b   :  { %3667 = vrot.lane.b32.xlu0 %v3623_v6, %s4281_s18  ;;  %3669 = vrot.lane.b32.xlu1 %v3624_v24, %s4281_s18  ;;  %v98_v6 = vadd.f32 %v82_v2, %v41_v48  ;;  %v84_v24 = vmul.f32 %v6855_v38, %v6549_v39  ;;  %v7413_v2 = vld [vmem:[%s8464_s0 + $0x3a] sm:$0x3f]  ;;  %v124_v38 = vmul.f32 %v6959_v22, %v7381_v11 }
 0xc5c   :  { %8946 = vst [vmem:[#allocation116_spill] sm:$0xff] %v7413_v2  ;;  %v3749_v39 = vmul.f32 %v7413_v2, %v7336_v35  ;;  %v7428_v48 = vmul.f32 %v6988_v51, %v7388_v36  ;;  %v3751_v26 = vmul.f32 %v7413_v2, %v7401_v58 }
 0xc5d   :  { %v100_v29 = vadd.f32 %v84_v24, %v43_v45  ;;  %v7460_v45 = vpop.permute.xlu1 %3732 }
 0xc5f   :  { %3671 = vrot.lane.b32.xlu0 %v3625_v21, %s4281_s18  ;;  %3673 = vrot.lane.b32.xlu1 %v3626_v43, %s4281_s18  ;;  %v7434_v21 = vadd.f32 %v122_v42, %v97_v4  ;;  %v7436_v43 = vadd.f32 %v123_v28, %v98_v6  ;;  %v7450_v42 = vadd.f32 %v124_v38, %v99_v27  ;;  %v8948_v28 = vld [vmem:[#allocation295_spill] sm:$0xff]  ;;  %v8950_v6 = vld [vmem:[#allocation290_spill] sm:$0xff]  ;;  %v8953_v27 = vld [vmem:[#allocation293_spill] sm:$0xff] }
 0xc60   :  { %v7454_v53 = vmul.f32 %v6950_v56, %v8948_v28  ;;  %v85_v4 = vmul.f32 %v6916_v33, %v8949_v13  ;;  %v44_v24 = vmul.f32 %v6923_v15, %v8950_v6  ;;  %v46_v56 = vmul.f32 %v8953_v27, %v6876_v12  ;;  %v8954_v28 = vld [vmem:[#allocation294_spill] sm:$0xff]  ;;  %v8955_v6 = vld [vmem:[#allocation296_spill] sm:$0xff] }
 0xc61   :  { %v87_v7 = vmul.f32 %v8954_v28, %v6887_v30  ;;  %v48_v13 = vmul.f32 %v8953_v27, %v7315_v3  ;;  %v3752_v12 = vmul.f32 %v7406_v19, %v7460_v45  ;;  %v3753_v30 = vmul.f32 %v7413_v2, %v7462_v5 }
 0xc62   :  { %v50_v3 = vmul.f32 %v8953_v27, %v7341_v54  ;;  %v7504_v54 = vpop.permute.xlu0 %3738 }
 0xc63   :  { %3780 = vrot.lane.b32.xlu0 %v3748_v44, %s4281_s18  ;;  %3782 = vrot.lane.b32.xlu1 %v3749_v39, %s4281_s18  ;;  %v8951_v44 = vld [vmem:[#allocation287_spill] sm:$0xff]  ;;  %v8952_v39 = vld [vmem:[#allocation288_spill] sm:$0xff]  ;;  %v103_v18 = vadd.f32 %v87_v7, %v46_v56  ;;  %v3755_v20 = vmul.f32 %v7413_v2, %v7504_v54 }
 0xc64   :  { %v45_v55 = vmul.f32 %v8951_v44, %v6837_v0  ;;  %v86_v38 = vmul.f32 %v8952_v39, %v6844_v16  ;;  %v47_v33 = vmul.f32 %v8951_v44, %v6892_v31  ;;  %v88_v15 = vmul.f32 %v8952_v39, %v6897_v50  ;;  %v9065_v2 = vld [vmem:[#allocation104_spill] sm:$0xff] }
 0xc65   :  { %v89_v0 = vmul.f32 %v8954_v28, %v7320_v23  ;;  %v126_v16 = vmul.f32 %v6959_v22, %v8955_v6  ;;  %v49_v31 = vmul.f32 %v8951_v44, %v7325_v59  ;;  %v90_v50 = vmul.f32 %v8952_v39, %v7330_v46  ;;  %v7502_v44 = vpop.permute.xlu1 %3736 }
 0xc66   :  { %v91_v22 = vmul.f32 %v8954_v28, %v7346_v61  ;;  %v101_v23 = vadd.f32 %v85_v4, %v44_v24  ;;  %v102_v6 = vadd.f32 %v86_v38, %v45_v55  ;;  %v104_v14 = vadd.f32 %v88_v15, %v47_v33  ;;  %v8958_v38 = vld [vmem:[#allocation297_spill] sm:$0xff]  ;;  %v8959_v33 = vld [vmem:[#allocation299_spill] sm:$0xff] }
 0xc67   :  { %3784 = vrot.lane.b32.xlu0 %v3750_v10, %s4281_s18  ;;  %3786 = vrot.lane.b32.xlu1 %v3751_v26, %s4281_s18  ;;  %v8957_v10 = vld [vmem:[#allocation298_spill] sm:$0xff]  ;;  %v129_v59 = vmul.f32 %v8956_v57, %v6945_v8  ;;  %v105_v46 = vadd.f32 %v89_v0, %v48_v13  ;;  %v3754_v55 = vmul.f32 %v7406_v19, %v7502_v44 }
 0xc68   :  { %v128_v26 = vmul.f32 %v8957_v10, %v6940_v62  ;;  %v130_v61 = vmul.f32 %v8957_v10, %v7355_v32  ;;  %v106_v62 = vadd.f32 %v90_v50, %v49_v31  ;;  %v131_v8 = vmul.f32 %v8956_v57, %v7364_v49  ;;  %v8965_v50 = vld [vmem:[#allocation8_spill] sm:$0xff] }
 0xc69   :  { %v107_v7 = vadd.f32 %v91_v22, %v50_v3  ;;  %v132_v4 = vmul.f32 %v8957_v10, %v7381_v11  ;;  %v141_v24 = vadd.f32 %v125_v34, %v100_v29  ;;  %v167_v32 = vmul.f32 %v6988_v51, %v6628_v60  ;;  %v8966_v22 = vld [vmem:[#allocation9_spill] sm:$0xff] }
 0xc6a   :  { %v142_v39 = vadd.f32 %v126_v16, %v101_v23  ;;  %v168_v27 = vmul.f32 %v8958_v38, %v6911_v40  ;;  %v143_v56 = vadd.f32 %v127_v25, %v102_v6  ;;  %v144_v28 = vadd.f32 %v128_v26, %v103_v18  ;;  %v8967_v6 = vld [vmem:[#allocation10_spill] sm:$0xff]  ;;  %v8968_v26 = vld [vmem:[#allocation11_spill] sm:$0xff] }
 0xc6b   :  { %3788 = vrot.lane.b32.xlu0 %v3752_v12, %s4281_s18  ;;  %3790 = vrot.lane.b32.xlu1 %v3753_v30, %s4281_s18  ;;  %v169_v15 = vmul.f32 %v8959_v33, %v6974_v37  ;;  %v170_v57 = vmul.f32 %v8958_v38, %v6979_v17  ;;  %v145_v49 = vadd.f32 %v129_v59, %v104_v14  ;;  %v7537_v17 = vld [vmem:[%s8464_s0 + $0x72] sm:$0xff]  ;;  %v7544_v14 = vld [vmem:[%s8464_s0 + $0x7a] sm:$0x3f] }
 0xc6c   :  { %v146_v13 = vadd.f32 %v130_v61, %v105_v46  ;;  %v171_v29 = vmul.f32 %v8959_v33, %v7388_v36  ;;  %v147_v60 = vadd.f32 %v131_v8, %v106_v62  ;;  %v172_v40 = vmul.f32 %v8958_v38, %v7393_v41  ;;  %8960 = vst [vmem:[#allocation142_spill] sm:$0xff] %v7537_v17  ;;  %v8970_v46 = vld [vmem:[#allocation13_spill] sm:$0xff]  ;;  %v8972_v62 = vld [vmem:[#allocation15_spill] sm:$0xff] }
 0xc6d   :  { %v148_v51 = vadd.f32 %v132_v4, %v107_v7  ;;  %v173_v37 = vmul.f32 %v8959_v33, %v7424_v52  ;;  %v3756_v25 = vmul.f32 %v7537_v17, %v7334_v1  ;;  %8961 = vst [vmem:[#allocation129_spill] sm:$0xff] %v7544_v14  ;;  %v3757_v18 = vmul.f32 %v7544_v14, %v7336_v35  ;;  %v8973_v7 = vld [vmem:[#allocation19_spill] sm:$0xff] }
 0xc6e   :  { %v179_v34 = vadd.f32 %v7428_v48, %v7434_v21  ;;  %v180_v11 = vadd.f32 %v7432_v9, %v7436_v43  ;;  %v181_v36 = vadd.f32 %v7442_v47, %v7450_v42  ;;  %v182_v41 = vadd.f32 %v7454_v53, %v141_v24  ;;  %v8962_v47 = vld [vmem:[#allocation5_spill] sm:$0xff]  ;;  %v8963_v43 = vld [vmem:[#allocation6_spill] sm:$0xff]  ;;  %v8964_v53 = vld [vmem:[#allocation7_spill] sm:$0xff] }
 0xc6f   :  { %3792 = vrot.lane.b32.xlu0 %v3754_v55, %s4281_s18  ;;  %3794 = vrot.lane.b32.xlu1 %v3755_v20, %s4281_s18  ;;  %v183_v1 = vadd.f32 %v167_v32, %v142_v39  ;;  %v184_v52 = vadd.f32 %v168_v27, %v143_v56  ;;  %v185_v0 = vadd.f32 %v169_v15, %v144_v28  ;;  %v8971_v55 = vld [vmem:[#allocation14_spill] sm:$0xff]  ;;  %v8974_v24 = vld [vmem:[#allocation20_spill] sm:$0xff]  ;;  %v8975_v27 = vld [vmem:[#allocation21_spill] sm:$0xff] }
 0xc70   :  { %v186_v16 = vadd.f32 %v170_v57, %v145_v49  ;;  %v187_v35 = vadd.f32 %v171_v29, %v146_v13  ;;  %v188_v12 = vadd.f32 %v172_v40, %v147_v60  ;;  %v189_v30 = vadd.f32 %v173_v37, %v148_v51  ;;  %v8976_v28 = vld [vmem:[#allocation22_spill] sm:$0xff]  ;;  %v8977_v15 = vld [vmem:[#allocation23_spill] sm:$0xff]  ;;  %v8978_v49 = vld [vmem:[#allocation24_spill] sm:$0xff] }
 0xc71   :  { %v3758_v48 = vmul.f32 %v7537_v17, %v7399_v63  ;;  %v3759_v9 = vmul.f32 %v7544_v14, %v7401_v58  ;;  %v316_v21 = vadd.f32 %v8962_v47, %v179_v34  ;;  %v317_v42 = vadd.f32 %v8963_v43, %v180_v11  ;;  %v8969_v63 = vld [vmem:[#allocation12_spill] sm:$0xff]  ;;  %v8979_v29 = vld [vmem:[#allocation25_spill] sm:$0xff]  ;;  %v8980_v40 = vld [vmem:[#allocation26_spill] sm:$0xff] }
 0xc72   :  { %v318_v31 = vadd.f32 %v8964_v53, %v181_v36  ;;  %v319_v3 = vadd.f32 %v8965_v50, %v182_v41  ;;  %v320_v23 = vadd.f32 %v8966_v22, %v183_v1  ;;  %v321_v10 = vadd.f32 %v8967_v6, %v184_v52  ;;  %v8981_v37 = vld [vmem:[#allocation27_spill] sm:$0xff]  ;;  %v8984_v11 = vld [vmem:[#allocation33_spill] sm:$0xff]  ;;  %v8985_v41 = vld [vmem:[#allocation34_spill] sm:$0xff] }
 0xc73   :  { %3796 = vrot.lane.b32.xlu0 %v3756_v25, %s4281_s18  ;;  %3798 = vrot.lane.b32.xlu1 %v3757_v18, %s4281_s18  ;;  %v322_v59 = vadd.f32 %v8968_v26, %v185_v0  ;;  %v323_v58 = vadd.f32 %v8969_v63, %v186_v16  ;;  %v324_v61 = vadd.f32 %v8970_v46, %v187_v35  ;;  %v8983_v18 = vld [vmem:[#allocation29_spill] sm:$0xff]  ;;  %v8986_v52 = vld [vmem:[#allocation35_spill] sm:$0xff]  ;;  %v8987_v16 = vld [vmem:[#allocation36_spill] sm:$0xff] }
 0xc74   :  { %v325_v20 = vadd.f32 %v8971_v55, %v188_v12  ;;  %v326_v8 = vadd.f32 %v8972_v62, %v189_v30  ;;  %v453_v4 = vadd.f32 %v8973_v7, %v316_v21  ;;  %v454_v32 = vadd.f32 %v8974_v24, %v317_v42  ;;  %v8989_v47 = vld [vmem:[#allocation38_spill] sm:$0xff]  ;;  %v8990_v43 = vld [vmem:[#allocation39_spill] sm:$0xff]  ;;  %v8991_v53 = vld [vmem:[#allocation40_spill] sm:$0xff] }
 0xc75   :  { %v3760_v39 = vmul.f32 %v7537_v17, %v7460_v45  ;;  %v3761_v38 = vmul.f32 %v7544_v14, %v7462_v5  ;;  %v455_v56 = vadd.f32 %v8975_v27, %v318_v31  ;;  %v456_v33 = vadd.f32 %v8976_v28, %v319_v3  ;;  %v8982_v45 = vld [vmem:[#allocation28_spill] sm:$0xff]  ;;  %v8992_v50 = vld [vmem:[#allocation41_spill] sm:$0xff]  ;;  %v8993_v22 = vld [vmem:[#allocation42_spill] sm:$0xff] }
 0xc76   :  { %v457_v57 = vadd.f32 %v8977_v15, %v320_v23  ;;  %v458_v13 = vadd.f32 %v8978_v49, %v321_v10  ;;  %v459_v60 = vadd.f32 %v8979_v29, %v322_v59  ;;  %v460_v51 = vadd.f32 %v8980_v40, %v323_v58  ;;  %v8994_v6 = vld [vmem:[#allocation43_spill] sm:$0xff]  ;;  %v8996_v26 = vld [vmem:[#allocation48_spill] sm:$0xff]  ;;  %v8997_v63 = vld [vmem:[#allocation49_spill] sm:$0xff] }
 0xc77   :  { %3800 = vrot.lane.b32.xlu0 %v3758_v48, %s4281_s18  ;;  %3802 = vrot.lane.b32.xlu1 %v3759_v9, %s4281_s18  ;;  %v461_v25 = vadd.f32 %v8981_v37, %v324_v61  ;;  %v462_v5 = vadd.f32 %v8982_v45, %v325_v20  ;;  %v463_v34 = vadd.f32 %v8983_v18, %v326_v8  ;;  %v8988_v48 = vld [vmem:[#allocation37_spill] sm:$0xff]  ;;  %v8998_v46 = vld [vmem:[#allocation50_spill] sm:$0xff]  ;;  %v8999_v55 = vld [vmem:[#allocation51_spill] sm:$0xff] }
 0xc78   :  { %v590_v36 = vadd.f32 %v8984_v11, %v453_v4  ;;  %v591_v1 = vadd.f32 %v8985_v41, %v454_v32  ;;  %v592_v0 = vadd.f32 %v8986_v52, %v455_v56  ;;  %v593_v35 = vadd.f32 %v8987_v16, %v456_v33  ;;  %v9000_v62 = vld [vmem:[#allocation52_spill] sm:$0xff]  ;;  %v9001_v7 = vld [vmem:[#allocation53_spill] sm:$0xff]  ;;  %v9002_v24 = vld [vmem:[#allocation54_spill] sm:$0xff] }
 0xc79   :  { %v3762_v12 = vmul.f32 %v7537_v17, %v7502_v44  ;;  %v3763_v30 = vmul.f32 %v7544_v14, %v7504_v54  ;;  %v594_v9 = vadd.f32 %v8988_v48, %v457_v57  ;;  %v595_v21 = vadd.f32 %v8989_v47, %v458_v13  ;;  %v8995_v44 = vld [vmem:[#allocation47_spill] sm:$0xff]  ;;  %v9004_v27 = vld [vmem:[#allocation56_spill] sm:$0xff]  ;;  %v9005_v28 = vld [vmem:[#allocation57_spill] sm:$0xff] }
 0xc7a   :  { %v596_v42 = vadd.f32 %v8990_v43, %v459_v60  ;;  %v597_v31 = vadd.f32 %v8991_v53, %v460_v51  ;;  %v598_v3 = vadd.f32 %v8992_v50, %v461_v25  ;;  %v599_v23 = vadd.f32 %v8993_v22, %v462_v5  ;;  %v9006_v15 = vld [vmem:[#allocation61_spill] sm:$0xff]  ;;  %v9007_v49 = vld [vmem:[#allocation62_spill] sm:$0xff]  ;;  %v9008_v29 = vld [vmem:[#allocation63_spill] sm:$0xff] }
 0xc7b   :  { %3804 = vrot.lane.b32.xlu0 %v3760_v39, %s4281_s18  ;;  %3806 = vrot.lane.b32.xlu1 %v3761_v38, %s4281_s18  ;;  %v600_v10 = vadd.f32 %v8994_v6, %v463_v34  ;;  %v727_v54 = vadd.f32 %v8995_v44, %v590_v36  ;;  %v728_v59 = vadd.f32 %v8996_v26, %v591_v1  ;;  %v9003_v39 = vld [vmem:[#allocation55_spill] sm:$0xff]  ;;  %v9009_v40 = vld [vmem:[#allocation64_spill] sm:$0xff]  ;;  %v9010_v37 = vld [vmem:[#allocation65_spill] sm:$0xff] }
 0xc7c   :  { %v729_v58 = vadd.f32 %v8997_v63, %v592_v0  ;;  %v730_v61 = vadd.f32 %v8998_v46, %v593_v35  ;;  %v731_v20 = vadd.f32 %v8999_v55, %v594_v9  ;;  %v732_v8 = vadd.f32 %v9000_v62, %v595_v21  ;;  %v9011_v45 = vld [vmem:[#allocation66_spill] sm:$0xff]  ;;  %v9012_v18 = vld [vmem:[#allocation67_spill] sm:$0xff]  ;;  %v9013_v11 = vld [vmem:[#allocation68_spill] sm:$0xff] }
 0xc7d   :  { %v733_v4 = vadd.f32 %v9001_v7, %v596_v42  ;;  %v734_v32 = vadd.f32 %v9002_v24, %v597_v31  ;;  %v735_v38 = vadd.f32 %v9003_v39, %v598_v3  ;;  %v736_v56 = vadd.f32 %v9004_v27, %v599_v23  ;;  %v9014_v41 = vld [vmem:[#allocation69_spill] sm:$0xff]  ;;  %v9015_v52 = vld [vmem:[#allocation70_spill] sm:$0xff]  ;;  %v9016_v16 = vld [vmem:[#allocation71_spill] sm:$0xff] }
 0xc7e   :  { %v737_v33 = vadd.f32 %v9005_v28, %v600_v10  ;;  %v864_v57 = vadd.f32 %v9006_v15, %v727_v54  ;;  %v865_v13 = vadd.f32 %v9007_v49, %v728_v59  ;;  %v866_v60 = vadd.f32 %v9008_v29, %v729_v58  ;;  %v9018_v48 = vld [vmem:[#allocation76_spill] sm:$0xff]  ;;  %v9019_v47 = vld [vmem:[#allocation77_spill] sm:$0xff]  ;;  %v9020_v43 = vld [vmem:[#allocation78_spill] sm:$0xff] }
 0xc7f   :  { %3808 = vrot.lane.b32.xlu0 %v3762_v12, %s4281_s18  ;;  %3810 = vrot.lane.b32.xlu1 %v3763_v30, %s4281_s18  ;;  %v867_v51 = vadd.f32 %v9009_v40, %v730_v61  ;;  %v868_v25 = vadd.f32 %v9010_v37, %v731_v20  ;;  %v869_v5 = vadd.f32 %v9011_v45, %v732_v8  ;;  %v9017_v12 = vld [vmem:[#allocation75_spill] sm:$0xff]  ;;  %v9022_v50 = vld [vmem:[#allocation80_spill] sm:$0xff]  ;;  %v9023_v22 = vld [vmem:[#allocation81_spill] sm:$0xff] }
 0xc80   :  { %v870_v34 = vadd.f32 %v9012_v18, %v733_v4  ;;  %v871_v36 = vadd.f32 %v9013_v11, %v734_v32  ;;  %v872_v1 = vadd.f32 %v9014_v41, %v735_v38  ;;  %v873_v0 = vadd.f32 %v9015_v52, %v736_v56  ;;  %v9021_v53 = vld [vmem:[#allocation79_spill] sm:$0xff]  ;;  %v9024_v6 = vld [vmem:[#allocation82_spill] sm:$0xff]  ;;  %v9026_v26 = vld [vmem:[#allocation84_spill] sm:$0xff] }
 0xc81   :  { %v874_v35 = vadd.f32 %v9016_v16, %v737_v33  ;;  %v1001_v30 = vadd.f32 %v9017_v12, %v864_v57  ;;  %v1002_v9 = vadd.f32 %v9018_v48, %v865_v13  ;;  %v1003_v21 = vadd.f32 %v9019_v47, %v866_v60  ;;  %v9025_v44 = vld [vmem:[#allocation83_spill] sm:$0xff]  ;;  %v3975_v63 = vld [vmem:[%s8463_s1 + $0x318] sm:$0x3f]  ;;  %v9029_v20 = vld [vmem:[#allocation90_spill] sm:$0xff] }
 0xc82   :  { %v1004_v42 = vadd.f32 %v9020_v43, %v867_v51  ;;  %v1005_v31 = vadd.f32 %v9021_v53, %v868_v25  ;;  %v1006_v3 = vadd.f32 %v9022_v50, %v869_v5  ;;  %v1007_v23 = vadd.f32 %v9023_v22, %v870_v34  ;;  %v9027_v58 = vld [vmem:[#allocation85_spill] sm:$0xff]  ;;  %v9030_v8 = vld [vmem:[#allocation91_spill] sm:$0xff]  ;;  %v3976_v24 = vld [vmem:[%s8463_s1 + $0x320] sm:$0xff] }
 0xc83   :  { %v1008_v10 = vadd.f32 %v9024_v6, %v871_v36  ;;  %v1009_v54 = vadd.f32 %v9025_v44, %v872_v1  ;;  %v1010_v59 = vadd.f32 %v9026_v26, %v873_v0  ;;  %v1011_v46 = vadd.f32 %v9027_v58, %v874_v35  ;;  %v9028_v61 = vld [vmem:[#allocation89_spill] sm:$0xff]  ;;  %v7664_v32 = vld [vmem:[%s8463_s1 + $0x360] sm:$0xff]  ;;  %v9031_v39 = vld [vmem:[#allocation92_spill] sm:$0xff] }
 0xc84   :  { %v7645_v55 = vadd.f32 %v9028_v61, %v1001_v30  ;;  %v7648_v62 = vadd.f32 %v9029_v20, %v1002_v9  ;;  %v7651_v7 = vadd.f32 %v9030_v8, %v1003_v21  ;;  %v7656_v4 = vld [vmem:[%s8463_s1 + $0x358] sm:$0x3f]  ;;  %v1141_v38 = vadd.f32 %v9031_v39, %v1004_v42  ;;  %v9033_v28 = vld [vmem:[#allocation94_spill] sm:$0xff]  ;;  %v9034_v15 = vld [vmem:[#allocation95_spill] sm:$0xff] }
 0xc85   :  { %v9032_v27 = vld [vmem:[#allocation93_spill] sm:$0xff]  ;;  %v1143_v33 = vadd.f32 %v9033_v28, %v1006_v3  ;;  %v1144_v57 = vadd.f32 %v9034_v15, %v1007_v23  ;;  %v3977_v49 = vld [vmem:[%s8463_s1 + $0x328] sm:$0x3f]  ;;  %v9035_v60 = vld [vmem:[#allocation96_spill] sm:$0xff] }
 0xc86   :  { %v1142_v56 = vadd.f32 %v9032_v27, %v1005_v31  ;;  %v7676_v13 = vld [vmem:[%s8463_s1 + $0x368] sm:$0x3f]  ;;  %v7681_v29 = vld [vmem:[%s8463_s1 + $0x398] sm:$0x3f]  ;;  %v1145_v40 = vadd.f32 %v9035_v60, %v1008_v10  ;;  %v9037_v25 = vld [vmem:[#allocation98_spill] sm:$0xff] }
 0xc87   :  { %v9036_v51 = vld [vmem:[#allocation97_spill] sm:$0xff]  ;;  %v1147_v45 = vadd.f32 %v9037_v25, %v1010_v59  ;;  %v9038_v5 = vld [vmem:[#allocation99_spill] sm:$0xff]  ;;  %v7690_v34 = vld [vmem:[%s8463_s1 + $0x3a0] sm:$0xff]  ;;  %v7757_v59 = vpop.permute.xlu1 %3512 }
 0xc88   :  { %v1146_v37 = vadd.f32 %v9036_v51, %v1009_v54  ;;  %v1148_v18 = vadd.f32 %v9038_v5, %v1011_v46  ;;  %v9039_v11 = vld [vmem:[#allocation30_spill] sm:$0xff]  ;;  %v9040_v41 = vld [vmem:[#allocation31_spill] sm:$0xff]  ;;  %v9041_v52 = vld [vmem:[#allocation241_spill] sm:$0xff]  ;;  %9047 = vst [vmem:[#allocation156_spill] sm:$0xff] %v7757_v59 }
 0xc89   :  { %v7693_v36 = vmul.f32 %v9039_v11, %v3975_v63  ;;  %v7697_v1 = vmul.f32 %v9040_v41, %v7656_v4  ;;  %v7700_v0 = vmul.f32 %v9041_v52, %v3976_v24  ;;  %v9042_v16 = vld [vmem:[#allocation4_spill] sm:$0xff]  ;;  %v7709_v12 = vld [vmem:[%s8463_s1 + $0x3d8] sm:$0x3f]  ;;  %v7714_v30 = vld [vmem:[%s8463_s1 + $0x3e0] sm:$0xff]  ;;  %v1320_v9 = vmul.f32 %v9039_v11, %v3977_v49 }
 0xc8a   :  { %v7704_v35 = vmul.f32 %v9042_v16, %v7664_v32  ;;  %v7719_v48 = vld [vmem:[%s8463_s1 + $0x3a8] sm:$0x3f]  ;;  %v7724_v47 = vmul.f32 %v9040_v41, %v7676_v13  ;;  %v4230_v21 = vld [vmem:[%s8463_s1 + $0x330] sm:$0xff]  ;;  %v4232_v3 = vld [vmem:[%s8463_s1 + $0x338] sm:$0x3f] }
 0xc8b   :  { %v1321_v43 = vmul.f32 %v4230_v21, %v9041_v52  ;;  %v9043_v42 = vld [vmem:[#allocation59_spill] sm:$0xff]  ;;  %v4231_v31 = vld [vmem:[%s8463_s1 + $0x370] sm:$0xff]  ;;  %v1322_v22 = vmul.f32 %v4232_v3, %v9039_v11  ;;  %v4234_v58 = vld [vmem:[%s8463_s1 + $0x378] sm:$0x3f] }
 0xc8c   :  { %v7732_v53 = vmul.f32 %v9043_v42, %v7681_v29  ;;  %v7738_v50 = vmul.f32 %v4231_v31, %v9042_v16  ;;  %v4233_v23 = vld [vmem:[%s8464_s0 + $0x41] sm:$0xff]  ;;  %v9044_v6 = vld [vmem:[#allocation240_spill] sm:$0xff]  ;;  %v7763_v46 = vmul.f32 %v4234_v58, %v9040_v41  ;;  %v9048_v61 = vld [vmem:[#allocation73_spill] sm:$0xff]  ;;  %v7775_v27 = vmul.f32 %v9043_v42, %v7719_v48 }
 0xc8d   :  { %v1323_v10 = vmul.f32 %v4233_v23, %v9044_v6  ;;  %v9045_v44 = vld [vmem:[#allocation32_spill] sm:$0xff]  ;;  %v7755_v26 = vld [vmem:[%s8463_s1 + $0x3e8] sm:$0x3f]  ;;  %v7767_v20 = vmul.f32 %v9048_v61, %v7709_v12  ;;  %v9053_v15 = vld [vmem:[#allocation2_spill] sm:$0xff]  ;;  %v1327_v59 = vmul.f32 %v4233_v23, %v3976_v24 }
 0xc8e   :  { %v7750_v54 = vmul.f32 %v9045_v44, %v7690_v34  ;;  %9046 = vst [vmem:[#allocation130_spill] sm:$0xff] %v7755_v26  ;;  %v9050_v8 = vld [vmem:[#allocation72_spill] sm:$0xff]  ;;  %9052 = vst [vmem:[#allocation170_spill] sm:$0xff] %v7775_v27  ;;  %v4236_v51 = vld [vmem:[%s8464_s0 + $0x49] sm:$0x3f]  ;;  %v7800_v6 = vmul.f32 %v9048_v61, %v7755_v26 }
 0xc8f   :  { %9049 = vst [vmem:[#allocation143_spill] sm:$0xff] %v7767_v20  ;;  %v7771_v39 = vmul.f32 %v9050_v8, %v7714_v30  ;;  %v4235_v28 = vld [vmem:[%s8464_s0 + $0x51] sm:$0xff]  ;;  %v9055_v11 = vld [vmem:[#allocation3_spill] sm:$0xff]  ;;  %v4238_v21 = vld [vmem:[%s8464_s0 + $0x59] sm:$0x3f] }
 0xc90   :  { %v7781_v60 = vmul.f32 %v4235_v28, %v9053_v15  ;;  %v9054_v25 = vld [vmem:[#allocation16_spill] sm:$0xff]  ;;  %v1325_v41 = vmul.f32 %v4233_v23, %v9055_v11  ;;  %v9057_v31 = vld [vmem:[#allocation17_spill] sm:$0xff]  ;;  %9058 = vst [vmem:[#allocation158_spill] sm:$0xff] %v7800_v6  ;;  %v9061_v11 = vld [vmem:[#allocation18_spill] sm:$0xff]  ;;  %v1328_v6 = vmul.f32 %v4236_v51, %v3977_v49 }
 0xc91   :  { %9051 = vst [vmem:[#allocation144_spill] sm:$0xff] %v7771_v39  ;;  %v1324_v5 = vmul.f32 %v4236_v51, %v9054_v25  ;;  %v4237_v52 = vld [vmem:[%s8463_s1 + $0x3b0] sm:$0xff]  ;;  %v1365_v3 = vmul.f32 %v4238_v21, %v9057_v31  ;;  %v1326_v31 = vmul.f32 %v4236_v51, %v3975_v63  ;;  %v4241_v14 = vld [vmem:[%s8464_s0 + $0x61] sm:$0xff] }
 0xc92   :  { %v7792_v16 = vmul.f32 %v4237_v52, %v9045_v44  ;;  %v4239_v58 = vld [vmem:[%s8463_s1 + $0x3f0] sm:$0xff]  ;;  %v4240_v44 = vld [vmem:[%s8463_s1 + $0x3b8] sm:$0x3f]  ;;  %v1366_v52 = vmul.f32 %v4235_v28, %v9061_v11  ;;  %v9067_v11 = vld [vmem:[#allocation106_spill] sm:$0xff] }
 0xc93   :  { %v7806_v15 = vmul.f32 %v4239_v58, %v9050_v8  ;;  %v7812_v25 = vmul.f32 %v4240_v44, %v9043_v42  ;;  %v9062_v17 = vld [vmem:[#allocation44_spill] sm:$0xff]  ;;  %v9064_v8 = vld [vmem:[#allocation103_spill] sm:$0xff]  ;;  %v9066_v42 = vld [vmem:[#allocation105_spill] sm:$0xff]  ;;  %v1278_v63 = vadd.f32 %v9067_v11, %v1141_v38  ;;  %v1367_v38 = vmul.f32 %v4238_v21, %v7656_v4 }
 0xc94   :  { %9056 = vst [vmem:[#allocation157_spill] sm:$0xff] %v7792_v16  ;;  %v7819_v19 = vmul.f32 %v4241_v14, %v9062_v17  ;;  %v1275_v58 = vadd.f32 %v9064_v8, %v7645_v55  ;;  %v1277_v44 = vadd.f32 %v9066_v42, %v7651_v7  ;;  %v9068_v24 = vld [vmem:[#allocation107_spill] sm:$0xff]  ;;  %v9069_v39 = vld [vmem:[#allocation108_spill] sm:$0xff]  ;;  %v7831_v17 = vpop.permute.xlu0 %3514  ;;  %v9073_v55 = vld [vmem:[#allocation110_spill] sm:$0xff]  ;;  %v1369_v4 = vmul.f32 %v4238_v21, %v7676_v13 }
 0xc95   :  { %9059 = vst [vmem:[#allocation184_spill] sm:$0xff] %v7806_v15  ;;  %9060 = vst [vmem:[#allocation171_spill] sm:$0xff] %v7812_v25  ;;  %v1276_v15 = vadd.f32 %v9065_v2, %v7648_v62  ;;  %v1279_v23 = vadd.f32 %v9068_v24, %v1142_v56  ;;  %v1280_v20 = vadd.f32 %v9069_v39, %v1143_v33  ;;  %v9070_v25 = vld [vmem:[#allocation109_spill] sm:$0xff]  ;;  %v9074_v26 = vld [vmem:[#allocation111_spill] sm:$0xff] }
 0xc96   :  { %9063 = vst [vmem:[#allocation172_spill] sm:$0xff] %v7819_v19  ;;  %v1281_v16 = vadd.f32 %v9070_v25, %v1144_v57  ;;  %9071 = vst [vmem:[#allocation198_spill] sm:$0xff] %v7831_v17  ;;  %v7833_v19 = vpop.permute.xlu1 %3516  ;;  %v1282_v8 = vadd.f32 %v9073_v55, %v1145_v40  ;;  %v1283_v2 = vadd.f32 %v9074_v26, %v1146_v37  ;;  %v9075_v62 = vld [vmem:[#allocation112_spill] sm:$0xff]  ;;  %v9076_v7 = vld [vmem:[#allocation113_spill] sm:$0xff] }
 0xc97   :  { %9072 = vst [vmem:[#allocation185_spill] sm:$0xff] %v7833_v19  ;;  %v1284_v27 = vadd.f32 %v9075_v62, %v1147_v45  ;;  %v1285_v49 = vadd.f32 %v9076_v7, %v1148_v18  ;;  %v1368_v56 = vmul.f32 %v4235_v28, %v7664_v32  ;;  %v4242_v33 = vld [vmem:[%s8463_s1 + $0x3f8] sm:$0x3f]  ;;  %v9077_v39 = vld [vmem:[#allocation58_spill] sm:$0xff]  ;;  %v1334_v45 = vadd.f32 %v7693_v36, %v1275_v58  ;;  %v4244_v55 = vld [vmem:[%s8464_s0 + $0x69] sm:$0x3f] }
 0xc98   :  { %v1445_v57 = vmul.f32 %v4242_v33, %v9048_v61  ;;  %v4243_v40 = vld [vmem:[%s8464_s0 + $0x71] sm:$0xff]  ;;  %v1335_v18 = vadd.f32 %v7700_v0, %v1276_v15  ;;  %v1336_v26 = vadd.f32 %v1320_v9, %v1277_v44  ;;  %v1337_v32 = vadd.f32 %v1321_v43, %v1278_v63  ;;  %v9079_v36 = vld [vmem:[#allocation46_spill] sm:$0xff]  ;;  %v7859_v9 = vpop.permute.xlu0 %3518 }
 0xc99   :  { %v1446_v37 = vmul.f32 %v4243_v40, %v9077_v39  ;;  %v1338_v28 = vadd.f32 %v1322_v22, %v1279_v23  ;;  %v1339_v51 = vadd.f32 %v1323_v10, %v1280_v20  ;;  %v1340_v25 = vadd.f32 %v1324_v5, %v1281_v16  ;;  %v9078_v62 = vld [vmem:[#allocation45_spill] sm:$0xff]  ;;  %9080 = vst [vmem:[#allocation186_spill] sm:$0xff] %v7859_v9  ;;  %v4265_v9 = vld [vmem:[%s8463_s1 + $0x648] sm:$0x3f]  ;;  %v9196_v17 = vld [vmem:[#allocation114_spill] sm:$0xff] }
 0xc9a   :  { %v1341_v42 = vadd.f32 %v1325_v41, %v1282_v8  ;;  %v1342_v11 = vadd.f32 %v1326_v31, %v1283_v2  ;;  %v1343_v61 = vadd.f32 %v1327_v59, %v1284_v27  ;;  %v1344_v24 = vadd.f32 %v1328_v6, %v1285_v49  ;;  %v7861_v43 = vpop.permute.xlu1 %3520  ;;  %v9085_v31 = vld [vmem:[#allocation130_spill] sm:$0xff] }
 0xc9b   :  { %v1406_v7 = vmul.f32 %v4244_v55, %v9078_v62  ;;  %v1407_v58 = vmul.f32 %v4241_v14, %v9079_v36  ;;  %v1408_v0 = vmul.f32 %v4244_v55, %v7681_v29  ;;  %v1409_v13 = vmul.f32 %v4241_v14, %v7690_v34  ;;  %9081 = vst [vmem:[#allocation212_spill] sm:$0xff] %v7861_v43  ;;  %v9086_v63 = vld [vmem:[#allocation157_spill] sm:$0xff] }
 0xc9c   :  { %v1375_v22 = vadd.f32 %v7697_v1, %v1334_v45  ;;  %v1376_v10 = vadd.f32 %v7704_v35, %v1335_v18  ;;  %v1377_v59 = vadd.f32 %v7724_v47, %v1336_v26  ;;  %v1410_v20 = vmul.f32 %v4244_v55, %v7719_v48  ;;  %v4245_v1 = vld [vmem:[%s8464_s0 + $0x79] sm:$0x3f]  ;;  %v9082_v35 = vld [vmem:[#allocation60_spill] sm:$0xff]  ;;  %v9083_v47 = vld [vmem:[#allocation86_spill] sm:$0xff]  ;;  %v7884_v33 = vpop.permute.xlu0 %3522 }
 0xc9d   :  { %v1378_v27 = vadd.f32 %v7738_v50, %v1337_v32  ;;  %v1379_v5 = vadd.f32 %v7763_v46, %v1338_v28  ;;  %v1380_v29 = vadd.f32 %v7781_v60, %v1339_v51  ;;  %v1381_v41 = vadd.f32 %v1365_v3, %v1340_v25  ;;  %v9084_v3 = vld [vmem:[#allocation170_spill] sm:$0xff]  ;;  %v9087_v8 = vld [vmem:[#allocation171_spill] sm:$0xff]  ;;  %v9088_v49 = vld [vmem:[#allocation172_spill] sm:$0xff]  ;;  %9089 = vst [vmem:[#allocation199_spill] sm:$0xff] %v7884_v33 }
 0xc9e   :  { %v1382_v14 = vadd.f32 %v1366_v52, %v1341_v42  ;;  %v1383_v34 = vadd.f32 %v1367_v38, %v1342_v11  ;;  %v1384_v16 = vadd.f32 %v1368_v56, %v1343_v61  ;;  %v1385_v21 = vadd.f32 %v1369_v4, %v1344_v24  ;;  %v9092_v18 = vld [vmem:[#allocation144_spill] sm:$0xff]  ;;  %v9093_v4 = vld [vmem:[#allocation158_spill] sm:$0xff]  ;;  %v9194_v33 = vld [vmem:[#allocation217_spill] sm:$0xff] }
 0xc9f   :  { %v1447_v6 = vmul.f32 %v4245_v1, %v9082_v35  ;;  %v1448_v15 = vmul.f32 %v4243_v40, %v9083_v47  ;;  %v1449_v48 = vmul.f32 %v4245_v1, %v7709_v12  ;;  %v1450_v50 = vmul.f32 %v4243_v40, %v7714_v30  ;;  %v7886_v12 = vpop.permute.xlu1 %3524  ;;  %v9094_v28 = vld [vmem:[#allocation184_spill] sm:$0xff]  ;;  %v9106_v35 = vld [vmem:[#allocation126_spill] sm:$0xff]  ;;  %v9107_v47 = vld [vmem:[#allocation127_spill] sm:$0xff] }
 0xca0   :  { %v1416_v46 = vadd.f32 %v7732_v53, %v1375_v22  ;;  %v1417_v60 = vadd.f32 %v7750_v54, %v1376_v10  ;;  %v1418_v52 = vadd.f32 %v9084_v3, %v1377_v59  ;;  %v1451_v44 = vmul.f32 %v4245_v1, %v9085_v31  ;;  %9090 = vst [vmem:[#allocation200_spill] sm:$0xff] %v7886_v12  ;;  %v9091_v54 = vld [vmem:[#allocation143_spill] sm:$0xff]  ;;  %v9098_v10 = vld [vmem:[#allocation120_spill] sm:$0xff]  ;;  %v9110_v3 = vld [vmem:[#allocation133_spill] sm:$0xff] }
 0xca1   :  { %v1419_v23 = vadd.f32 %v9086_v63, %v1378_v27  ;;  %v1420_v2 = vadd.f32 %v9087_v8, %v1379_v5  ;;  %v1421_v38 = vadd.f32 %v9088_v49, %v1380_v29  ;;  %v1422_v56 = vadd.f32 %v1406_v7, %v1381_v41  ;;  %v9095_v7 = vld [vmem:[#allocation117_spill] sm:$0xff]  ;;  %v9103_v41 = vld [vmem:[#allocation123_spill] sm:$0xff]  ;;  %v9111_v31 = vld [vmem:[#allocation134_spill] sm:$0xff] }
 0xca2   :  { %v1423_v30 = vadd.f32 %v1407_v58, %v1382_v14  ;;  %v1424_v40 = vadd.f32 %v1408_v0, %v1383_v34  ;;  %v1425_v53 = vadd.f32 %v1409_v13, %v1384_v16  ;;  %v1426_v39 = vadd.f32 %v1410_v20, %v1385_v21  ;;  %v9096_v58 = vld [vmem:[#allocation118_spill] sm:$0xff]  ;;  %v9097_v13 = vld [vmem:[#allocation119_spill] sm:$0xff]  ;;  %v7896_v20 = vpop.permute.xlu0 %3526  ;;  %v9101_v5 = vld [vmem:[#allocation121_spill] sm:$0xff] }
 0xca3   :  { %v1457_v45 = vadd.f32 %v9091_v54, %v1416_v46  ;;  %v1458_v26 = vadd.f32 %v9092_v18, %v1417_v60  ;;  %v1459_v32 = vadd.f32 %v9093_v4, %v1418_v52  ;;  %v1460_v51 = vadd.f32 %v9094_v28, %v1419_v23  ;;  %9099 = vst [vmem:[#allocation213_spill] sm:$0xff] %v7896_v20  ;;  %v7898_v27 = vpop.permute.xlu1 %3528  ;;  %v9104_v34 = vld [vmem:[#allocation124_spill] sm:$0xff]  ;;  %v9105_v21 = vld [vmem:[#allocation125_spill] sm:$0xff]  ;;  %v9112_v63 = vld [vmem:[#allocation135_spill] sm:$0xff] }
 0xca4   :  { %v1461_v25 = vadd.f32 %v1445_v57, %v1420_v2  ;;  %v1462_v42 = vadd.f32 %v1446_v37, %v1421_v38  ;;  %v1463_v11 = vadd.f32 %v1447_v6, %v1422_v56  ;;  %v1464_v61 = vadd.f32 %v1448_v15, %v1423_v30  ;;  %9100 = vst [vmem:[#allocation214_spill] sm:$0xff] %v7898_v27  ;;  %v9102_v37 = vld [vmem:[#allocation122_spill] sm:$0xff]  ;;  %v9109_v46 = vld [vmem:[#allocation132_spill] sm:$0xff]  ;;  %v9114_v49 = vld [vmem:[#allocation137_spill] sm:$0xff] }
 0xca5   :  { %v1465_v24 = vadd.f32 %v1449_v48, %v1424_v40  ;;  %v1466_v55 = vadd.f32 %v1450_v50, %v1425_v53  ;;  %v1467_v62 = vadd.f32 %v1451_v44, %v1426_v39  ;;  %v1594_v36 = vadd.f32 %v9095_v7, %v1457_v45  ;;  %v9108_v48 = vld [vmem:[#allocation131_spill] sm:$0xff]  ;;  %v9113_v8 = vld [vmem:[#allocation136_spill] sm:$0xff]  ;;  %v9115_v56 = vld [vmem:[#allocation138_spill] sm:$0xff] }
 0xca6   :  { %v1595_v0 = vadd.f32 %v9096_v58, %v1458_v26  ;;  %v1596_v22 = vadd.f32 %v9097_v13, %v1459_v32  ;;  %v1597_v59 = vadd.f32 %v9098_v10, %v1460_v51  ;;  %v1598_v57 = vadd.f32 %v9101_v5, %v1461_v25  ;;  %v9116_v40 = vld [vmem:[#allocation139_spill] sm:$0xff]  ;;  %v9117_v39 = vld [vmem:[#allocation140_spill] sm:$0xff]  ;;  %v9118_v45 = vld [vmem:[#allocation141_spill] sm:$0xff]  ;;  %v7924_v7 = vpop.permute.xlu0 %3530 }
 0xca7   :  { %v1599_v29 = vadd.f32 %v9102_v37, %v1462_v42  ;;  %v1600_v14 = vadd.f32 %v9103_v41, %v1463_v11  ;;  %v1601_v16 = vadd.f32 %v9104_v34, %v1464_v61  ;;  %v1602_v1 = vadd.f32 %v9105_v21, %v1465_v24  ;;  %v9119_v26 = vld [vmem:[#allocation145_spill] sm:$0xff]  ;;  %v9120_v32 = vld [vmem:[#allocation146_spill] sm:$0xff]  ;;  %v9121_v51 = vld [vmem:[#allocation147_spill] sm:$0xff]  ;;  %9125 = vst [vmem:[#allocation270_spill] sm:$0xff] %v7924_v7 }
 0xca8   :  { %v1603_v6 = vadd.f32 %v9106_v35, %v1466_v55  ;;  %v1604_v15 = vadd.f32 %v9107_v47, %v1467_v62  ;;  %v1731_v50 = vadd.f32 %v9108_v48, %v1594_v36  ;;  %v1732_v60 = vadd.f32 %v9109_v46, %v1595_v0  ;;  %v9122_v42 = vld [vmem:[#allocation148_spill] sm:$0xff]  ;;  %v9123_v61 = vld [vmem:[#allocation149_spill] sm:$0xff]  ;;  %v9124_v55 = vld [vmem:[#allocation150_spill] sm:$0xff]  ;;  %v7926_v36 = vpop.permute.xlu1 %3532 }
 0xca9   :  { %v1733_v52 = vadd.f32 %v9110_v3, %v1596_v22  ;;  %v1734_v44 = vadd.f32 %v9111_v31, %v1597_v59  ;;  %v1735_v23 = vadd.f32 %v9112_v63, %v1598_v57  ;;  %v1736_v2 = vadd.f32 %v9113_v8, %v1599_v29  ;;  %9126 = vst [vmem:[#allocation271_spill] sm:$0xff] %v7926_v36  ;;  %v9127_v58 = vld [vmem:[#allocation151_spill] sm:$0xff]  ;;  %v9128_v13 = vld [vmem:[#allocation152_spill] sm:$0xff]  ;;  %v9129_v10 = vld [vmem:[#allocation153_spill] sm:$0xff] }
 0xcaa   :  { %v1737_v38 = vadd.f32 %v9114_v49, %v1600_v14  ;;  %v1738_v30 = vadd.f32 %v9115_v56, %v1601_v16  ;;  %v1739_v53 = vadd.f32 %v9116_v40, %v1602_v1  ;;  %v1740_v54 = vadd.f32 %v9117_v39, %v1603_v6  ;;  %v9130_v5 = vld [vmem:[#allocation154_spill] sm:$0xff]  ;;  %v9131_v37 = vld [vmem:[#allocation155_spill] sm:$0xff]  ;;  %v9133_v34 = vld [vmem:[#allocation160_spill] sm:$0xff] }
 0xcab   :  { %v1741_v18 = vadd.f32 %v9118_v45, %v1604_v15  ;;  %v1868_v4 = vadd.f32 %v9119_v26, %v1731_v50  ;;  %v1869_v28 = vadd.f32 %v9120_v32, %v1732_v60  ;;  %v1870_v25 = vadd.f32 %v9121_v51, %v1733_v52  ;;  %v9132_v41 = vld [vmem:[#allocation159_spill] sm:$0xff]  ;;  %v9134_v21 = vld [vmem:[#allocation161_spill] sm:$0xff]  ;;  %v9135_v35 = vld [vmem:[#allocation162_spill] sm:$0xff] }
 0xcac   :  { %v1871_v11 = vadd.f32 %v9122_v42, %v1734_v44  ;;  %v1872_v24 = vadd.f32 %v9123_v61, %v1735_v23  ;;  %v1873_v62 = vadd.f32 %v9124_v55, %v1736_v2  ;;  %v1874_v0 = vadd.f32 %v9127_v58, %v1737_v38  ;;  %v9136_v47 = vld [vmem:[#allocation163_spill] sm:$0xff]  ;;  %v9137_v48 = vld [vmem:[#allocation164_spill] sm:$0xff]  ;;  %v9138_v46 = vld [vmem:[#allocation165_spill] sm:$0xff]  ;;  %v7952_v42 = vpop.permute.xlu0 %3534 }
 0xcad   :  { %v1875_v22 = vadd.f32 %v9128_v13, %v1738_v30  ;;  %v1876_v59 = vadd.f32 %v9129_v10, %v1739_v53  ;;  %v1877_v57 = vadd.f32 %v9130_v5, %v1740_v54  ;;  %v1878_v29 = vadd.f32 %v9131_v37, %v1741_v18  ;;  %v9139_v3 = vld [vmem:[#allocation166_spill] sm:$0xff]  ;;  %v9140_v31 = vld [vmem:[#allocation167_spill] sm:$0xff]  ;;  %v9141_v63 = vld [vmem:[#allocation168_spill] sm:$0xff]  ;;  %9151 = vst [vmem:[#allocation226_spill] sm:$0xff] %v7952_v42 }
 0xcae   :  { %v2005_v14 = vadd.f32 %v9132_v41, %v1868_v4  ;;  %v2006_v16 = vadd.f32 %v9133_v34, %v1869_v28  ;;  %v2007_v1 = vadd.f32 %v9134_v21, %v1870_v25  ;;  %v2008_v6 = vadd.f32 %v9135_v35, %v1871_v11  ;;  %v9142_v8 = vld [vmem:[#allocation169_spill] sm:$0xff]  ;;  %v9144_v56 = vld [vmem:[#allocation174_spill] sm:$0xff]  ;;  %v9145_v40 = vld [vmem:[#allocation175_spill] sm:$0xff]  ;;  %v7954_v11 = vpop.permute.xlu1 %3536 }
 0xcaf   :  { %v2009_v15 = vadd.f32 %v9136_v47, %v1872_v24  ;;  %v2010_v50 = vadd.f32 %v9137_v48, %v1873_v62  ;;  %v2011_v60 = vadd.f32 %v9138_v46, %v1874_v0  ;;  %v2012_v52 = vadd.f32 %v9139_v3, %v1875_v22  ;;  %v9143_v49 = vld [vmem:[#allocation173_spill] sm:$0xff]  ;;  %v9146_v39 = vld [vmem:[#allocation176_spill] sm:$0xff]  ;;  %v9148_v26 = vld [vmem:[#allocation178_spill] sm:$0xff]  ;;  %9152 = vst [vmem:[#allocation242_spill] sm:$0xff] %v7954_v11 }
 0xcb0   :  { %v2013_v44 = vadd.f32 %v9140_v31, %v1876_v59  ;;  %v2014_v23 = vadd.f32 %v9141_v63, %v1877_v57  ;;  %v2015_v2 = vadd.f32 %v9142_v8, %v1878_v29  ;;  %v2142_v38 = vadd.f32 %v9143_v49, %v2005_v14  ;;  %v9147_v45 = vld [vmem:[#allocation177_spill] sm:$0xff]  ;;  %v9149_v32 = vld [vmem:[#allocation179_spill] sm:$0xff]  ;;  %v9150_v51 = vld [vmem:[#allocation180_spill] sm:$0xff] }
 0xcb1   :  { %v2143_v30 = vadd.f32 %v9144_v56, %v2006_v16  ;;  %v2144_v53 = vadd.f32 %v9145_v40, %v2007_v1  ;;  %v2145_v54 = vadd.f32 %v9146_v39, %v2008_v6  ;;  %v2146_v18 = vadd.f32 %v9147_v45, %v2009_v15  ;;  %v9153_v61 = vld [vmem:[#allocation181_spill] sm:$0xff]  ;;  %v9154_v55 = vld [vmem:[#allocation182_spill] sm:$0xff]  ;;  %v9155_v58 = vld [vmem:[#allocation183_spill] sm:$0xff] }
 0xcb2   :  { %v2147_v4 = vadd.f32 %v9148_v26, %v2010_v50  ;;  %v2148_v28 = vadd.f32 %v9149_v32, %v2011_v60  ;;  %v2149_v25 = vadd.f32 %v9150_v51, %v2012_v52  ;;  %v2150_v24 = vadd.f32 %v9153_v61, %v2013_v44  ;;  %v9156_v13 = vld [vmem:[#allocation187_spill] sm:$0xff]  ;;  %v9157_v10 = vld [vmem:[#allocation188_spill] sm:$0xff]  ;;  %v9158_v5 = vld [vmem:[#allocation189_spill] sm:$0xff] }
 0xcb3   :  { %v2151_v62 = vadd.f32 %v9154_v55, %v2014_v23  ;;  %v2152_v0 = vadd.f32 %v9155_v58, %v2015_v2  ;;  %v2279_v22 = vadd.f32 %v9156_v13, %v2142_v38  ;;  %v2280_v59 = vadd.f32 %v9157_v10, %v2143_v30  ;;  %v9159_v37 = vld [vmem:[#allocation190_spill] sm:$0xff]  ;;  %v9160_v41 = vld [vmem:[#allocation191_spill] sm:$0xff]  ;;  %v9161_v34 = vld [vmem:[#allocation192_spill] sm:$0xff] }
 0xcb4   :  { %v2281_v57 = vadd.f32 %v9158_v5, %v2144_v53  ;;  %v2282_v29 = vadd.f32 %v9159_v37, %v2145_v54  ;;  %v2283_v14 = vadd.f32 %v9160_v41, %v2146_v18  ;;  %v2284_v16 = vadd.f32 %v9161_v34, %v2147_v4  ;;  %v9162_v21 = vld [vmem:[#allocation193_spill] sm:$0xff]  ;;  %v9163_v35 = vld [vmem:[#allocation194_spill] sm:$0xff]  ;;  %v9164_v47 = vld [vmem:[#allocation195_spill] sm:$0xff] }
 0xcb5   :  { %v2285_v1 = vadd.f32 %v9162_v21, %v2148_v28  ;;  %v2286_v6 = vadd.f32 %v9163_v35, %v2149_v25  ;;  %v2287_v15 = vadd.f32 %v9164_v47, %v2150_v24  ;;  %v9165_v48 = vld [vmem:[#allocation196_spill] sm:$0xff]  ;;  %v9166_v46 = vld [vmem:[#allocation197_spill] sm:$0xff]  ;;  %v9168_v31 = vld [vmem:[#allocation202_spill] sm:$0xff]  ;;  %v7987_v2 = vpop.permute.xlu1 %3645  ;;  %v7989_v49 = vpop.permute.xlu0 %3643 }
 0xcb6   :  { %v2288_v50 = vadd.f32 %v9165_v48, %v2151_v62  ;;  %v2289_v60 = vadd.f32 %v9166_v46, %v2152_v0  ;;  %v9167_v3 = vld [vmem:[#allocation201_spill] sm:$0xff]  ;;  %v2417_v44 = vadd.f32 %v9168_v31, %v2280_v59  ;;  %v7985_v8 = vld [vmem:[%s8463_s1 + $0x620] sm:$0xff]  ;;  %9169 = vst [vmem:[#allocation227_spill] sm:$0xff] %v7987_v2  ;;  %9170 = vst [vmem:[#allocation228_spill] sm:$0xff] %v7989_v49 }
 0xcb7   :  { %v2416_v52 = vadd.f32 %v9167_v3, %v2279_v22  ;;  %v7975_v63 = vld [vmem:[%s8463_s1 + $0x618] sm:$0x3f]  ;;  %v9171_v38 = vld [vmem:[#allocation203_spill] sm:$0xff]  ;;  %v9172_v30 = vld [vmem:[#allocation204_spill] sm:$0xff] }
 0xcb8   :  { %v7980_v23 = vld [vmem:[%s8463_s1 + $0x658] sm:$0x3f]  ;;  %v7992_v56 = vadd.f32 %v9171_v38, %v2281_v57  ;;  %v7995_v40 = vadd.f32 %v9172_v30, %v2282_v29  ;;  %v9174_v54 = vld [vmem:[#allocation206_spill] sm:$0xff]  ;;  %v8011_v26 = vld [vmem:[%s8463_s1 + $0x628] sm:$0x3f] }
 0xcb9   :  { %v9173_v53 = vld [vmem:[#allocation205_spill] sm:$0xff]  ;;  %v8001_v45 = vadd.f32 %v9174_v54, %v2284_v16  ;;  %v8006_v18 = vld [vmem:[%s8463_s1 + $0x660] sm:$0xff]  ;;  %v8016_v4 = vld [vmem:[%s8463_s1 + $0x668] sm:$0x3f]  ;;  %v8091_v48 = vpop.permute.xlu1 %3649 }
 0xcba   :  { %v7998_v39 = vadd.f32 %v9173_v53, %v2283_v14  ;;  %v9175_v32 = vld [vmem:[#allocation207_spill] sm:$0xff]  ;;  %v9176_v51 = vld [vmem:[#allocation208_spill] sm:$0xff]  ;;  %v9177_v61 = vld [vmem:[#allocation209_spill] sm:$0xff]  ;;  %9182 = vst [vmem:[#allocation256_spill] sm:$0xff] %v8091_v48  ;;  %v2555_v43 = vadd.f32 %v9194_v33, %v7992_v56 }
 0xcbb   :  { %v8019_v28 = vadd.f32 %v9175_v32, %v2285_v1  ;;  %v8022_v25 = vadd.f32 %v9176_v51, %v2286_v6  ;;  %v8025_v24 = vadd.f32 %v9177_v61, %v2287_v15  ;;  %v9178_v55 = vld [vmem:[#allocation210_spill] sm:$0xff]  ;;  %v8033_v58 = vld [vmem:[%s8463_s1 + $0x698] sm:$0x3f]  ;;  %v9179_v13 = vld [vmem:[#allocation211_spill] sm:$0xff] }
 0xcbc   :  { %v8028_v62 = vadd.f32 %v9178_v55, %v2288_v50  ;;  %v8038_v0 = vld [vmem:[%s8463_s1 + $0x6a0] sm:$0xff]  ;;  %v8041_v22 = vadd.f32 %v9179_v13, %v2289_v60  ;;  %v9181_v5 = vld [vmem:[#allocation100_spill] sm:$0xff]  ;;  %v8058_v41 = vld [vmem:[%s8463_s1 + $0x6d8] sm:$0x3f]  ;;  %v8093_v50 = vpop.permute.xlu0 %3647 }
 0xcbd   :  { %v9180_v10 = vld [vmem:[#allocation74_spill] sm:$0xff]  ;;  %v8047_v57 = vmul.f32 %v9181_v5, %v7980_v23  ;;  %v4247_v34 = vld [vmem:[%s8464_s0 + $0x12] sm:$0xff]  ;;  %v4248_v21 = vld [vmem:[%s8464_s0 + $0xa] sm:$0x3f]  ;;  %v8079_v35 = vmul.f32 %v9181_v5, %v8016_v4  ;;  %9183 = vst [vmem:[#allocation243_spill] sm:$0xff] %v8093_v50 }
 0xcbe   :  { %v2596_v59 = vmul.f32 %v9180_v10, %v7975_v63  ;;  %v4246_v37 = vld [vmem:[%s8464_s0 + $0x2] sm:$0xff]  ;;  %v8069_v16 = vmul.f32 %v4247_v34, %v8006_v18  ;;  %v8075_v1 = vmul.f32 %v4248_v21, %v8011_v26  ;;  %v4249_v6 = vld [vmem:[%s8463_s1 + $0x630] sm:$0xff]  ;;  %v4252_v32 = vld [vmem:[%s8463_s1 + $0x638] sm:$0x3f] }
 0xcbf   :  { %v8053_v29 = vmul.f32 %v4246_v37, %v7985_v8  ;;  %v8063_v14 = vld [vmem:[%s8463_s1 + $0x6e0] sm:$0xff]  ;;  %v8084_v47 = vmul.f32 %v4249_v6, %v4246_v37  ;;  %v8089_v15 = vld [vmem:[%s8463_s1 + $0x6a8] sm:$0x3f]  ;;  %v4250_v3 = vld [vmem:[%s8463_s1 + $0x670] sm:$0xff]  ;;  %v2600_v51 = vmul.f32 %v4252_v32, %v4248_v21 }
 0xcc0   :  { %v9184_v46 = vld [vmem:[#allocation215_spill] sm:$0xff]  ;;  %v8099_v31 = vmul.f32 %v4250_v3, %v4247_v34  ;;  %v4253_v61 = vld [vmem:[%s8464_s0 + $0x1a] sm:$0x3f]  ;;  %v9187_v10 = vld [vmem:[#allocation116_spill] sm:$0xff] }
 0xcc1   :  { %v2553_v60 = vadd.f32 %v9184_v46, %v2416_v52  ;;  %v9185_v38 = vld [vmem:[#allocation87_spill] sm:$0xff]  ;;  %v4254_v55 = vld [vmem:[%s8463_s1 + $0x678] sm:$0x3f]  ;;  %v8129_v5 = vmul.f32 %v9187_v10, %v8058_v41  ;;  %v4256_v6 = vld [vmem:[%s8463_s1 + $0x600] sm:$0xff] }
 0xcc2   :  { %v8103_v30 = vmul.f32 %v9185_v38, %v8033_v58  ;;  %v4251_v53 = vld [vmem:[%s8464_s0 + $0x22] sm:$0xff]  ;;  %v8125_v13 = vmul.f32 %v4254_v55, %v4253_v61  ;;  %v4257_v3 = vld [vmem:[%s8464_s0 + $0x52] sm:$0xff]  ;;  %v4259_v61 = vld [vmem:[%s8464_s0 + $0x2a] sm:$0x3f] }
 0xcc3   :  { %v8109_v54 = vmul.f32 %v4251_v53, %v8038_v0  ;;  %v8114_v52 = vld [vmem:[%s8463_s1 + $0x6e8] sm:$0x3f]  ;;  %v4258_v38 = vld [vmem:[%s8463_s1 + $0x640] sm:$0xff]  ;;  %v8153_v55 = vmul.f32 %v4259_v61, %v8089_v15  ;;  %v9189_v42 = vld [vmem:[#allocation216_spill] sm:$0xff]  ;;  %v2612_v12 = vadd.f32 %v2596_v59, %v2553_v60 }
 0xcc4   :  { %9186 = vst [vmem:[#allocation244_spill] sm:$0xff] %v8114_v52  ;;  %v9188_v37 = vld [vmem:[#allocation115_spill] sm:$0xff]  ;;  %v8147_v32 = vmul.f32 %v4258_v38, %v4257_v3  ;;  %v2554_v36 = vadd.f32 %v9189_v42, %v2417_v44  ;;  %v8169_v20 = vmul.f32 %v9187_v10, %v8114_v52  ;;  %v8177_v42 = vpop.permute.xlu1 %3653  ;;  %v8179_v44 = vpop.permute.xlu0 %3651  ;;  %v4267_v33 = vld [vmem:[%s8463_s1 + $0x650] sm:$0xff]  ;;  %v4268_v60 = vld [vmem:[%s8463_s1 + $0x6b8] sm:$0x3f] }
 0xcc5   :  { %v8133_v34 = vmul.f32 %v9188_v37, %v8063_v14  ;;  %v4255_v21 = vld [vmem:[%s8464_s0 + $0x42] sm:$0xff]  ;;  %v4261_v38 = vld [vmem:[%s8464_s0 + $0x4a] sm:$0x3f]  ;;  %9192 = vst [vmem:[#allocation258_spill] sm:$0xff] %v8177_v42  ;;  %9193 = vst [vmem:[#allocation273_spill] sm:$0xff] %v8179_v44  ;;  %v2644_v56 = vmul.f32 %v4267_v33, %v4257_v3  ;;  %v8200_v42 = vmul.f32 %v4268_v60, %v4259_v61 }
 0xcc6   :  { %v2601_v46 = vmul.f32 %v4256_v6, %v4255_v21  ;;  %v4260_v6 = vld [vmem:[%s8463_s1 + $0x6b0] sm:$0xff]  ;;  %v4262_v7 = vld [vmem:[%s8463_s1 + $0x608] sm:$0x3f]  ;;  %9190 = vst [vmem:[#allocation272_spill] sm:$0xff] %v8169_v20  ;;  %v9195_v44 = vld [vmem:[#allocation218_spill] sm:$0xff]  ;;  %v2604_v33 = vmul.f32 %v4261_v38, %v7975_v63  ;;  %v2613_v61 = vadd.f32 %v8053_v29, %v2554_v36  ;;  %v2614_v63 = vadd.f32 %v8075_v1, %v2555_v43 }
 0xcc7   :  { %v8158_v11 = vmul.f32 %v4260_v6, %v4251_v53  ;;  %v2602_v27 = vmul.f32 %v4262_v7, %v4261_v38  ;;  %v4263_v53 = vld [vmem:[%s8463_s1 + $0x6f0] sm:$0xff]  ;;  %v4264_v7 = vld [vmem:[%s8464_s0 + $0x5a] sm:$0x3f]  ;;  %v2556_v59 = vadd.f32 %v9195_v44, %v7995_v40  ;;  %v9197_v40 = vld [vmem:[#allocation219_spill] sm:$0xff] }
 0xcc8   :  { %v8175_v6 = vmul.f32 %v4263_v53, %v9188_v37  ;;  %v2643_v19 = vmul.f32 %v4265_v9, %v4264_v7  ;;  %v4266_v37 = vld [vmem:[%s8463_s1 + $0x610] sm:$0xff]  ;;  %v4269_v9 = vld [vmem:[%s8463_s1 + $0x680] sm:$0xff]  ;;  %v2557_v44 = vadd.f32 %v9197_v40, %v7998_v39  ;;  %v2645_v49 = vmul.f32 %v4264_v7, %v7980_v23  ;;  %v9199_v60 = vld [vmem:[#allocation221_spill] sm:$0xff]  ;;  %v8220_v20 = vpop.permute.xlu1 %3657  ;;  %v8222_v39 = vpop.permute.xlu0 %3655 }
 0xcc9   :  { %v2603_v53 = vmul.f32 %v4266_v37, %v4255_v21  ;;  %v8206_v37 = vmul.f32 %v4269_v9, %v9196_v17  ;;  %v9198_v50 = vld [vmem:[#allocation220_spill] sm:$0xff]  ;;  %v2559_v2 = vadd.f32 %v9199_v60, %v8019_v28  ;;  %v9200_v52 = vld [vmem:[#allocation222_spill] sm:$0xff]  ;;  %v2605_v9 = vmul.f32 %v4255_v21, %v7985_v8  ;;  %v9201_v23 = vld [vmem:[#allocation223_spill] sm:$0xff] }
 0xcca   :  { %9191 = vst [vmem:[#allocation257_spill] sm:$0xff] %v8175_v6  ;;  %v2558_v48 = vadd.f32 %v9198_v50, %v8001_v45  ;;  %v2560_v6 = vadd.f32 %v9200_v52, %v8022_v25  ;;  %v2653_v45 = vadd.f32 %v8047_v57, %v2612_v12  ;;  %v2561_v50 = vadd.f32 %v9201_v23, %v8025_v24  ;;  %v9202_v36 = vld [vmem:[#allocation224_spill] sm:$0xff]  ;;  %v9203_v8 = vld [vmem:[#allocation225_spill] sm:$0xff]  ;;  %v4271_v24 = vld [vmem:[%s8463_s1 + $0x6c0] sm:$0xff] }
 0xccb   :  { %v2562_v29 = vadd.f32 %v9202_v36, %v8028_v62  ;;  %v2615_v28 = vadd.f32 %v8084_v47, %v2556_v59  ;;  %v2606_v25 = vmul.f32 %v4261_v38, %v8011_v26  ;;  %v2563_v52 = vadd.f32 %v9203_v8, %v8041_v22  ;;  %v4270_v21 = vld [vmem:[%s8463_s1 + $0x6f8] sm:$0x3f]  ;;  %v9204_v62 = vld [vmem:[#allocation142_spill] sm:$0xff]  ;;  %v4272_v26 = vld [vmem:[%s8463_s1 + $0x688] sm:$0x3f] }
 0xccc   :  { %v8238_v12 = vmul.f32 %v4270_v21, %v9187_v10  ;;  %v2616_v43 = vadd.f32 %v2600_v51, %v2557_v44  ;;  %v2617_v57 = vadd.f32 %v2601_v46, %v2558_v48  ;;  %v2724_v1 = vmul.f32 %v4271_v24, %v9204_v62  ;;  %v9205_v22 = vld [vmem:[#allocation128_spill] sm:$0xff]  ;;  %v8250_v51 = vpop.permute.xlu1 %3661  ;;  %v8252_v48 = vpop.permute.xlu0 %3659 }
 0xccd   :  { %v2684_v47 = vmul.f32 %v4272_v26, %v9205_v22  ;;  %v2654_v38 = vadd.f32 %v8069_v16, %v2613_v61  ;;  %v2618_v59 = vadd.f32 %v2602_v27, %v2559_v2  ;;  %v2619_v40 = vadd.f32 %v2603_v53, %v2560_v6  ;;  %v4273_v27 = vld [vmem:[%s8463_s1 + $0x690] sm:$0xff] }
 0xcce   :  { %v2646_v10 = vmul.f32 %v4257_v3, %v8006_v18  ;;  %v2655_v46 = vadd.f32 %v8079_v35, %v2614_v63  ;;  %v2620_v44 = vadd.f32 %v2604_v33, %v2561_v50  ;;  %v2621_v60 = vadd.f32 %v2605_v9, %v2562_v29  ;;  %v4274_v35 = vld [vmem:[%s8463_s1 + $0x6c8] sm:$0x3f]  ;;  %v9207_v63 = vld [vmem:[#allocation229_spill] sm:$0xff] }
 0xccf   :  { %v2694_v23 = vadd.f32 %v8103_v30, %v2653_v45  ;;  %v2656_v36 = vadd.f32 %v8099_v31, %v2615_v28  ;;  %v2647_v8 = vmul.f32 %v4264_v7, %v8016_v4  ;;  %v2622_v21 = vadd.f32 %v2606_v25, %v2563_v52  ;;  %v9206_v30 = vld [vmem:[#allocation129_spill] sm:$0xff] }
 0xcd0   :  { %v2685_v2 = vmul.f32 %v4273_v27, %v9196_v17  ;;  %v2657_v18 = vadd.f32 %v8125_v13, %v2616_v43  ;;  %v2658_v16 = vadd.f32 %v8147_v32, %v2617_v57  ;;  %v2725_v3 = vmul.f32 %v4274_v35, %v9206_v30  ;;  %v4275_v17 = vld [vmem:[%s8464_s0 + $0x62] sm:$0xff]  ;;  %v8275_v32 = vpop.permute.xlu1 %3665  ;;  %v8277_v53 = vpop.permute.xlu0 %3663 }
 0xcd1   :  { %v2686_v4 = vmul.f32 %v9205_v22, %v8033_v58  ;;  %v2659_v31 = vadd.f32 %v2643_v19, %v2618_v59  ;;  %v2660_v6 = vadd.f32 %v2644_v56, %v2619_v40  ;;  %v2695_v7 = vadd.f32 %v8109_v54, %v2654_v38  ;;  %v4276_v54 = vld [vmem:[%s8463_s1 + $0x6d0] sm:$0xff]  ;;  %v9209_v22 = vld [vmem:[#allocation245_spill] sm:$0xff]  ;;  %v9210_v38 = vld [vmem:[#allocation230_spill] sm:$0xff] }
 0xcd2   :  { %v2687_v13 = vmul.f32 %v4275_v17, %v8038_v0  ;;  %v2661_v33 = vadd.f32 %v2645_v49, %v2620_v44  ;;  %v2662_v61 = vadd.f32 %v2646_v10, %v2621_v60  ;;  %v2735_v9 = vadd.f32 %v8129_v5, %v2694_v23  ;;  %v4277_v0 = vld [vmem:[%s8464_s0 + $0x6a] sm:$0x3f] }
 0xcd3   :  { %v2696_v58 = vadd.f32 %v8153_v55, %v2655_v46  ;;  %v2663_v19 = vadd.f32 %v2647_v8, %v2622_v21  ;;  %v2697_v56 = vadd.f32 %v8158_v11, %v2656_v36  ;;  %v2726_v45 = vmul.f32 %v4276_v54, %v9204_v62  ;;  %v9213_v46 = vld [vmem:[#allocation231_spill] sm:$0xff]  ;;  %v9215_v36 = vld [vmem:[#allocation232_spill] sm:$0xff] }
 0xcd4   :  { %v2688_v49 = vmul.f32 %v4277_v0, %v8089_v15  ;;  %v2872_v50 = vadd.f32 %v9207_v63, %v2735_v9  ;;  %v2698_v5 = vadd.f32 %v8200_v42, %v2657_v18  ;;  %v2699_v55 = vadd.f32 %v8206_v37, %v2658_v16  ;;  %v8298_v43 = vpop.permute.xlu1 %3669  ;;  %v8300_v57 = vpop.permute.xlu0 %3667  ;;  %v9208_v15 = vld [vmem:[#allocation272_spill] sm:$0xff]  ;;  %v9214_v60 = vld [vmem:[#allocation259_spill] sm:$0xff] }
 0xcd5   :  { %v2727_v11 = vmul.f32 %v9206_v30, %v8058_v41  ;;  %v2736_v29 = vadd.f32 %v8133_v34, %v2695_v7  ;;  %v2700_v28 = vadd.f32 %v2684_v47, %v2659_v31  ;;  %v2701_v25 = vadd.f32 %v2685_v2, %v2660_v6  ;;  %v9211_v41 = vld [vmem:[#allocation257_spill] sm:$0xff]  ;;  %v9212_v47 = vld [vmem:[#allocation244_spill] sm:$0xff]  ;;  %v9216_v2 = vld [vmem:[#allocation246_spill] sm:$0xff] }
 0xcd6   :  { %v2728_v52 = vmul.f32 %v9204_v62, %v8063_v14  ;;  %v2737_v24 = vadd.f32 %v9208_v15, %v2696_v58  ;;  %v2702_v26 = vadd.f32 %v2686_v4, %v2661_v33  ;;  %v2703_v42 = vadd.f32 %v2687_v13, %v2662_v61  ;;  %v9218_v7 = vld [vmem:[#allocation275_spill] sm:$0xff]  ;;  %v9220_v33 = vld [vmem:[#allocation248_spill] sm:$0xff]  ;;  %v9222_v58 = vld [vmem:[#allocation261_spill] sm:$0xff] }
 0xcd7   :  { %v3009_v37 = vadd.f32 %v9209_v22, %v2872_v50  ;;  %v2873_v59 = vadd.f32 %v9210_v38, %v2736_v29  ;;  %v2738_v40 = vadd.f32 %v9211_v41, %v2697_v56  ;;  %v2704_v34 = vadd.f32 %v2688_v49, %v2663_v19  ;;  %v9221_v9 = vld [vmem:[#allocation260_spill] sm:$0xff]  ;;  %v9225_v0 = vld [vmem:[#allocation227_spill] sm:$0xff]  ;;  %v9230_v15 = vld [vmem:[#allocation277_spill] sm:$0xff] }
 0xcd8   :  { %v2729_v10 = vmul.f32 %v9206_v30, %v9212_v47  ;;  %v2874_v14 = vadd.f32 %v9213_v46, %v2737_v24  ;;  %v2739_v62 = vadd.f32 %v8238_v12, %v2698_v5  ;;  %v2740_v44 = vadd.f32 %v2724_v1, %v2699_v55  ;;  %v8313_v16 = vpop.permute.xlu1 %3673  ;;  %v8315_v35 = vpop.permute.xlu0 %3671  ;;  %v9217_v30 = vld [vmem:[#allocation247_spill] sm:$0xff]  ;;  %v9219_v12 = vld [vmem:[#allocation233_spill] sm:$0xff]  ;;  %v9223_v56 = vld [vmem:[#allocation300_spill] sm:$0xff] }
 0xcd9   :  { %v3146_v23 = vadd.f32 %v9214_v60, %v3009_v37  ;;  %v2875_v8 = vadd.f32 %v9215_v36, %v2738_v40  ;;  %v2741_v21 = vadd.f32 %v2725_v3, %v2700_v28  ;;  %v2742_v27 = vadd.f32 %v2726_v45, %v2701_v25  ;;  %v9224_v45 = vld [vmem:[#allocation101_spill] sm:$0xff]  ;;  %v9226_v63 = vld [vmem:[#allocation88_spill] sm:$0xff]  ;;  %v9232_v38 = vld [vmem:[#allocation234_spill] sm:$0xff] }
 0xcda   :  { %v3010_v18 = vadd.f32 %v9216_v2, %v2873_v59  ;;  %v2743_v4 = vadd.f32 %v2727_v11, %v2702_v26  ;;  %v2744_v31 = vadd.f32 %v2728_v52, %v2703_v42  ;;  %v3011_v6 = vadd.f32 %v9217_v30, %v2874_v14  ;;  %v9227_v50 = vld [vmem:[#allocation228_spill] sm:$0xff]  ;;  %v9228_v55 = vld [vmem:[#allocation249_spill] sm:$0xff]  ;;  %v9233_v41 = vld [vmem:[#allocation235_spill] sm:$0xff] }
 0xcdb   :  { %v3283_v17 = vadd.f32 %v9218_v7, %v3146_v23  ;;  %v2876_v1 = vadd.f32 %v9219_v12, %v2739_v62  ;;  %v2745_v13 = vadd.f32 %v2729_v10, %v2704_v34  ;;  %v3012_v61 = vadd.f32 %v9220_v33, %v2875_v8  ;;  %v9229_v29 = vld [vmem:[#allocation276_spill] sm:$0xff]  ;;  %v9234_v34 = vld [vmem:[#allocation262_spill] sm:$0xff]  ;;  %v9235_v10 = vld [vmem:[#allocation263_spill] sm:$0xff] }
 0xcdc   :  { %v3147_v3 = vadd.f32 %v9221_v9, %v3010_v18  ;;  %v3148_v19 = vadd.f32 %v9222_v58, %v3011_v6  ;;  %v3692_v49 = vadd.f32 %v9225_v0, %v9224_v45  ;;  %v3691_v5 = vadd.f32 %v9227_v50, %v9226_v63  ;;  %v3783_v25 = vpop.permute.xlu1 %3782  ;;  %v3781_v52 = vpop.permute.xlu0 %3780  ;;  %v9231_v26 = vld [vmem:[#allocation156_spill] sm:$0xff]  ;;  %v9236_v14 = vld [vmem:[#allocation301_spill] sm:$0xff]  ;;  %v9237_v60 = vld [vmem:[#allocation302_spill] sm:$0xff] }
 0xcdd   :  { %v3420_v54 = vadd.f32 %v9223_v56, %v3283_v17  ;;  %v3013_v11 = vadd.f32 %v9228_v55, %v2876_v1  ;;  %v2877_v59 = vadd.f32 %v9232_v38, %v2740_v44  ;;  %v2878_v40 = vadd.f32 %v9233_v41, %v2741_v21  ;;  %v9238_v36 = vld [vmem:[#allocation256_spill] sm:$0xff]  ;;  %v9239_v2 = vld [vmem:[#allocation102_spill] sm:$0xff]  ;;  %v9240_v18 = vld [vmem:[#allocation243_spill] sm:$0xff] }
 0xcde   :  { %v3284_v28 = vadd.f32 %v9229_v29, %v3147_v3  ;;  %v3285_v24 = vadd.f32 %v9230_v15, %v3148_v19  ;;  %v3829_v22 = vadd.f32 %v3783_v25, %v3692_v49  ;;  %v3828_v37 = vadd.f32 %v3781_v52, %v3691_v5  ;;  %v9241_v44 = vld [vmem:[#allocation250_spill] sm:$0xff]  ;;  %v9242_v6 = vld [vmem:[#allocation251_spill] sm:$0xff]  ;;  %v9246_v19 = vld [vmem:[#allocation185_spill] sm:$0xff] }
 0xcdf   :  { %v3557_v42 = vadd.f32 %v9231_v26, %v3420_v54  ;;  %v3149_v47 = vadd.f32 %v9234_v34, %v3012_v61  ;;  %v3150_v46 = vadd.f32 %v9235_v10, %v3013_v11  ;;  %v3693_v30 = vadd.f32 %v9240_v18, %v9239_v2  ;;  %v9243_v17 = vld [vmem:[#allocation278_spill] sm:$0xff]  ;;  %v9244_v1 = vld [vmem:[#allocation279_spill] sm:$0xff]  ;;  %v9247_v0 = vld [vmem:[#allocation236_spill] sm:$0xff] }
 0xce0   :  { %v3421_v62 = vadd.f32 %v9236_v14, %v3284_v28  ;;  %v3422_v23 = vadd.f32 %v9237_v60, %v3285_v24  ;;  %3847 = vst.msk [vmem:[%s8465_s2 + $0x8] sm:$0x3f] %vm3846_vm0, %v3829_v22  ;;  %v3014_v21 = vadd.f32 %v9241_v44, %v2877_v59  ;;  %v3015_v7 = vadd.f32 %v9242_v6, %v2878_v40  ;;  %v3787_v61 = vpop.permute.xlu1 %3786  ;;  %v3785_v9 = vpop.permute.xlu0 %3784  ;;  %v9245_v3 = vld [vmem:[#allocation198_spill] sm:$0xff]  ;;  %v9248_v63 = vld [vmem:[#allocation237_spill] sm:$0xff]  ;;  %v9249_v5 = vld [vmem:[#allocation264_spill] sm:$0xff] }
 0xce1   :  { %v3694_v8 = vadd.f32 %v9238_v36, %v3557_v42  ;;  %3845 = vst.msk [vmem:[%s8465_s2] sm:$0xff] %vm3844_vm1, %v3828_v37  ;;  %v3286_v12 = vadd.f32 %v9243_v17, %v3149_v47  ;;  %v3287_v33 = vadd.f32 %v9244_v1, %v3150_v46  ;;  %v3830_v45 = vadd.f32 %v3785_v9, %v3693_v30  ;;  %v9250_v11 = vld [vmem:[#allocation265_spill] sm:$0xff]  ;;  %v9251_v28 = vld [vmem:[#allocation303_spill] sm:$0xff]  ;;  %v9252_v52 = vld [vmem:[#allocation304_spill] sm:$0xff] }
 0xce2   :  { %v3558_v58 = vadd.f32 %v9245_v3, %v3421_v62  ;;  %v3559_v56 = vadd.f32 %v9246_v19, %v3422_v23  ;;  %v2879_v49 = vadd.f32 %v9247_v0, %v2742_v27  ;;  %v2880_v50 = vadd.f32 %v9248_v63, %v2743_v4  ;;  %v9253_v24 = vld [vmem:[#allocation258_spill] sm:$0xff]  ;;  %v9254_v42 = vld [vmem:[#allocation273_spill] sm:$0xff]  ;;  %v9255_v27 = vld [vmem:[#allocation252_spill] sm:$0xff] }
 0xce3   :  { %v3831_v54 = vadd.f32 %v3787_v61, %v3694_v8  ;;  %v3151_v55 = vadd.f32 %v9249_v5, %v3014_v21  ;;  %v3152_v29 = vadd.f32 %v9250_v11, %v3015_v7  ;;  %v3423_v25 = vadd.f32 %v9251_v28, %v3286_v12  ;;  %3848 = vst.msk [vmem:[%s8465_s2 + $0x10] sm:$0xff] %vm3844_vm1, %v3830_v45  ;;  %v9256_v37 = vld [vmem:[#allocation253_spill] sm:$0xff]  ;;  %v9257_v59 = vld [vmem:[#allocation280_spill] sm:$0xff]  ;;  %v9259_v46 = vld [vmem:[#allocation186_spill] sm:$0xff] }
 0xce4   :  { %v3424_v15 = vadd.f32 %v9252_v52, %v3287_v33  ;;  %v3696_v26 = vadd.f32 %v9253_v24, %v3559_v56  ;;  %v3695_v22 = vadd.f32 %v9254_v42, %v3558_v58  ;;  %v3016_v4 = vadd.f32 %v9255_v27, %v2879_v49  ;;  %v9258_v40 = vld [vmem:[#allocation281_spill] sm:$0xff]  ;;  %v3791_v47 = vpop.permute.xlu1 %3790  ;;  %v3789_v10 = vpop.permute.xlu0 %3788  ;;  %v9260_v62 = vld [vmem:[#allocation212_spill] sm:$0xff]  ;;  %v9261_v8 = vld [vmem:[#allocation238_spill] sm:$0xff] }
 0xce5   :  { %3849 = vst.msk [vmem:[%s8465_s2 + $0x18] sm:$0x3f] %vm3846_vm0, %v3831_v54  ;;  %v3017_v38 = vadd.f32 %v9256_v37, %v2880_v50  ;;  %v3288_v41 = vadd.f32 %v9257_v59, %v3151_v55  ;;  %v3289_v34 = vadd.f32 %v9258_v40, %v3152_v29  ;;  %v3560_v14 = vadd.f32 %v9259_v46, %v3423_v25  ;;  %v9262_v18 = vld [vmem:[#allocation239_spill] sm:$0xff]  ;;  %v9263_v44 = vld [vmem:[#allocation266_spill] sm:$0xff]  ;;  %v9265_v17 = vld [vmem:[#allocation305_spill] sm:$0xff] }
 0xce6   :  { %v3561_v60 = vadd.f32 %v9260_v62, %v3424_v15  ;;  %v3833_v23 = vadd.f32 %v3791_v47, %v3696_v26  ;;  %v3832_v36 = vadd.f32 %v3789_v10, %v3695_v22  ;;  %v2881_v2 = vadd.f32 %v9261_v8, %v2744_v31  ;;  %v9264_v6 = vld [vmem:[#allocation267_spill] sm:$0xff]  ;;  %v9266_v1 = vld [vmem:[#allocation306_spill] sm:$0xff]  ;;  %v9272_v63 = vld [vmem:[#allocation200_spill] sm:$0xff] }
 0xce7   :  { %v2882_v30 = vadd.f32 %v9262_v18, %v2745_v13  ;;  %v3153_v21 = vadd.f32 %v9263_v44, %v3016_v4  ;;  %v3154_v7 = vadd.f32 %v9264_v6, %v3017_v38  ;;  %v3425_v12 = vadd.f32 %v9265_v17, %v3288_v41  ;;  %v9267_v31 = vld [vmem:[#allocation254_spill] sm:$0xff]  ;;  %v9268_v3 = vld [vmem:[#allocation255_spill] sm:$0xff]  ;;  %v9273_v11 = vld [vmem:[#allocation268_spill] sm:$0xff] }
 0xce8   :  { %v3426_v33 = vadd.f32 %v9266_v1, %v3289_v34  ;;  %v3698_v61 = vadd.f32 %v8220_v20, %v3561_v60  ;;  %v3697_v9 = vadd.f32 %v8222_v39, %v3560_v14  ;;  %3851 = vst.msk [vmem:[%s8465_s2 + $0x28] sm:$0x3f] %vm3846_vm0, %v3833_v23  ;;  %v3018_v13 = vadd.f32 %v9267_v31, %v2881_v2  ;;  %v9269_v19 = vld [vmem:[#allocation282_spill] sm:$0xff]  ;;  %v9270_v54 = vld [vmem:[#allocation283_spill] sm:$0xff]  ;;  %v3795_v45 = vpop.permute.xlu1 %3794  ;;  %v3793_v39 = vpop.permute.xlu0 %3792  ;;  %v9274_v28 = vld [vmem:[#allocation269_spill] sm:$0xff] }
 0xce9   :  { %3850 = vst.msk [vmem:[%s8465_s2 + $0x20] sm:$0xff] %vm3844_vm1, %v3832_v36  ;;  %v3019_v58 = vadd.f32 %v9268_v3, %v2882_v30  ;;  %v3290_v56 = vadd.f32 %v9269_v19, %v3153_v21  ;;  %v3291_v20 = vadd.f32 %v9270_v54, %v3154_v7  ;;  %v9271_v0 = vld [vmem:[#allocation199_spill] sm:$0xff]  ;;  %v9276_v24 = vld [vmem:[#allocation308_spill] sm:$0xff]  ;;  %v9278_v37 = vld [vmem:[#allocation285_spill] sm:$0xff] }
 0xcea   :  { %v3562_v49 = vadd.f32 %v9271_v0, %v3425_v12  ;;  %v3563_v50 = vadd.f32 %v9272_v63, %v3426_v33  ;;  %v3835_v5 = vadd.f32 %v3795_v45, %v3698_v61  ;;  %v3834_v55 = vadd.f32 %v3793_v39, %v3697_v9  ;;  %v9275_v52 = vld [vmem:[#allocation307_spill] sm:$0xff]  ;;  %v9277_v27 = vld [vmem:[#allocation284_spill] sm:$0xff]  ;;  %v9279_v40 = vld [vmem:[#allocation213_spill] sm:$0xff] }
 0xceb   :  { %v3155_v29 = vadd.f32 %v9273_v11, %v3018_v13  ;;  %v3156_v25 = vadd.f32 %v9274_v28, %v3019_v58  ;;  %v3427_v15 = vadd.f32 %v9275_v52, %v3290_v56  ;;  %v3428_v26 = vadd.f32 %v9276_v24, %v3291_v20  ;;  %v9280_v34 = vld [vmem:[#allocation214_spill] sm:$0xff]  ;;  %v9281_v46 = vld [vmem:[#allocation309_spill] sm:$0xff]  ;;  %v9284_v44 = vld [vmem:[#allocation271_spill] sm:$0xff] }
 0xcec   :  { %v3700_v42 = vadd.f32 %v8250_v51, %v3563_v50  ;;  %v3699_v22 = vadd.f32 %v8252_v48, %v3562_v49  ;;  %3853 = vst.msk [vmem:[%s8465_s2 + $0x38] sm:$0x3f] %vm3846_vm0, %v3835_v5  ;;  %v3799_v59 = vpop.permute.xlu1 %3798  ;;  %v3797_v41 = vpop.permute.xlu0 %3796  ;;  %v9282_v62 = vld [vmem:[#allocation310_spill] sm:$0xff]  ;;  %v9285_v1 = vld [vmem:[#allocation311_spill] sm:$0xff]  ;;  %v9287_v9 = vld [vmem:[#allocation312_spill] sm:$0xff] }
 0xced   :  { %3852 = vst.msk [vmem:[%s8465_s2 + $0x30] sm:$0xff] %vm3844_vm1, %v3834_v55  ;;  %v3292_v4 = vadd.f32 %v9277_v27, %v3155_v29  ;;  %v3293_v38 = vadd.f32 %v9278_v37, %v3156_v25  ;;  %v3564_v51 = vadd.f32 %v9279_v40, %v3427_v15  ;;  %v3565_v48 = vadd.f32 %v9280_v34, %v3428_v26  ;;  %v9283_v18 = vld [vmem:[#allocation270_spill] sm:$0xff] }
 0xcee   :  { %v3837_v47 = vadd.f32 %v3799_v59, %v3700_v42  ;;  %v3836_v10 = vadd.f32 %v3797_v41, %v3699_v22  ;;  %v9286_v33 = vld [vmem:[#allocation226_spill] sm:$0xff] }
 0xcef   :  { %v3429_v14 = vadd.f32 %v9281_v46, %v3292_v4  ;;  %v3430_v60 = vadd.f32 %v9282_v62, %v3293_v38  ;;  %v3702_v23 = vadd.f32 %v8275_v32, %v3565_v48  ;;  %v3701_v36 = vadd.f32 %v8277_v53, %v3564_v51  ;;  %v9288_v31 = vld [vmem:[#allocation242_spill] sm:$0xff] }
 0xcf0   :  { %3855 = vst.msk [vmem:[%s8465_s2 + $0x48] sm:$0x3f] %vm3846_vm0, %v3837_v47  ;;  %v3803_v8 = vpop.permute.xlu1 %3802  ;;  %v3801_v2 = vpop.permute.xlu0 %3800  ;;  %v3568_v61 = vadd.f32 %v9286_v33, %v9285_v1 }
 0xcf1   :  { %3854 = vst.msk [vmem:[%s8465_s2 + $0x40] sm:$0xff] %vm3844_vm1, %v3836_v10  ;;  %v3566_v30 = vadd.f32 %v9283_v18, %v3429_v14  ;;  %v3567_v21 = vadd.f32 %v9284_v44, %v3430_v60  ;;  %v3839_v6 = vadd.f32 %v3803_v8, %v3702_v23  ;;  %v3838_v32 = vadd.f32 %v3801_v2, %v3701_v36 }
 0xcf2   :  { %v3705_v58 = vadd.f32 %v8315_v35, %v3568_v61 }
 0xcf3   :  { %v3704_v53 = vadd.f32 %v8298_v43, %v3567_v21  ;;  %v3703_v7 = vadd.f32 %v8300_v57, %v3566_v30  ;;  %3857 = vst.msk [vmem:[%s8465_s2 + $0x58] sm:$0x3f] %vm3846_vm0, %v3839_v6  ;;  %v3569_v43 = vadd.f32 %v9288_v31, %v9287_v9 }
 0xcf4   :  { %3856 = vst.msk [vmem:[%s8465_s2 + $0x50] sm:$0xff] %vm3844_vm1, %v3838_v32  ;;  %v3807_v17 = vpop.permute.xlu1 %3806  ;;  %v3805_v12 = vpop.permute.xlu0 %3804 }
 0xcf5   :  { %v3841_v13 = vadd.f32 %v3807_v17, %v3704_v53  ;;  %v3840_v57 = vadd.f32 %v3805_v12, %v3703_v7  ;;  %v3706_v3 = vadd.f32 %v8313_v16, %v3569_v43 }
 0xcf7   :  { %3859 = vst.msk [vmem:[%s8465_s2 + $0x68] sm:$0x3f] %vm3846_vm0, %v3841_v13 }
 0xcf8   :  { %3858 = vst.msk [vmem:[%s8465_s2 + $0x60] sm:$0xff] %vm3844_vm1, %v3840_v57  ;;  %v3811_v19 = vpop.permute.xlu1 %3810  ;;  %v3809_v56 = vpop.permute.xlu0 %3808 }
 0xcf9   :  { %v3843_v54 = vadd.f32 %v3811_v19, %v3706_v3  ;;  %v3842_v20 = vadd.f32 %v3809_v56, %v3705_v58 }
 0xcfb   :  { %3861 = vst.msk [vmem:[%s8465_s2 + $0x78] sm:$0x3f] %vm3846_vm0, %v3843_v54 }
 0xcfc   :  { %3860 = vst.msk [vmem:[%s8465_s2 + $0x70] sm:$0xff] %vm3844_vm1, %v3842_v20 }

</bundles_post_ra>
